<compile_context>
chip_gen: v7x
topology: tpu7x:2x2x1
jax: 0.10.0
libtpu: 0.0.40
codegen_flags: <defaults>
</compile_context>

<pallas_src>
import functools

import jax
import jax.numpy as jnp
from jax import lax
from jax.experimental import pallas as pl
from jax.experimental.pallas import tpu as pltpu


# ----------------------------------------------------------------------------
# Pallas kernel: one (output-block, z-slab) partial trilinear resample
# ----------------------------------------------------------------------------
def _warp_kernel(coords_ref, img_ref, out_ref, *, H, W, dz):
    """coords_ref: (3, bs) f32 source coords (xs, ys, zs) for this output block.
    img_ref:    (bn, dz*H*W) bf16 z-slab of the flattened source volume(s).
    out_ref:    (bn, bs) f32 output block, accumulated across grid axis 2."""
    bs = out_ref.shape[-1]
    k = pl.program_id(2)

    @pl.when(k == 0)
    def _():
        out_ref[...] = jnp.zeros_like(out_ref)

    xs = coords_ref[0:1, :]            # (1, bs)
    ys = coords_ref[1:2, :]
    zs = coords_ref[2:3, :]

    z0 = k * dz                        # first absolute z index of this slab
    kz = (lax.broadcasted_iota(jnp.int32, (dz, bs), 0) + z0).astype(jnp.float32)
    ky = lax.broadcasted_iota(jnp.int32, (H, bs), 0).astype(jnp.float32)
    kx = lax.broadcasted_iota(jnp.int32, (W, bs), 0).astype(jnp.float32)

    # 1-D trilinear "tent" weights; rows with no corner support stay 0, which
    # implements grid_sample's 'zeros' padding per corner automatically.
    wz = jnp.maximum(0.0, 1.0 - jnp.abs(kz - zs))     # (dz, bs)
    wy = jnp.maximum(0.0, 1.0 - jnp.abs(ky - ys))     # (H, bs)
    wx = jnp.maximum(0.0, 1.0 - jnp.abs(kx - xs))     # (W, bs)

    # Gather slab G[s, m] = wz * wy * wx for this z-slab only.
    wyx = (wy[:, None, :] * wx[None, :, :]).reshape(H * W, bs)
    g = (wz[:, None, :] * wyx[None, :, :]).reshape(dz * H * W, bs)
    g = g.astype(jnp.bfloat16)

    out_ref[...] += jnp.dot(img_ref[...], g, preferred_element_type=jnp.float32)


# ----------------------------------------------------------------------------
# Generation-aware block-size selection
# ----------------------------------------------------------------------------
def _vmem_capacity_bytes():
    try:
        return int(pltpu.get_tpu_info().vmem_capacity_bytes)
    except Exception:
        return 64 * 1024 * 1024        # v7x-safe default


def _pick_block_s(S):
    """Lane-dense output block width (multiple of 128 dividing S)."""
    for cand in (1024, 512, 256, 128):
        if S % cand == 0:
            return cand
    return S                           # tiny/odd volumes: full extent is legal


def _pick_block_z(D, H, W, bs, slab_budget=4 * 1024 * 1024):
    """z-slices per reduction step; in-kernel gather slab (dz*H*W, bs) f32
    must stay within slab_budget (bounds VMEM + caps the live intermediate)."""
    for dz in range(D, 0, -1):         # largest fitting slab -> fewest steps
        if D % dz:
            continue
        kc = dz * H * W
        if (kc % 128 == 0 or dz == D) and kc * bs * 4 <= slab_budget:
            return dz
    for dz in range(1, D + 1):         # nothing fits: smallest legal slab
        if D % dz == 0 and ((dz * H * W) % 128 == 0 or dz == D):
            return dz
    return D


def _pick_block_n(N, kchunk, itemsize, img_budget):
    """Keep all N = B*C rows resident per step unless that breaks the budget."""
    if N <= 16 or N * kchunk * itemsize <= img_budget:
        return N
    bn = (img_budget // (kchunk * itemsize)) // 16 * 16
    bn = max(16, min(bn, N))
    while bn > 16 and N % bn:
        bn -= 16
    return bn if N % bn == 0 else N


# ----------------------------------------------------------------------------
# Wrapper: source coordinates + pallas_call
# ----------------------------------------------------------------------------
def warp_affine3d_pallas(img, minv):
    """img: (B, C, D, H, W); minv: (3, 4) inverse pixel-space affine (x,y,z)."""
    B, C, D, H, W = img.shape
    N, S = B * C, D * H * W
    img2 = img.reshape(N, S).astype(jnp.bfloat16)   # bf16 MXU operand

    # Per output voxel source coords [xs, ys, zs] = minv @ [w, h, d, 1].
    dg = jnp.arange(D, dtype=jnp.float32)[:, None, None]
    hg = jnp.arange(H, dtype=jnp.float32)[None, :, None]
    wg = jnp.arange(W, dtype=jnp.float32)[None, None, :]

    def src(row):
        return (minv[row, 0] * wg + minv[row, 1] * hg
                + minv[row, 2] * dg + minv[row, 3]).reshape(S)

    coords = jnp.stack([src(0), src(1), src(2)], axis=0).astype(jnp.float32)

    vmem_cap = _vmem_capacity_bytes()
    bs = _pick_block_s(S)
    dz = _pick_block_z(D, H, W, bs)
    kchunk = dz * H * W
    bn = _pick_block_n(N, kchunk, 2, img_budget=vmem_cap // 8)

    grid = (N // bn, S // bs, D // dz)   # reduction (z-slab) axis last

    out2 = pl.pallas_call(
        functools.partial(_warp_kernel, H=H, W=W, dz=dz),
        out_shape=jax.ShapeDtypeStruct((N, S), jnp.float32),
        grid_spec=pltpu.PrefetchScalarGridSpec(
            num_scalar_prefetch=0,
            grid=grid,
            in_specs=[
                # coords: one (3, bs) slab per output block, resident across k
                pl.BlockSpec((3, bs), lambda i, j, k: (0, j)),
                # image: one bf16 z-slab per reduction step (double-buffered)
                pl.BlockSpec((bn, kchunk), lambda i, j, k: (i, k)),
            ],
            # output block index constant across k -> resident f32 accumulator
            out_specs=pl.BlockSpec((bn, bs), lambda i, j, k: (i, j)),
        ),
        compiler_params=pltpu.CompilerParams(
            dimension_semantics=("parallel", "parallel", "arbitrary"),
            vmem_limit_bytes=int(min(100 * 1024 * 1024,
                                     max(32 * 1024 * 1024, vmem_cap * 3 // 4)))),
    )(coords, img2)

    return out2.reshape(B, C, D, H, W).astype(img.dtype)


# ----------------------------------------------------------------------------
# On-device parameter sampling + module-style forward
# ----------------------------------------------------------------------------
def sample_affine_matrix(key, degrees, translate, scale):
    ks = jax.random.split(key, 7)

    def u(k, lo, hi):
        return jax.random.uniform(k, (), jnp.float32, lo, hi)

    yaw = jnp.deg2rad(u(ks[0], -degrees, degrees))
    pitch = jnp.deg2rad(u(ks[1], -degrees, degrees))
    roll = jnp.deg2rad(u(ks[2], -degrees, degrees))
    s = u(ks[3], scale[0], scale[1])                    # sx = sy = sz
    tx = u(ks[4], -translate[0], translate[0])
    ty = u(ks[5], -translate[1], translate[1])
    tz = u(ks[6], -translate[2], translate[2])

    one, zero = jnp.float32(1.0), jnp.float32(0.0)
    cr, sr = jnp.cos(roll), jnp.sin(roll)
    cp, sp = jnp.cos(pitch), jnp.sin(pitch)
    cy, sy = jnp.cos(yaw), jnp.sin(yaw)
    Rx = jnp.stack([jnp.stack([one, zero, zero]),
                    jnp.stack([zero, cr, -sr]),
                    jnp.stack([zero, sr, cr])])
    Ry = jnp.stack([jnp.stack([cp, zero, sp]),
                    jnp.stack([zero, one, zero]),
                    jnp.stack([-sp, zero, cp])])
    Rz = jnp.stack([jnp.stack([cy, -sy, zero]),
                    jnp.stack([sy, cy, zero]),
                    jnp.stack([zero, zero, one])])
    R = Rz @ Ry @ Rx
    A = R * s                                           # uniform row scale
    t = jnp.stack([tx, ty, tz])
    bottom = jnp.array([[0.0, 0.0, 0.0, 1.0]], jnp.float32)
    return jnp.concatenate([jnp.concatenate([A, t[:, None]], axis=1), bottom], 0)


def random_affine_3d(x, key, *, degrees, translate, scale, p=0.5):
    """Module-style forward: on-device probability gate (lax.cond) + single
    sampled transform applied to the whole batch via the Pallas warp kernel."""
    kp, ka = jax.random.split(key)
    orig_ndim = x.ndim
    if x.ndim == 4:
        x = x[None]
    M = sample_affine_matrix(ka, degrees, translate, scale)
    minv = jnp.linalg.inv(M)[:3]
    take = jax.random.uniform(kp) < p
    y = lax.cond(take,
                 lambda ops: warp_affine3d_pallas(ops[0], ops[1]),
                 lambda ops: ops[0],
                 (x, minv))
    return y[0] if orig_ndim == 4 else y


# ----------------------------------------------------------------------------
# Pure-JAX reference (trilinear sample, zero padding) for validation
# ----------------------------------------------------------------------------
def warp_affine3d_reference(img, minv):
    B, C, D, H, W = img.shape
    dg, hg, wg = jnp.meshgrid(jnp.arange(D, dtype=jnp.float32),
                              jnp.arange(H, dtype=jnp.float32),
                              jnp.arange(W, dtype=jnp.float32), indexing="ij")
    xs = minv[0, 0] * wg + minv[0, 1] * hg + minv[0, 2] * dg + minv[0, 3]
    ys = minv[1, 0] * wg + minv[1, 1] * hg + minv[1, 2] * dg + minv[1, 3]
    zs = minv[2, 0] * wg + minv[2, 1] * hg + minv[2, 2] * dg + minv[2, 3]
    x0f, y0f, z0f = jnp.floor(xs), jnp.floor(ys), jnp.floor(zs)
    fx, fy, fz = xs - x0f, ys - y0f, zs - z0f
    x0, y0, z0 = (a.astype(jnp.int32) for a in (x0f, y0f, z0f))

    imgf = img.astype(jnp.float32)
    out = jnp.zeros(img.shape, jnp.float32)
    for dzc, wz_ in ((0, 1.0 - fz), (1, fz)):
        for dyc, wy_ in ((0, 1.0 - fy), (1, fy)):
            for dxc, wx_ in ((0, 1.0 - fx), (1, fx)):
                zi, yi, xi = z0 + dzc, y0 + dyc, x0 + dxc
                valid = ((zi >= 0) & (zi < D) & (yi >= 0) & (yi < H)
                         & (xi >= 0) & (xi < W))
                zc = jnp.clip(zi, 0, D - 1)
                yc = jnp.clip(yi, 0, H - 1)
                xc = jnp.clip(xi, 0, W - 1)
                vals = imgf[:, :, zc, yc, xc]
                w = jnp.where(valid, wz_ * wy_ * wx_, 0.0)
                out = out + vals * w
    return out.astype(img.dtype)


# ----------------------------------------------------------------------------
if __name__ == "__main__":
    key = jax.random.PRNGKey(0)
    k_img, k_aff = jax.random.split(key)

    B, C, D, H, W = 2, 4, 8, 16, 16
    img = jax.random.normal(k_img, (B, C, D, H, W), dtype=jnp.float32)

    degrees, translate, scale = 15.0, (2.0, 2.0, 1.0), (0.9, 1.1)

    # Module-style entry point (p=1.0 so the warp branch always runs).
    rand_affine = jax.jit(functools.partial(
        random_affine_3d, degrees=degrees, translate=translate,
        scale=scale, p=1.0))
    out_module = jax.block_until_ready(rand_affine(img, k_aff))
    assert out_module.shape == img.shape and out_module.dtype == img.dtype

    # Numeric check of the Pallas warp (and the module path) against the
    # pure-JAX trilinear reference for the same sampled transform.
    _, ka = jax.random.split(k_aff)                       # same split as module
    M = sample_affine_matrix(ka, degrees, translate, scale)
    minv = jnp.linalg.inv(M)[:3]

    warp = jax.jit(warp_affine3d_pallas)
    out = jax.block_until_ready(warp(img, minv))
    ref = warp_affine3d_reference(img, minv)

    assert out.shape == img.shape and out.dtype == img.dtype
    tol = dict(atol=5e-2, rtol=5e-2)                      # bf16 MXU operands
    max_err = float(jnp.max(jnp.abs(out - ref)))
    assert bool(jnp.allclose(out, ref, **tol)), (
        f"Pallas RandomAffine3D mismatch vs reference (max abs err {max_err})")
    mod_err = float(jnp.max(jnp.abs(out_module - ref)))
    assert bool(jnp.allclose(out_module, ref, **tol)), (
        f"Module-path mismatch vs reference (max abs err {mod_err})")

    print("KERNEL_OK")
</pallas_src>

<mosaic_0001>
module attributes {stable_mosaic.version = 11 : i64} {
  func.func @_warp_kernel(%arg0: i32, %arg1: i32, %arg2: i32, %arg3: memref<3x1024xf32, #tpu.memory_space<vmem>>, %arg4: memref<8x1024xbf16, #tpu.memory_space<vmem>>, %arg5: memref<8x1024xf32, #tpu.memory_space<vmem>>) attributes {dimension_semantics = [#tpu.dimension_semantics<parallel>, #tpu.dimension_semantics<parallel>, #tpu.dimension_semantics<arbitrary>], iteration_bounds = array<i64: 1, 2, 2>, scalar_prefetch = 0 : i64, scratch_operands = 0 : i64, tpu.core_type = #tpu.core_type<tc>, window_params = [{transform_indices = @transform_0, window_bounds = array<i64: 3, 1024>}, {transform_indices = @transform_1, window_bounds = array<i64: 8, 1024>}, {transform_indices = @transform_2, window_bounds = array<i64: 8, 1024>}]} {
    %c0_i32 = arith.constant 0 : i32
    %0 = arith.cmpi eq, %arg2, %c0_i32 : i32
    %1 = arith.extui %0 : i1 to i32
    %c0_i32_0 = arith.constant 0 : i32
    %2 = arith.cmpi ne, %1, %c0_i32_0 : i32
    scf.if %2 {
      %cst_16 = arith.constant 0.000000e+00 : f32
      %54 = vector.broadcast %cst_16 : f32 to vector<8x1024xf32>
      %c0_17 = arith.constant 0 : index
      %c0_18 = arith.constant 0 : index
      %55 = vector.load %arg5[%c0_17, %c0_18] : memref<8x1024xf32, #tpu.memory_space<vmem>>, vector<8x1024xf32>
      tpu.vector_store %arg5[%c0_17, %c0_18], %54 {strides = array<i32>} : memref<8x1024xf32, #tpu.memory_space<vmem>>, vector<8x1024xf32>,
    } else {
    }
    %c0 = arith.constant 0 : index
    %c0_1 = arith.constant 0 : index
    %3 = vector.load %arg3[%c0, %c0_1] : memref<3x1024xf32, #tpu.memory_space<vmem>>, vector<1x1024xf32>
    %c1 = arith.constant 1 : index
    %c0_2 = arith.constant 0 : index
    %4 = vector.load %arg3[%c1, %c0_2] : memref<3x1024xf32, #tpu.memory_space<vmem>>, vector<1x1024xf32>
    %c2 = arith.constant 2 : index
    %c0_3 = arith.constant 0 : index
    %5 = vector.load %arg3[%c2, %c0_3] : memref<3x1024xf32, #tpu.memory_space<vmem>>, vector<1x1024xf32>
    %c4_i32 = arith.constant 4 : i32
    %6 = arith.muli %arg2, %c4_i32 : i32
    %7 = tpu.iota {dimensions = array<i32: 0>} : vector<4x1024xi32>
    %8 = vector.broadcast %6 : i32 to vector<4x1024xi32>
    %9 = arith.addi %7, %8 : vector<4x1024xi32>
    %10 = arith.sitofp %9 : vector<4x1024xi32> to vector<4x1024xf32>
    %11 = tpu.iota {dimensions = array<i32: 0>} : vector<16x1024xi32>
    %12 = arith.sitofp %11 : vector<16x1024xi32> to vector<16x1024xf32>
    %13 = tpu.iota {dimensions = array<i32: 0>} : vector<16x1024xi32>
    %14 = arith.sitofp %13 : vector<16x1024xi32> to vector<16x1024xf32>
    %15 = vector.broadcast %5 : vector<1x1024xf32> to vector<4x1024xf32>
    %16 = arith.subf %10, %15 : vector<4x1024xf32>
    %17 = math.absf %16 : vector<4x1024xf32>
    %cst = arith.constant 1.000000e+00 : f32
    %18 = vector.broadcast %cst : f32 to vector<4x1024xf32>
    %19 = arith.subf %18, %17 : vector<4x1024xf32>
    %cst_4 = arith.constant 0.000000e+00 : f32
    %20 = vector.broadcast %cst_4 : f32 to vector<4x1024xf32>
    %21 = arith.maximumf %20, %19 : vector<4x1024xf32>
    %22 = vector.broadcast %4 : vector<1x1024xf32> to vector<16x1024xf32>
    %23 = arith.subf %12, %22 : vector<16x1024xf32>
    %24 = math.absf %23 : vector<16x1024xf32>
    %cst_5 = arith.constant 1.000000e+00 : f32
    %25 = vector.broadcast %cst_5 : f32 to vector<16x1024xf32>
    %26 = arith.subf %25, %24 : vector<16x1024xf32>
    %cst_6 = arith.constant 0.000000e+00 : f32
    %27 = vector.broadcast %cst_6 : f32 to vector<16x1024xf32>
    %28 = arith.maximumf %27, %26 : vector<16x1024xf32>
    %29 = vector.broadcast %3 : vector<1x1024xf32> to vector<16x1024xf32>
    %30 = arith.subf %14, %29 : vector<16x1024xf32>
    %31 = math.absf %30 : vector<16x1024xf32>
    %cst_7 = arith.constant 1.000000e+00 : f32
    %32 = vector.broadcast %cst_7 : f32 to vector<16x1024xf32>
    %33 = arith.subf %32, %31 : vector<16x1024xf32>
    %cst_8 = arith.constant 0.000000e+00 : f32
    %34 = vector.broadcast %cst_8 : f32 to vector<16x1024xf32>
    %35 = arith.maximumf %34, %33 : vector<16x1024xf32>
    %36 = vector.shape_cast %28 : vector<16x1024xf32> to vector<16x1x1024xf32>
    %37 = vector.shape_cast %35 : vector<16x1024xf32> to vector<1x16x1024xf32>
    %38 = vector.broadcast %36 : vector<16x1x1024xf32> to vector<16x16x1024xf32>
    %39 = vector.broadcast %37 : vector<1x16x1024xf32> to vector<16x16x1024xf32>
    %40 = arith.mulf %38, %39 : vector<16x16x1024xf32>
    %41 = vector.shape_cast %40 : vector<16x16x1024xf32> to vector<256x1024xf32>
    %42 = vector.shape_cast %21 : vector<4x1024xf32> to vector<4x1x1024xf32>
    %43 = vector.shape_cast %41 : vector<256x1024xf32> to vector<1x256x1024xf32>
    %44 = vector.broadcast %42 : vector<4x1x1024xf32> to vector<4x256x1024xf32>
    %45 = vector.broadcast %43 : vector<1x256x1024xf32> to vector<4x256x1024xf32>
    %46 = arith.mulf %44, %45 : vector<4x256x1024xf32>
    %47 = vector.shape_cast %46 : vector<4x256x1024xf32> to vector<1024x1024xf32>
    %48 = arith.truncf %47 : vector<1024x1024xf32> to vector<1024x1024xbf16>
    %c0_9 = arith.constant 0 : index
    %c0_10 = arith.constant 0 : index
    %49 = vector.load %arg5[%c0_9, %c0_10] : memref<8x1024xf32, #tpu.memory_space<vmem>>, vector<8x1024xf32>
    %c0_11 = arith.constant 0 : index
    %c0_12 = arith.constant 0 : index
    %50 = vector.load %arg4[%c0_11, %c0_12] : memref<8x1024xbf16, #tpu.memory_space<vmem>>, vector<8x1024xbf16>
    %cst_13 = arith.constant dense<0.000000e+00> : vector<8x1024xf32>
    %51 = tpu.matmul %50, %48, %cst_13 {dimension_numbers = #tpu.dot_dimension_numbers<[1], [0], [0], [1], [0, 0, 1, 1], [], []>} : vector<8x1024xbf16>, vector<1024x1024xbf16>, vector<8x1024xf32> -> vector<8x1024xf32>
    %52 = arith.addf %49, %51 : vector<8x1024xf32>
    %c0_14 = arith.constant 0 : index
    %c0_15 = arith.constant 0 : index
    %53 = vector.load %arg5[%c0_14, %c0_15] : memref<8x1024xf32, #tpu.memory_space<vmem>>, vector<8x1024xf32>
    tpu.vector_store %arg5[%c0_14, %c0_15], %52 {strides = array<i32>} : memref<8x1024xf32, #tpu.memory_space<vmem>>, vector<8x1024xf32>,
    return
  }
  func.func @transform_0(%arg0: i32, %arg1: i32, %arg2: i32) -> (i32, i32) {
    %c0_i32 = arith.constant 0 : i32
    %c0_i32_0 = arith.constant 0 : i32
    return %c0_i32, %arg1 : i32, i32
  }
  func.func @transform_1(%arg0: i32, %arg1: i32, %arg2: i32) -> (i32, i32) {
    %c0_i32 = arith.constant 0 : i32
    return %arg0, %arg2 : i32, i32
  }
  func.func @transform_2(%arg0: i32, %arg1: i32, %arg2: i32) -> (i32, i32) {
    %c0_i32 = arith.constant 0 : i32
    return %arg0, %arg1 : i32, i32
  }
}

</mosaic_0001>

<bundles_post_ra>
// kernel: custom-call.11
= control target key start
LH: loop header
LB: loop body
LE: loop exit
PB: predicated region body
PF: predicated region fallthrough
CT: control target
= control target key end

     0   :  { %5 = vsyncpa [#allocation6], 0  ;;  %v75_v1 = vlaneseq  ;;  %v526_v2 = vmov 0   ;;  %s555_s14 = smov 0   ;;  %s605_s0 = inlined_call_operand.vmem [shape: f32[4,4], index: 0, kind: input, shape index: {}]   ;;  %s606_s1 = inlined_call_operand.vmem [shape: f32[4,4], index: 1, kind: output, shape index: {0}]   ;;  %s607_s2 = inlined_call_operand.hbm [shape: s32[4], index: 2, kind: output, shape index: {1}]   ;;  %s608_s3 = inlined_call_operand.vmem [shape: s32[4], index: 3, kind: output, shape index: {2}]  }
   0x1   :  { %v66_v0 = vld [vmem:[%s605_s0] sm:$0xf]  ;;  %74 = vst [vmem:[#allocation4] sm:$0x1] %v526_v2 }
   0x2   :  { %67 = vst [vmem:[#allocation1] sm:$0xf] %v66_v0  ;;  %v552_v3 = vshrl.u32 %v75_v1, 7 }
   0x4   :  { %79 = vst [vmem:[#allocation9] sm:$0xff] %v552_v3 }
   0x9   :  { %v70_v4 = vld [vmem:[#allocation1] sm:$0xf] }
   0xa   :  { %71 = vst [vmem:[#allocation0] sm:$0xf] %v70_v4 }
  0x11   :  { %v72_v5 = vld [vmem:[#allocation0] sm:$0xff] }
  0x12   :  { %73 = vst [vmem:[#allocation2] sm:$0xff] %v72_v5 }
  0x13 LB: > { %vm95_vm0 = vcmp.lt.s32.totalorder %v552_v3, 4  ;;  %v562_v8 = vstv %s524_s14  ;;  %s136_s0 = ssub.s32 128, %s524_s14  ;;  %v142_v38 = vand.u32 127, %v75_v1  ;;  %v145_v40 = vld [vmem:[#allocation4] ss:$0 sm:$0xff]  ;;  %s148_s15 = scalar_lea.vmem [#allocation2], %s524_s14  ;;  %s524_s14 = sphi %s555_s14, %s85_s14  }
  0x14   : > { %vm94_vm1 = vcmp.ge.s32.totalorder %v552_v3, %v562_v8  ;;  %s154_s17 = scalar_lea.vmem [#allocation9], %s524_s14  ;;  %vm174_vm15 = vcmp.gt.s32.totalorder %v552_v3, %v562_v8  ;;  %s85_s14 = sadd.s32 1, %s524_s14  }
  0x15   : > { %vm96_vm3 = vmand %vm94_vm1, %vm95_vm0  ;;  %vm166_vm12 = vcmp.gt.s32.totalorder %v142_v38, %v562_v8  ;;  %vm143_vm13 = vcmp.eq.s32.totalorder %v142_v38, %v562_v8  ;;  %v156_v42 = vld [vmem:[%s154_s17] ss:$0 sm:$0xff]  ;;  %p82_p0 = scmp.ge.s32.totalorder %s85_s14, 4  }
  0x16   : > { %vm178_vm1 = vmand %vm174_vm15, %vm143_vm13  ;;  %s527_s20 = smov (%p82_p0), [#allocation5]  }
  0x17   :  { %s319_s21 = sshll.u32 (%p82_p0), %s527_s20, 4  ;;  %s320_s21 = int_to_ptr.vmem [resolvable:$true] %s319_s21 }
  0x18   :  { %s494_s24 = scalar_lea.vmem (%p82_p0), %s320_s21, 16  ;;  %s498_s25 = scalar_lea.vmem (%p82_p0), %s320_s21, 32 }
  0x19   : > { %v90_v6 = vld [vmem:[#allocation2] sm:$0xff]  ;;  %v150_v41 = vld [vmem:[%s148_s15] ss:$0 sm:$0xff]  ;;  %p495_p1 = scmp.ne.s32.totalorder (%p82_p0), %s320_s21, %s494_s24  ;;  %p499_p2 = scmp.lt.s32.totalorder (%p82_p0), %s320_s21, %s320_s21 }
  0x1a   : > { %v91_v7 = vand.u32 2147483647, %v90_v6  ;;  %p500_p3 = scmp.lt.s32.totalorder (%p82_p0), %s498_s25, %s494_s24 }
  0x1c   : > { %vm473_vm2 = vcmp.gt.f32.partialorder %v91_v7, -inf  ;;  %p501_p4 = por (%p82_p0), %p500_p3, %p499_p2 }
  0x1d   : > { %vm98_vm4 = vmand %vm96_vm3, %vm473_vm2 }
  0x1e   : > { %v99_v9 = vsel %vm98_vm4, %v552_v3, %v562_v8  ;;  %v100_v10 = vsel %vm98_vm4, %v91_v7, -inf  ;;  %p502_p5 = pnand (%p82_p0), %p501_p4, %p495_p1 }
  0x1f   : > { %v101_v11 = vrot.slane %v100_v10, 1  ;;  %v102_v12 = vrot.slane %v99_v9, 1 }
  0x21   : > { %vm103_vm5 = vcmp.ge.f32.partialorder %v101_v11, %v100_v10  ;;  %v106_v13 = vrot.slane %v101_v11, 1  ;;  %v107_v14 = vrot.slane %v102_v12, 1 }
  0x22   : > { %v104_v15 = vsel %vm103_vm5, %v101_v11, %v100_v10  ;;  %v105_v16 = vsel %vm103_vm5, %v102_v12, %v99_v9 }
  0x23   : > { %vm108_vm6 = vcmp.ge.f32.partialorder %v106_v13, %v104_v15  ;;  %v111_v17 = vrot.slane %v106_v13, 1  ;;  %v112_v18 = vrot.slane %v107_v14, 1 }
  0x24   : > { %v109_v19 = vsel %vm108_vm6, %v106_v13, %v104_v15  ;;  %v110_v20 = vsel %vm108_vm6, %v107_v14, %v105_v16 }
  0x25   : > { %vm113_vm7 = vcmp.ge.f32.partialorder %v111_v17, %v109_v19  ;;  %v116_v21 = vrot.slane %v111_v17, 1  ;;  %v117_v22 = vrot.slane %v112_v18, 1 }
  0x26   : > { %v114_v23 = vsel %vm113_vm7, %v111_v17, %v109_v19  ;;  %v115_v24 = vsel %vm113_vm7, %v112_v18, %v110_v20 }
  0x27   : > { %vm118_vm8 = vcmp.ge.f32.partialorder %v116_v21, %v114_v23  ;;  %v121_v25 = vrot.slane %v116_v21, 1  ;;  %v122_v26 = vrot.slane %v117_v22, 1 }
  0x28   : > { %v119_v27 = vsel %vm118_vm8, %v116_v21, %v114_v23  ;;  %v120_v28 = vsel %vm118_vm8, %v117_v22, %v115_v24 }
  0x29   : > { %vm123_vm9 = vcmp.ge.f32.partialorder %v121_v25, %v119_v27  ;;  %v126_v29 = vrot.slane %v121_v25, 1  ;;  %v127_v30 = vrot.slane %v122_v26, 1 }
  0x2a   : > { %v124_v31 = vsel %vm123_vm9, %v121_v25, %v119_v27  ;;  %v125_v32 = vsel %vm123_vm9, %v122_v26, %v120_v28 }
  0x2b   : > { %vm128_vm10 = vcmp.ge.f32.partialorder %v126_v29, %v124_v31  ;;  %v131_v33 = vrot.slane %v126_v29, 1  ;;  %v132_v34 = vrot.slane %v127_v30, 1 }
  0x2c   : > { %v129_v35 = vsel %vm128_vm10, %v126_v29, %v124_v31  ;;  %v130_v36 = vsel %vm128_vm10, %v127_v30, %v125_v32 }
  0x2d   : > { %vm133_vm11 = vcmp.ge.f32.partialorder %v131_v33, %v129_v35 }
  0x2e   : > { %v135_v37 = vsel %vm133_vm11, %v132_v34, %v130_v36 }
  0x2f   : > { %137 = vrot.lane.b32.xlu0 %v135_v37, %s136_s0 }
  0xa1   : > { %v138_v39 = vpop.permute.xlu0 %137 }
  0xa2   : > { %480 = vpush %v138_v39 }
  0xd3   : > { %s481_s16 = spop %480 }
  0xd4   : > { %v144_v43 = vstv %s481_s16  ;;  %s149_s18 = scalar_lea.vmem [#allocation2], %s481_s16  ;;  %s155_s19 = scalar_lea.vmem [#allocation9], %s481_s16 }
  0xd5   : > { %v151_v44 = vld [vmem:[%s149_s18] ss:$0 sm:$0xff]  ;;  %v146_v46 = vsel %vm143_vm13, %v144_v43, %v145_v40 }
  0xd6   : > { %v157_v45 = vld [vmem:[%s155_s19] ss:$0 sm:$0xff]  ;;  %152 = vst [vmem:[%s149_s18] sm:$0x1] %v150_v41  ;;  %vm160_vm14 = vcmp.ne.f32.partialorder %v151_v44, 0.0  ;;  %147 = vst [vmem:[#allocation4] sm:$0x1] %v146_v46 }
  0xd7   : > { %158 = vst [vmem:[%s155_s19] sm:$0x1] %v156_v42  ;;  %153 = vst [vmem:[%s148_s15] sm:$0x1] %v151_v44  ;;  %v167_v53 = vsel %vm166_vm12, %v151_v44, 0.0 }
  0xd8   : > { %159 = vst [vmem:[%s154_s17] sm:$0x1] %v157_v45  ;;  %vm161_vm0 = vmand %vm143_vm13, %vm160_vm14 }
  0xd9   : > { %v162_v47 = vsel %vm161_vm0, %v151_v44, 1.0 }
  0xda   : > { %v175_v48 = vsel %vm174_vm15, %v162_v47, 1.0 }
  0xdb   : > { %492 = vrcp.f32 %v175_v48 }
  0xdd   :  { %v243_v59 = vld [vmem:[#allocation4] sm:$0x1] (%p82_p0) }
  0xde   : > { %v171_v50 = vld [vmem:[#allocation2] sm:$0xff]  ;;  %245 = vst [vmem:[#allocation5] sm:$0x1] (%p82_p0), %v243_v59 }
  0xdf   :  { %v185_v57 = vld [vmem:[#allocation9] sm:$0xff] (%p82_p0) }
  0xe5   : > { %v493_v49 = vpop.eup %492 }
  0xe6   : > { %v177_v51 = vmul.f32 %v493_v49, %v171_v50 }
  0xe8   : > { %v179_v52 = vsel %vm178_vm1, %v177_v51, 0.0 }
  0xe9   : > { %180 = vadd.xlane.f32.xlu0 %v179_v52 }
 0x116   :  { %201 = vxpose.xlu0.b32.start.end [1/1] (short) (narrow) (%p82_p0), %v185_v57, 8 }
 0x175   :  { %84 = sbr.rel (!%p82_p0) target bundleno = 19 (0x13), region = 163 }
 0x176   : > { %v181_v54 = vpop.xlane.xlu0 %180 }
 0x177   : > { %v182_v55 = vmul.f32 %v181_v54, %v167_v53 }
 0x179   : > { %v183_v56 = vsub.f32 %v177_v51, %v182_v55 }
 0x17b   : > { %184 = vst [vmem:[#allocation2] sm:$0xff] %v183_v56 }
 0x182   :  { %v237_v58 = vld [vmem:[#allocation2] sm:$0xf] }
 0x183   :  { %239 = vst [vmem:[#allocation3] sm:$0xf] %v237_v58 }
 0x18a   :  { %v312_v60 = vld [vmem:[#allocation3] sm:$0xf] }
 0x18b   :  { %313 = vst [vmem:[%s606_s1] sm:$0xf] %v312_v60 }
 0x18c   :  { %505 = shalt.err (!%p502_p5)
}
 0x18d   :  { %s506_s28 = scalar_lea.hbm %s607_s2, 16 }
 0x18e   :  { %p507_p6 = scmp.ne.s32.totalorder %s607_s2, %s506_s28  ;;  %p510_p7 = scmp.lt.u32.totalorder %s506_s28, %s607_s2 }
 0x190   :  { %p512_p8 = pnand %p510_p7, %p507_p6 }
 0x192   :  { %515 = shalt.err (!%p512_p8)
}
 0x193   :  { %322 = dma.vmem_to_hbm [thread:$0]  %s320_s21, 16, %s607_s2, [#allocation6]  }
 0x196   :  { %v217_v61 = vpop.trf.xlu0 }
 0x197   :  { %233 = vst [vmem:[#allocation7] sm:$0x1] %v217_v61 }
 0x19e   :  { %v249_v62 = vld [vmem:[#allocation7] sm:$0x1] }
 0x19f   :  { %251 = vst [vmem:[#allocation8] sm:$0x1] %v249_v62 }
 0x1a6   :  { %v385_v63 = vld [vmem:[#allocation8] sm:$0x1] }
 0x1a7   :  { %386 = vst [vmem:[%s608_s3] sm:$0x1] %v385_v63 }
 0x1a8   :  { %520 = dma.done.wait [#allocation6], 16  }
 0x1a9   :  { %521 = vsyncadd [#allocation6], 4294967280 }
 0x1aa   :  { %392 = vsyncpa [#allocation6], 1 }

// kernel: custom-call.12
= control target key start
LH: loop header
LB: loop body
LE: loop exit
PB: predicated region body
PF: predicated region fallthrough
CT: control target
= control target key end

     0   :  { %v37_v1 = vlaneseq  ;;  %v147_v11 = vmov -1.0   ;;  %s164_s0 = inlined_call_operand.vmem [shape: f32[1,4,4], index: 0, kind: input, shape index: {}]   ;;  %s165_s1 = inlined_call_operand.vmem [shape: f32[1,4,4], index: 1, kind: output, shape index: {}]  }
   0x1   :  { %v17_v0 = vld [vmem:[%s164_s0] sm:$0xf] }
   0x2   :  { %18 = vst [vmem:[#allocation1] sm:$0xf] %v17_v0  ;;  %v38_v3 = vand.u32 127, %v37_v1  ;;  %v41_v4 = vshrl.u32 %v37_v1, 7 }
   0x4   :  { %vm39_vm0 = vcmp.lt.s32.totalorder %v38_v3, 4  ;;  %vm48_vm1 = vcmp.le.s32.totalorder %v41_v4, %v38_v3  ;;  %vm43_vm2 = vcmp.eq.s32.totalorder %v41_v4, %v38_v3  ;;  %vm62_vm4 = vcmp.eq.s32.totalorder %v38_v3, 3 }
   0x5   :  { %vm49_vm3 = vmand %vm48_vm1, %vm39_vm0  ;;  %vm59_vm5 = vcmp.eq.s32.totalorder %v38_v3, %v41_v4  ;;  %v63_v12 = vsel %vm62_vm4, 1.0, %v147_v11  ;;  %vm70_vm6 = vcmp.eq.s32.totalorder %v38_v3, 2  ;;  %vm80_vm7 = vcmp.eq.s32.totalorder %v38_v3, 1 }
   0x6   :  { %v64_v13 = vsel %vm59_vm5, %v63_v12, 0.0  ;;  %vm89_vm8 = vcmp.eq.s32.totalorder %v38_v3, 0 }
   0x9   :  { %v35_v2 = vld [vmem:[#allocation1] sm:$0xf] }
   0xa   :  { %36 = vst [vmem:[#allocation0] sm:$0xf] %v35_v2 }
  0x11   :  { %v44_v5 = vld [vmem:[#allocation0] sm:$0xff] }
  0x12   :  { %v45_v6 = vsel %vm43_vm2, %v44_v5, 0.0  ;;  %v50_v7 = vsel %vm49_vm3, %v44_v5, 0.0 }
  0x13   :  { %46 = vadd.xlane.f32.xlu0 %v45_v6 }
  0xa0   :  { %v47_v8 = vpop.xlane.xlu0 %46 }
  0xa1   :  { %145 = vrcp.f32 %v47_v8  ;;  %vm96_vm9 = vweird.f32 %v47_v8 }
  0xab   :  { %v146_v9 = vpop.eup %145 }
  0xac   :  { %v52_v10 = vmul.f32 %v146_v9, %v50_v7 }
  0xae   :  { %53 = vst [vmem:[#allocation4] sm:$0xff] %v52_v10 }
  0xb5   :  { %v66_v14 = vld [vmem:[#allocation4 + $0x2] ss:$0 sm:$0xff]  ;;  %v76_v17 = vld [vmem:[#allocation4 + $0x1] ss:$0 sm:$0xff]  ;;  %v85_v22 = vld [vmem:[#allocation4] ss:$0 sm:$0xff] }
  0xb6   :  { %v67_v15 = vxor.u32 2147483648, %v66_v14  ;;  %v77_v19 = vxor.u32 2147483648, %v76_v17  ;;  %v86_v24 = vxor.u32 2147483648, %v85_v22 }
  0xb8   :  { %v71_v16 = vmul.f32 %v67_v15, %v64_v13 }
  0xba   :  { %72 = vadd.xlane.f32.xlu0 %v71_v16 }
 0x147   :  { %v73_v18 = vpop.xlane.xlu0 %72 }
 0x148   :  { %v74_v20 = vsel %vm70_vm6, %v73_v18, %v64_v13 }
 0x149   :  { %v81_v21 = vmul.f32 %v77_v19, %v74_v20 }
 0x14b   :  { %82 = vadd.xlane.f32.xlu1 %v81_v21 }
 0x1d8   :  { %v83_v23 = vpop.xlane.xlu1 %82 }
 0x1d9   :  { %v84_v25 = vsel %vm80_vm7, %v83_v23, %v74_v20 }
 0x1da   :  { %v90_v26 = vmul.f32 %v86_v24, %v84_v25 }
 0x1dc   :  { %91 = vadd.xlane.f32.xlu1 %v90_v26 }
 0x269   :  { %v92_v27 = vpop.xlane.xlu1 %91 }
 0x26a   :  { %v93_v28 = vsel %vm89_vm8, %v92_v27, %v84_v25 }
 0x26b   :  { %v95_v29 = vmul.f32 %v146_v9, %v93_v28 }
 0x26d   :  { %v97_v30 = vsel %vm96_vm9, %v93_v28, %v95_v29 }
 0x26e   :  { %98 = vst [vmem:[#allocation2] sm:$0xff] %v97_v30 }
 0x275   :  { %v102_v31 = vld [vmem:[#allocation2] sm:$0xf] }
 0x276   :  { %104 = vst [vmem:[#allocation3] sm:$0xf] %v102_v31 }
 0x27d   :  { %v120_v32 = vld [vmem:[#allocation3] sm:$0xf] }
 0x27e   :  { %121 = vst [vmem:[%s165_s1] sm:$0xf] %v120_v32 }

// kernel: custom-call.13
= control target key start
LH: loop header
LB: loop body
LE: loop exit
PB: predicated region body
PF: predicated region fallthrough
CT: control target
= control target key end

     0   :  { %v37_v1 = vlaneseq  ;;  %v148_v11 = vmov -1.0   ;;  %s165_s0 = inlined_call_operand.vmem [shape: f32[1,4,4], index: 0, kind: input, shape index: {}]   ;;  %s166_s1 = inlined_call_operand.vmem [shape: f32[1,4,4], index: 1, kind: output, shape index: {}]  }
   0x1   :  { %v17_v0 = vld [vmem:[%s165_s0] sm:$0xf] }
   0x2   :  { %18 = vst [vmem:[#allocation1] sm:$0xf] %v17_v0  ;;  %v38_v3 = vand.u32 127, %v37_v1  ;;  %v41_v4 = vshrl.u32 %v37_v1, 7 }
   0x4   :  { %vm39_vm0 = vcmp.lt.s32.totalorder %v38_v3, 4  ;;  %vm48_vm1 = vcmp.ge.s32.totalorder %v41_v4, %v38_v3  ;;  %vm43_vm2 = vcmp.eq.s32.totalorder %v41_v4, %v38_v3  ;;  %vm62_vm4 = vcmp.eq.s32.totalorder %v38_v3, 0 }
   0x5   :  { %vm49_vm3 = vmand %vm48_vm1, %vm39_vm0  ;;  %vm59_vm5 = vcmp.eq.s32.totalorder %v38_v3, %v41_v4  ;;  %v63_v12 = vsel %vm62_vm4, 1.0, %v148_v11  ;;  %vm70_vm6 = vcmp.eq.s32.totalorder %v38_v3, 1  ;;  %vm80_vm7 = vcmp.eq.s32.totalorder %v38_v3, 2 }
   0x6   :  { %v64_v13 = vsel %vm59_vm5, %v63_v12, 0.0  ;;  %vm90_vm8 = vcmp.eq.s32.totalorder %v38_v3, 3 }
   0x9   :  { %v35_v2 = vld [vmem:[#allocation1] sm:$0xf] }
   0xa   :  { %36 = vst [vmem:[#allocation0] sm:$0xf] %v35_v2 }
  0x11   :  { %v44_v5 = vld [vmem:[#allocation0] sm:$0xff] }
  0x12   :  { %v45_v6 = vsel %vm43_vm2, %v44_v5, 0.0  ;;  %v50_v7 = vsel %vm49_vm3, %v44_v5, 0.0 }
  0x13   :  { %46 = vadd.xlane.f32.xlu0 %v45_v6 }
  0xa0   :  { %v47_v8 = vpop.xlane.xlu0 %46 }
  0xa1   :  { %146 = vrcp.f32 %v47_v8  ;;  %vm97_vm9 = vweird.f32 %v47_v8 }
  0xab   :  { %v147_v9 = vpop.eup %146 }
  0xac   :  { %v52_v10 = vmul.f32 %v147_v9, %v50_v7 }
  0xae   :  { %53 = vst [vmem:[#allocation4] sm:$0xff] %v52_v10 }
  0xb5   :  { %v66_v14 = vld [vmem:[#allocation4 + $0x1] ss:$0 sm:$0xff]  ;;  %v76_v17 = vld [vmem:[#allocation4 + $0x2] ss:$0 sm:$0xff]  ;;  %v86_v22 = vld [vmem:[#allocation4 + $0x3] ss:$0 sm:$0xff] }
  0xb6   :  { %v67_v15 = vxor.u32 2147483648, %v66_v14  ;;  %v77_v19 = vxor.u32 2147483648, %v76_v17  ;;  %v87_v24 = vxor.u32 2147483648, %v86_v22 }
  0xb8   :  { %v71_v16 = vmul.f32 %v67_v15, %v64_v13 }
  0xba   :  { %72 = vadd.xlane.f32.xlu0 %v71_v16 }
 0x147   :  { %v73_v18 = vpop.xlane.xlu0 %72 }
 0x148   :  { %v74_v20 = vsel %vm70_vm6, %v73_v18, %v64_v13 }
 0x149   :  { %v81_v21 = vmul.f32 %v77_v19, %v74_v20 }
 0x14b   :  { %82 = vadd.xlane.f32.xlu1 %v81_v21 }
 0x1d8   :  { %v83_v23 = vpop.xlane.xlu1 %82 }
 0x1d9   :  { %v84_v25 = vsel %vm80_vm7, %v83_v23, %v74_v20 }
 0x1da   :  { %v91_v26 = vmul.f32 %v87_v24, %v84_v25 }
 0x1dc   :  { %92 = vadd.xlane.f32.xlu1 %v91_v26 }
 0x269   :  { %v93_v27 = vpop.xlane.xlu1 %92 }
 0x26a   :  { %v94_v28 = vsel %vm90_vm8, %v93_v27, %v84_v25 }
 0x26b   :  { %v96_v29 = vmul.f32 %v147_v9, %v94_v28 }
 0x26d   :  { %v98_v30 = vsel %vm97_vm9, %v94_v28, %v96_v29 }
 0x26e   :  { %99 = vst [vmem:[#allocation2] sm:$0xff] %v98_v30 }
 0x275   :  { %v103_v31 = vld [vmem:[#allocation2] sm:$0xf] }
 0x276   :  { %105 = vst [vmem:[#allocation3] sm:$0xf] %v103_v31 }
 0x27d   :  { %v121_v32 = vld [vmem:[#allocation3] sm:$0xf] }
 0x27e   :  { %122 = vst [vmem:[%s166_s1] sm:$0xf] %v121_v32 }

// kernel: branch_1_fun.1
= control target key start
LH: loop header
LB: loop body
LE: loop exit
PB: predicated region body
PF: predicated region fallthrough
CT: control target
= control target key end

     0   :  { %s4429_s9 = smov 0   ;;  %s4431_s10 = smov 0   ;;  %s8684_s0 = inlined_call_operand.vmem [shape: f32[3,2048], index: 0, kind: input, shape index: {}]   ;;  %s8685_s1 = inlined_call_operand.vmem [shape: bf16[8,2048], index: 1, kind: input, shape index: {}]   ;;  %s8686_s2 = inlined_call_operand.vmem [shape: f32[8,2048], index: 2, kind: output, shape index: {}]  }
   0x1   :  { %s4433_s11 = smov 0   ;;  %s4435_s12 = smov 0  }
   0x2   :  { %s4437_s13 = smov 0  }
   0x3 LB: > { %s24_s14 = sadd.s32 1, %s4402_s11  ;;  %s27_s15 = sadd.s32 1, %s4406_s12  ;;  %s4410_s13 = sphi %s4437_s13, %s12_s13   ;;  %s4406_s12 = sphi %s4435_s12, %s9406_s12   ;;  %s4402_s11 = sphi %s4433_s11, %s9405_s11   ;;  %s4398_s10 = sphi %s4431_s10, %s9404_s10   ;;  %s4394_s9 = sphi %s4429_s9, %s9403_s9  }
   0x4   : > { %p25_p0 = scmp.ge.s32.totalorder %s24_s14, 2  ;;  %p4298_p1 = scmp.ge.s32.totalorder %s4410_s13, 1 }
   0x5   : > { %p151_p2 = scmp.lt.s32.totalorder %s4410_s13, 5 }
   0x6   : > { %s9408_s14 = smov (%p25_p0, %s24_s14), 0  ;;  %s9410_s15 = smov (!%p25_p0, %s27_s15), %s4406_s12 }
   0x7   : > { %p152_p3 = pnand %p4298_p1, %p151_p2  ;;  %p29_p4 = scmp.ge.s32.totalorder %s9410_s15, 2 }
   0x9   : > { %s9412_s15 = smov (%p29_p4, %s9410_s15), 0  ;;  %155 = sbr.rel (%p152_p3) target bundleno = 899 (0x383), region = 28 }
  0x10   : > { %s4299_s16 = sshll.u32 %s4398_s10, 3  ;;  %s4301_s17 = sshll.u32 %s4394_s9, 3 }
  0x11   : > { %p187_p5 = scmp.lt.s32.totalorder %s4299_s16, 15  ;;  %p195_p6 = scmp.lt.s32.totalorder %s4301_s17, 15 }
  0x12   : > { %p4305_p7 = scmp.ne.s32.totalorder %s4394_s9, 0 }
  0x13   : > { %s9414_s16 = smov (!%p187_p5, %s4299_s16), 15  ;;  %s9416_s17 = smov (!%p195_p6, %s4301_s17), 15 }
  0x14   : > { %s4300_s18 = sshll.u32 %s9414_s16, 2  ;;  %s4304_s19 = sshll.u32 %s9414_s16, 3  ;;  %v4412_v0 = vmov (!%p4305_p7), 0.0  }
  0x15   : > { %s4465_s22 = scalar_lea.vmem %s8684_s0, %s4300_s18  ;;  %s4302_s23 = sshll.u32 %s9416_s17, 2 }
  0x16   : > { %s4470_s26 = scalar_lea.vmem %s8685_s1, %s4302_s23  ;;  %s4475_s29 = scalar_lea.vmem %s8686_s2, %s4304_s19 }
  0x17   : > { %215 = sbr.rel (%p4305_p7) target bundleno = 30 (0x1e), region = 32  ;;  %216 = vst [vmem:[%s4475_s29] sm:$0xff] (!%p4305_p7), %v4412_v0  ;;  %217 = vst [vmem:[%s4475_s29 + $0x8] sm:$0xff] (!%p4305_p7), %v4412_v0 }
  0x18   : > { %218 = vst [vmem:[%s4475_s29 + $0x10] sm:$0xff] (!%p4305_p7), %v4412_v0  ;;  %219 = vst [vmem:[%s4475_s29 + $0x18] sm:$0xff] (!%p4305_p7), %v4412_v0 }
  0x19   : > { %220 = vst [vmem:[%s4475_s29 + $0x20] sm:$0xff] (!%p4305_p7), %v4412_v0  ;;  %221 = vst [vmem:[%s4475_s29 + $0x28] sm:$0xff] (!%p4305_p7), %v4412_v0 }
  0x1a   : > { %222 = vst [vmem:[%s4475_s29 + $0x30] sm:$0xff] (!%p4305_p7), %v4412_v0  ;;  %223 = vst [vmem:[%s4475_s29 + $0x38] sm:$0xff] (!%p4305_p7), %v4412_v0 }
  0x1e PF: > { %v230_v1 = vlaneseq  ;;  %s4308_s30 = sshll.u32 %s4394_s9, 2  ;;  %v4307_v4 = vld [vmem:[%s4465_s22 + $0x2] ss:$4 sm:$0xff]  ;;  %v4413_v5 = vmov 1966171168  }
  0x1f   : > { %v232_v3 = vstv %s4308_s30  ;;  %v4490_v6 = vunpack.c.l.s4 %v4413_v5  ;;  %v4306_v23 = vld [vmem:[%s4465_s22 + $0x1] ss:$4 sm:$0xff]  ;;  %v224_v5 = vld [vmem:[%s4465_s22] ss:$4 sm:$0xff] }
  0x20   : > { %v4487_v2 = vshrl.u32 %v230_v1, 7 }
  0x22   : > { %v233_v7 = vadd.s32 %v232_v3, %v4487_v2  ;;  %v235_v8 = vadd.s32 8, %v4487_v2  ;;  %v4495_v9 = vcvt.s32.f32 %v4487_v2  ;;  %v4498_v10 = vsub.s32 0, %v4487_v2 }
  0x23   : > { %v4501_v11 = vsub.s32 1, %v4487_v2  ;;  %v4504_v12 = vsub.s32 2, %v4487_v2  ;;  %v4507_v13 = vsub.s32 3, %v4487_v2  ;;  %v4510_v14 = vsub.s32 4, %v4487_v2 }
  0x24   : > { %9023 = vst [vmem:[#allocation2_spill] sm:$0xff] %v4495_v9  ;;  %v234_v15 = vcvt.s32.f32 %v233_v7  ;;  %v4512_v16 = vcvt.s32.f32 %v235_v8  ;;  %v242_v17 = vrot.slane %v4307_v4, %v4498_v10  ;;  %v4516_v18 = vsub.s32 5, %v4487_v2 }
  0x25   : > { %9024 = vst [vmem:[#allocation3_spill] sm:$0xff] %v4504_v12  ;;  %9025 = vst [vmem:[#allocation4_spill] sm:$0xff] %v4507_v13  ;;  %v246_v19 = vrot.slane %v4307_v4, %v4501_v11  ;;  %v250_v20 = vrot.slane %v4307_v4, %v4504_v12  ;;  %v254_v21 = vrot.slane %v4307_v4, %v4507_v13  ;;  %v4525_v25 = vsub.s32 6, %v4487_v2 }
  0x26   : > { %9026 = vst [vmem:[#allocation5_spill] sm:$0xff] %v4510_v14  ;;  %9027 = vst [vmem:[#allocation6_spill] sm:$0xff] %v4512_v16  ;;  %v258_v22 = vrot.slane %v4307_v4, %v4510_v14  ;;  %v262_v24 = vrot.slane %v4307_v4, %v4516_v18  ;;  %v4528_v26 = vsub.s32 7, %v4487_v2  ;;  %v279_v27 = vsub.f32 %v234_v15, %v242_v17 }
  0x27   : > { %9028 = vst [vmem:[#allocation7_spill] sm:$0xff] %v4516_v18  ;;  %9029 = vst [vmem:[#allocation8_spill] sm:$0xff] %v4525_v25  ;;  %v280_v28 = vsub.f32 %v234_v15, %v246_v19  ;;  %v281_v29 = vsub.f32 %v234_v15, %v250_v20  ;;  %v282_v30 = vsub.f32 %v234_v15, %v254_v21 }
  0x28   : > { %9030 = vst [vmem:[#allocation9_spill] sm:$0xff] %v4528_v26  ;;  %v283_v31 = vsub.f32 %v234_v15, %v258_v22  ;;  %v266_v32 = vrot.slane %v4307_v4, %v4525_v25  ;;  %v270_v33 = vrot.slane %v4307_v4, %v4528_v26  ;;  %v284_v34 = vsub.f32 %v234_v15, %v262_v24 }
  0x29   : > { %v287_v35 = vand.u32 2147483647, %v279_v27  ;;  %v288_v36 = vand.u32 2147483647, %v280_v28  ;;  %v289_v37 = vand.u32 2147483647, %v281_v29  ;;  %v4533_v39 = vrot.slane %v4306_v23, %v4498_v10 }
  0x2a   : > { %v290_v38 = vand.u32 2147483647, %v282_v30  ;;  %v285_v40 = vsub.f32 %v234_v15, %v266_v32  ;;  %v286_v41 = vsub.f32 %v234_v15, %v270_v33  ;;  %v291_v42 = vand.u32 2147483647, %v283_v31 }
  0x2b   : > { %v292_v43 = vand.u32 2147483647, %v284_v34  ;;  %v4535_v44 = vsub.f32 1.0, %v287_v35  ;;  %v4537_v45 = vsub.f32 1.0, %v288_v36  ;;  %v4539_v46 = vsub.f32 1.0, %v289_v37 }
  0x2c   : > { %v4541_v47 = vsub.f32 1.0, %v290_v38  ;;  %v293_v48 = vand.u32 2147483647, %v285_v40  ;;  %v294_v49 = vand.u32 2147483647, %v286_v41  ;;  %v4543_v50 = vsub.f32 1.0, %v291_v42 }
  0x2d   : > { %v4545_v51 = vsub.f32 1.0, %v292_v43  ;;  %v303_v52 = vmax.f32 %v4535_v44, 0.0  ;;  %v304_v53 = vmax.f32 %v4537_v45, 0.0  ;;  %v305_v54 = vmax.f32 %v4539_v46, 0.0 }
  0x2e   : > { %v306_v55 = vmax.f32 %v4541_v47, 0.0  ;;  %v301_v56 = vsub.f32 1.0, %v293_v48  ;;  %v302_v57 = vsub.f32 1.0, %v294_v49  ;;  %v307_v58 = vmax.f32 %v4543_v50, 0.0 }
  0x2f   : > { %v308_v59 = vmax.f32 %v4545_v51, 0.0  ;;  %v4554_v60 = vrot.slane %v4306_v23, %v4501_v11  ;;  %v4557_v61 = vrot.slane %v4306_v23, %v4504_v12  ;;  %v4560_v62 = vrot.slane %v4306_v23, %v4507_v13 }
  0x30   : > { %v4563_v63 = vrot.slane %v4306_v23, %v4510_v14  ;;  %v309_v0 = vmax.f32 %v301_v56, 0.0  ;;  %v310_v1 = vmax.f32 %v302_v57, 0.0  ;;  %v4566_v3 = vrot.slane %v4306_v23, %v4516_v18 }
  0x31   : > { %v4569_v4 = vrot.slane %v4306_v23, %v4525_v25  ;;  %v4573_v7 = vrot.slane %v4306_v23, %v4528_v26  ;;  %v352_v8 = vsub.f32 %v4495_v9, %v4533_v39  ;;  %v353_v15 = vsub.f32 %v4495_v9, %v4554_v60 }
  0x32   : > { %v354_v17 = vsub.f32 %v4495_v9, %v4557_v61  ;;  %v355_v19 = vsub.f32 %v4495_v9, %v4560_v62  ;;  %v356_v20 = vsub.f32 %v4495_v9, %v4563_v63  ;;  %v357_v21 = vsub.f32 %v4495_v9, %v4566_v3 }
  0x33   : > { %v358_v22 = vsub.f32 %v4495_v9, %v4569_v4  ;;  %v359_v23 = vsub.f32 %v4495_v9, %v4573_v7  ;;  %v368_v24 = vand.u32 2147483647, %v352_v8  ;;  %v369_v27 = vand.u32 2147483647, %v353_v15 }
  0x34   : > { %v370_v28 = vand.u32 2147483647, %v354_v17  ;;  %v371_v29 = vand.u32 2147483647, %v355_v19  ;;  %v372_v30 = vand.u32 2147483647, %v356_v20  ;;  %v424_v32 = vrot.slane %v224_v5, %v4501_v11 }
  0x35   : > { %v373_v31 = vand.u32 2147483647, %v357_v21  ;;  %v374_v33 = vand.u32 2147483647, %v358_v22  ;;  %v375_v34 = vand.u32 2147483647, %v359_v23  ;;  %v547_v19 = vunpack.c.0.s8 %v4490_v6 }
  0x36   : > { %v384_v35 = vsub.f32 1.0, %v368_v24  ;;  %v385_v36 = vsub.f32 1.0, %v369_v27  ;;  %v386_v37 = vsub.f32 1.0, %v370_v28  ;;  %v387_v38 = vsub.f32 1.0, %v371_v29 }
  0x37   : > { %v388_v40 = vsub.f32 1.0, %v372_v30  ;;  %v389_v41 = vsub.f32 1.0, %v373_v31  ;;  %v390_v42 = vsub.f32 1.0, %v374_v33  ;;  %v391_v43 = vsub.f32 1.0, %v375_v34 }
  0x38   : > { %v4592_v44 = vmax.f32 %v384_v35, 0.0  ;;  %v4594_v45 = vmax.f32 %v385_v36, 0.0  ;;  %v4596_v46 = vmax.f32 %v386_v37, 0.0  ;;  %v4598_v47 = vmax.f32 %v387_v38, 0.0 }
  0x39   : > { %v4600_v48 = vmax.f32 %v388_v40, 0.0  ;;  %v4602_v49 = vmax.f32 %v389_v41, 0.0  ;;  %v4604_v50 = vmax.f32 %v390_v42, 0.0  ;;  %v4606_v51 = vmax.f32 %v391_v43, 0.0 }
  0x3a   : > { %v458_v56 = vsub.f32 %v4495_v9, %v424_v32  ;;  %v466_v57 = vsub.f32 %v4512_v16, %v424_v32  ;;  %v537_v8 = vcombine.low %v4592_v44, %v4594_v45  ;;  %v539_v15 = vcombine.low %v4596_v46, %v4598_v47 }
  0x3b   : > { %v541_v17 = vcombine.low %v4600_v48, %v4602_v49  ;;  %v543_v22 = vcombine.low %v4604_v50, %v4606_v51  ;;  %v1713_v23 = vcombine.low %v303_v52, %v304_v53  ;;  %v4620_v24 = vsub.s32 %v547_v19, %v4487_v2 }
  0x3c   : > { %v474_v20 = vand.u32 2147483647, %v458_v56  ;;  %v482_v21 = vand.u32 2147483647, %v466_v57  ;;  %v1714_v27 = vcombine.low %v305_v54, %v306_v55  ;;  %v1715_v28 = vcombine.low %v307_v58, %v308_v59 }
  0x3d   : > { %v1716_v29 = vcombine.low %v309_v0, %v310_v1  ;;  %v420_v32 = vrot.slane %v224_v5, %v4498_v10  ;;  %v4626_v6 = vrot.slane %v537_v8, %v4620_v24  ;;  %v4629_v34 = vrot.slane %v539_v15, %v4620_v24 }
  0x3e   : > { %v490_v30 = vsub.f32 1.0, %v474_v20  ;;  %v498_v31 = vsub.f32 1.0, %v482_v21  ;;  %v4632_v52 = vrot.slane %v541_v17, %v4620_v24  ;;  %v4635_v2 = vrot.slane %v543_v22, %v4620_v24 }
  0x3f   : > { %v1723_v55 = vrot.slane %v1713_v23, %v4620_v24  ;;  %v1730_v58 = vrot.slane %v1714_v27, %v4620_v24  ;;  %v601_v59 = vcombine.low %v4626_v6, %v4629_v34  ;;  %v1737_v1 = vrot.slane %v1715_v28, %v4620_v24 }
  0x40   : > { %v4637_v53 = vmax.f32 %v490_v30, 0.0  ;;  %v4639_v54 = vmax.f32 %v498_v31, 0.0  ;;  %v605_v0 = vcombine.low %v4632_v52, %v4635_v2  ;;  %v1744_v5 = vrot.slane %v1716_v29, %v4620_v24 }
  0x41   : > { %v1745_v35 = vcombine.low %v1723_v55, %v1730_v58  ;;  %v1746_v36 = vcombine.high %v1723_v55, %v1730_v58  ;;  %v457_v37 = vsub.f32 %v4495_v9, %v420_v32  ;;  %v465_v38 = vsub.f32 %v4512_v16, %v420_v32 }
  0x42   : > { %v615_v40 = vrot.slane %v601_v59, %v4620_v24  ;;  %v643_v41 = vrot.slane %v605_v0, %v4620_v24  ;;  %v1747_v42 = vcombine.low %v1737_v1, %v1744_v5  ;;  %v1748_v43 = vcombine.high %v1737_v1, %v1744_v5 }
  0x43   : > { %v1755_v56 = vrot.slane %v1745_v35, %v4620_v24  ;;  %v1762_v57 = vrot.slane %v1746_v36, %v4620_v24  ;;  %v473_v8 = vand.u32 2147483647, %v457_v37  ;;  %v481_v15 = vand.u32 2147483647, %v465_v38 }
  0x44   : > { %v4655_v17 = vcombine.low %v615_v40, %v643_v41  ;;  %v1769_v19 = vrot.slane %v1747_v42, %v4620_v24  ;;  %v1776_v20 = vrot.slane %v1748_v43, %v4620_v24  ;;  %v602_v21 = vcombine.high %v4626_v6, %v4629_v34 }
  0x45   : > { %v489_v22 = vsub.f32 1.0, %v473_v8  ;;  %v497_v23 = vsub.f32 1.0, %v481_v15  ;;  %v606_v27 = vcombine.high %v4632_v52, %v4635_v2  ;;  %v4663_v28 = vcombine.high %v615_v40, %v643_v41 }
  0x46   : > { %9031 = vst [vmem:[#allocation10_spill] sm:$0xff] %v4655_v17  ;;  %v816_v29 = vrot.slane %v4655_v17, %v4501_v11  ;;  %v1777_v30 = vcombine.low %v1755_v56, %v1769_v19  ;;  %v1778_v31 = vcombine.high %v1755_v56, %v1769_v19  ;;  %v1779_v32 = vcombine.low %v1762_v57, %v1776_v20 }
  0x47   : > { %9032 = vst [vmem:[#allocation11_spill] sm:$0xff] %v4663_v28  ;;  %v1780_v55 = vcombine.high %v1762_v57, %v1776_v20  ;;  %v4667_v58 = vmax.f32 %v489_v22, 0.0  ;;  %v4669_v59 = vmax.f32 %v497_v23, 0.0  ;;  %v812_v6 = vrot.slane %v4655_v17, %v4498_v10 }
  0x48   : > { %v4674_v34 = vmul.f32 %v816_v29, %v4637_v53  ;;  %v4677_v52 = vmul.f32 %v816_v29, %v4639_v54  ;;  %v4680_v2 = vrot.slane %v1777_v30, %v4498_v10  ;;  %v4683_v0 = vrot.slane %v1777_v30, %v4501_v11 }
  0x49   : > { %v4686_v1 = vrot.slane %v1777_v30, %v4504_v12  ;;  %v4689_v5 = vrot.slane %v1777_v30, %v4507_v13  ;;  %v4692_v35 = vrot.slane %v1777_v30, %v4510_v14  ;;  %v4695_v36 = vrot.slane %v1777_v30, %v4516_v18 }
  0x4a   : > { %v4698_v37 = vrot.slane %v1777_v30, %v4525_v25  ;;  %v4701_v38 = vrot.slane %v1777_v30, %v4528_v26  ;;  %v4704_v40 = vrot.slane %v1779_v32, %v4498_v10  ;;  %v4707_v41 = vrot.slane %v1779_v32, %v4501_v11 }
  0x4b   : > { %9033 = vst [vmem:[#allocation12_spill] sm:$0xff] %v4686_v1  ;;  %9034 = vst [vmem:[#allocation13_spill] sm:$0xff] %v4689_v5  ;;  %v4710_v42 = vrot.slane %v1779_v32, %v4504_v12  ;;  %v4713_v43 = vrot.slane %v1779_v32, %v4507_v13  ;;  %v4716_v56 = vrot.slane %v1779_v32, %v4510_v14 }
  0x4c   : > { %9035 = vst [vmem:[#allocation14_spill] sm:$0xff] %v4692_v35  ;;  %9036 = vst [vmem:[#allocation15_spill] sm:$0xff] %v4695_v36  ;;  %v4719_v57 = vrot.slane %v1779_v32, %v4516_v18  ;;  %v4722_v8 = vrot.slane %v1779_v32, %v4525_v25  ;;  %v4725_v15 = vrot.slane %v1779_v32, %v4528_v26 }
  0x4d   : > { %9037 = vst [vmem:[#allocation16_spill] sm:$0xff] %v4698_v37  ;;  %9038 = vst [vmem:[#allocation17_spill] sm:$0xff] %v4701_v38  ;;  %v4728_v19 = vrot.slane %v1778_v31, %v4498_v10  ;;  %v4731_v20 = vrot.slane %v1778_v31, %v4501_v11  ;;  %v4734_v22 = vrot.slane %v1778_v31, %v4504_v12 }
  0x4e   : > { %9039 = vst [vmem:[#allocation18_spill] sm:$0xff] %v4710_v42  ;;  %9040 = vst [vmem:[#allocation19_spill] sm:$0xff] %v4713_v43  ;;  %v4737_v23 = vrot.slane %v1778_v31, %v4507_v13  ;;  %v4740_v29 = vrot.slane %v1778_v31, %v4510_v14  ;;  %v4743_v30 = vrot.slane %v1778_v31, %v4516_v18 }
  0x4f   : > { %9041 = vst [vmem:[#allocation20_spill] sm:$0xff] %v4716_v56  ;;  %9042 = vst [vmem:[#allocation21_spill] sm:$0xff] %v4719_v57  ;;  %v4746_v32 = vrot.slane %v1778_v31, %v4525_v25  ;;  %v4749_v33 = vrot.slane %v1778_v31, %v4528_v26  ;;  %v4755_v37 = vrot.slane %v1780_v55, %v4501_v11 }
  0x50   : > { %9043 = vst [vmem:[#allocation22_spill] sm:$0xff] %v4722_v8  ;;  %9044 = vst [vmem:[#allocation23_spill] sm:$0xff] %v4725_v15  ;;  %v4752_v8 = vrot.slane %v1780_v55, %v4498_v10  ;;  %v4758_v15 = vrot.slane %v1780_v55, %v4504_v12  ;;  %v4761_v38 = vrot.slane %v1780_v55, %v4507_v13 }
  0x51   : > { %9045 = vst [vmem:[#allocation24_spill] sm:$0xff] %v4734_v22  ;;  %9046 = vst [vmem:[#allocation25_spill] sm:$0xff] %v4737_v23  ;;  %v4770_v31 = vrot.slane %v1780_v55, %v4525_v25  ;;  %v1950_v56 = vmul.f32 %v4683_v0, %v4677_v52  ;;  %v2198_v35 = vmul.f32 %v4707_v41, %v4674_v34 }
  0x52   : > { %9047 = vst [vmem:[#allocation26_spill] sm:$0xff] %v4740_v29  ;;  %9048 = vst [vmem:[#allocation27_spill] sm:$0xff] %v4743_v30  ;;  %v4764_v29 = vrot.slane %v1780_v55, %v4510_v14  ;;  %v1942_v30 = vmul.f32 %v4683_v0, %v4674_v34  ;;  %v657_v25 = vrot.slane %v606_v27, %v4620_v24 }
  0x53   : > { %9049 = vst [vmem:[#allocation28_spill] sm:$0xff] %v4746_v32  ;;  %9050 = vst [vmem:[#allocation29_spill] sm:$0xff] %v4749_v33  ;;  %v4767_v32 = vrot.slane %v1780_v55, %v4516_v18  ;;  %v4773_v33 = vrot.slane %v1780_v55, %v4528_v26  ;;  %v880_v26 = vrot.slane %v4663_v28, %v4501_v11 }
  0x54   : > { %9051 = vst [vmem:[#allocation30_spill] sm:$0xff] %v4758_v15  ;;  %9052 = vst [vmem:[#allocation31_spill] sm:$0xff] %v4761_v38  ;;  %v2966_v55 = vpack.c.bf16 %v1950_v56, %v1942_v30 }
  0x55   : > { %9053 = vst [vmem:[#allocation32_spill] sm:$0xff] %v4764_v29  ;;  %9054 = vst [vmem:[#allocation33_spill] sm:$0xff] %v4767_v32  ;;  %v2206_v29 = vmul.f32 %v4707_v41, %v4677_v52  ;;  %v4784_v32 = vmul.f32 %v812_v6, %v4667_v58  ;;  %v4804_v27 = vmul.f32 %v880_v26, %v4637_v53 }
  0x56   : > { %9055 = vst [vmem:[#allocation34_spill] sm:$0xff] %v4770_v31  ;;  %9056 = vst [vmem:[#allocation35_spill] sm:$0xff] %v4773_v33  ;;  %v4787_v31 = vmul.f32 %v812_v6, %v4669_v59  ;;  %v629_v33 = vrot.slane %v602_v21, %v4620_v24  ;;  %3517 = vmatprep.subr.bf16.mxu0 %v2966_v55 }
  0x57   : > { %v3094_v57 = vpack.c.bf16 %v2206_v29, %v2198_v35  ;;  %v1941_v36 = vmul.f32 %v4680_v2, %v4784_v32  ;;  %v2197_v18 = vmul.f32 %v4704_v40, %v4784_v32  ;;  %v4807_v35 = vmul.f32 %v880_v26, %v4639_v54 }
  0x58   : > { %v1949_v14 = vmul.f32 %v4680_v2, %v4787_v31  ;;  %v2205_v6 = vmul.f32 %v4704_v40, %v4787_v31  ;;  %v4801_v21 = vcombine.low %v629_v33, %v657_v25  ;;  %v876_v29 = vrot.slane %v4663_v28, %v4498_v10 }
  0x59   : > { %9058 = vst [vmem:[#allocation37_spill] sm:$0xff] %v4807_v35  ;;  %3558 = vmatprep.subr.bf16.mxu1 %v3094_v57  ;;  %v4811_v30 = vcombine.high %v629_v33, %v657_v25  ;;  %v1974_v26 = vmul.f32 %v4683_v0, %v4804_v27  ;;  %v2230_v25 = vmul.f32 %v4707_v41, %v4804_v27 }
  0x5a   : > { %9057 = vst [vmem:[#allocation36_spill] sm:$0xff] %v4801_v21  ;;  %v2965_v56 = vpack.c.bf16 %v1949_v14, %v1941_v36  ;;  %v3093_v15 = vpack.c.bf16 %v2205_v6, %v2197_v18  ;;  %v848_v22 = vrot.slane %v4801_v21, %v4501_v11  ;;  %v844_v38 = vrot.slane %v4801_v21, %v4498_v10 }
  0x5b   : > { %9059 = vst [vmem:[#allocation38_spill] sm:$0xff] %v4811_v30  ;;  %v1982_v14 = vmul.f32 %v4683_v0, %v4807_v35  ;;  %v2238_v33 = vmul.f32 %v4707_v41, %v4807_v35  ;;  %v4828_v18 = vmul.f32 %v876_v29, %v4667_v58  ;;  %v4843_v42 = vmul.f32 %v876_v29, %v4669_v59 }
  0x5c   : > { %3518 = vmatpush1.bf16.msra.mxu0 %v2965_v56  ;;  %3559 = vmatpush1.bf16.msra.mxu1 %v3093_v15  ;;  %v4831_v36 = vmul.f32 %v848_v22, %v4637_v53  ;;  %v4834_v57 = vmul.f32 %v848_v22, %v4639_v54  ;;  %v4837_v6 = vmul.f32 %v844_v38, %v4667_v58 }
  0x5d   : > { %v4840_v56 = vmul.f32 %v844_v38, %v4669_v59  ;;  %v2982_v55 = vpack.c.bf16 %v1982_v14, %v1974_v26  ;;  %v3110_v23 = vpack.c.bf16 %v2238_v33, %v2230_v25  ;;  %v1973_v15 = vmul.f32 %v4680_v2, %v4828_v18 }
  0x5e   : > { %v1958_v1 = vmul.f32 %v4683_v0, %v4831_v36  ;;  %v1966_v22 = vmul.f32 %v4683_v0, %v4834_v57  ;;  %v2214_v43 = vmul.f32 %v4707_v41, %v4831_v36  ;;  %v2222_v38 = vmul.f32 %v4707_v41, %v4834_v57 }
  0x5f   : > { %v1957_v26 = vmul.f32 %v4680_v2, %v4837_v6  ;;  %v1965_v29 = vmul.f32 %v4680_v2, %v4840_v56  ;;  %v2213_v14 = vmul.f32 %v4704_v40, %v4837_v6  ;;  %v2221_v25 = vmul.f32 %v4704_v40, %v4840_v56 }
  0x60   : > { %v2974_v33 = vpack.c.bf16 %v1966_v22, %v1958_v1  ;;  %v3102_v5 = vpack.c.bf16 %v2222_v38, %v2214_v43  ;;  %v1981_v28 = vmul.f32 %v4680_v2, %v4843_v42  ;;  %v2229_v21 = vmul.f32 %v4704_v40, %v4828_v18 }
  0x61   : > { %v2973_v9 = vpack.c.bf16 %v1965_v29, %v1957_v26  ;;  %v3101_v12 = vpack.c.bf16 %v2221_v25, %v2213_v14  ;;  %v2237_v17 = vmul.f32 %v4704_v40, %v4843_v42  ;;  %v912_v13 = vrot.slane %v4811_v30, %v4501_v11 }
  0x62   : > { %3519 = vmatprep.subr.bf16.mxu0 %v2974_v33  ;;  %3560 = vmatprep.subr.bf16.mxu1 %v3102_v5  ;;  %v2981_v35 = vpack.c.bf16 %v1981_v28, %v1973_v15  ;;  %v908_v1 = vrot.slane %v4811_v30, %v4498_v10  ;;  %v542_v43 = vcombine.high %v4600_v48, %v4602_v49 }
  0x63   : > { %3520 = vmatpush1.bf16.msra.mxu0 %v2973_v9  ;;  %3561 = vmatpush1.bf16.msra.mxu1 %v3101_v12  ;;  %v3109_v22 = vpack.c.bf16 %v2237_v17, %v2229_v21  ;;  %v4876_v38 = vmul.f32 %v912_v13, %v4637_v53  ;;  %v4879_v26 = vmul.f32 %v912_v13, %v4639_v54 }
  0x64   : > { %3521 = vmatprep.subr.bf16.mxu0 %v2982_v55  ;;  %3562 = vmatprep.subr.bf16.mxu1 %v3110_v23  ;;  %v4882_v5 = vmul.f32 %v908_v1, %v4667_v58  ;;  %v4885_v28 = vmul.f32 %v908_v1, %v4669_v59  ;;  %v544_v48 = vcombine.high %v4604_v50, %v4606_v51 }
  0x65   : > { %v1990_v9 = vmul.f32 %v4683_v0, %v4876_v38  ;;  %v1998_v12 = vmul.f32 %v4683_v0, %v4879_v26  ;;  %v2246_v13 = vmul.f32 %v4707_v41, %v4876_v38  ;;  %v2254_v49 = vmul.f32 %v4707_v41, %v4879_v26 }
  0x66   : > { %9060 = vst [vmem:[#allocation39_spill] sm:$0xff] %v4882_v5  ;;  %9061 = vst [vmem:[#allocation40_spill] sm:$0xff] %v4885_v28  ;;  %v1989_v17 = vmul.f32 %v4680_v2, %v4882_v5  ;;  %v1997_v23 = vmul.f32 %v4680_v2, %v4885_v28  ;;  %v2245_v50 = vmul.f32 %v4704_v40, %v4882_v5 }
  0x67   : > { %v2253_v51 = vmul.f32 %v4704_v40, %v4885_v28  ;;  %3522 = vmatpush1.bf16.msra.mxu0 %v2981_v35  ;;  %3563 = vmatpush1.bf16.msra.mxu1 %v3109_v22  ;;  %v2990_v21 = vpack.c.bf16 %v1998_v12, %v1990_v9  ;;  %v3118_v55 = vpack.c.bf16 %v2254_v49, %v2246_v13  ;;  %v4928_v13 = vld [vmem:[%s4470_s26] sm:$0xff] }
  0x68   : > { %v9062_v15 = vcombine.high %v4592_v44, %v4594_v45  ;;  %v2989_v14 = vpack.c.bf16 %v1997_v23, %v1989_v17  ;;  %v9063_v33 = vcombine.high %v4596_v46, %v4598_v47  ;;  %v586_v30 = vrot.slane %v542_v43, %v4620_v24 }
  0x69   : > { %v3117_v25 = vpack.c.bf16 %v2253_v51, %v2245_v50  ;;  %3523 = vmatprep.subr.bf16.mxu0 %v2990_v21  ;;  %3564 = vmatprep.subr.bf16.mxu1 %v3118_v55  ;;  %v600_v35 = vrot.slane %v544_v48, %v4620_v24  ;;  %v360_v22 = vsub.f32 %v4512_v16, %v4533_v39  ;;  %v4943_v50 = vld [vmem:[%s4470_s26 + $0x8] sm:$0xff] }
  0x6a   : > { %v558_v29 = vrot.slane %v9062_v15, %v4620_v24  ;;  %v572_v1 = vrot.slane %v9063_v33, %v4620_v24  ;;  %v361_v44 = vsub.f32 %v4512_v16, %v4554_v60  ;;  %v362_v12 = vsub.f32 %v4512_v16, %v4557_v61 }
  0x6b   : > { %v363_v46 = vsub.f32 %v4512_v16, %v4560_v62  ;;  %3524 = vmatpush1.bf16.msra.mxu0 %v2989_v14  ;;  %3565 = vmatpush1.bf16.msra.mxu1 %v3117_v25  ;;  %v607_v47 = vcombine.low %v586_v30, %v600_v35  ;;  %v608_v43 = vcombine.high %v586_v30, %v600_v35  ;;  %v4925_v39 = vand.u32 2147483647, %v360_v22 }
  0x6c   : > { %v603_v45 = vcombine.low %v558_v29, %v572_v1  ;;  %v604_v9 = vcombine.high %v558_v29, %v572_v1  ;;  %v364_v48 = vsub.f32 %v4512_v16, %v4563_v63  ;;  %v365_v61 = vsub.f32 %v4512_v16, %v4566_v3 }
  0x6d   : > { %v366_v62 = vsub.f32 %v4512_v16, %v4569_v4  ;;  %v650_v17 = vrot.slane %v607_v47, %v4620_v24  ;;  %v664_v30 = vrot.slane %v608_v43, %v4620_v24  ;;  %v367_v63 = vsub.f32 %v4512_v16, %v4573_v7 }
  0x6e   : > { %v622_v60 = vrot.slane %v603_v45, %v4620_v24  ;;  %v636_v49 = vrot.slane %v604_v9, %v4620_v24  ;;  %v4940_v23 = vand.u32 2147483647, %v361_v44  ;;  %v4945_v51 = vand.u32 2147483647, %v362_v12 }
  0x6f   : > { %v4947_v21 = vand.u32 2147483647, %v363_v46  ;;  %v4949_v55 = vand.u32 2147483647, %v364_v48  ;;  %v4953_v3 = vcombine.high %v4928_v13, %v4928_v13  ;;  %v4963_v14 = vand.u32 2147483647, %v365_v61 }
  0x70   : > { %v4955_v4 = vcombine.low %v622_v60, %v650_v17  ;;  %v4957_v15 = vcombine.low %v636_v49, %v664_v30  ;;  %v4959_v29 = vcombine.high %v622_v60, %v650_v17  ;;  %v4961_v7 = vcombine.high %v636_v49, %v664_v30 }
  0x71   : > { %9064 = vst [vmem:[#allocation41_spill] sm:$0xff] %v4953_v3  ;;  %v4965_v25 = vand.u32 2147483647, %v366_v62  ;;  %v4967_v33 = vand.u32 2147483647, %v367_v63  ;;  %3549 = vmatprep.mubr.bf16.mxu0 %v4953_v3  ;;  %v4972_v1 = vcombine.high %v4943_v50, %v4943_v50 }
  0x72   : > { %9065 = vst [vmem:[#allocation42_spill] sm:$0xff] %v4955_v4  ;;  %9066 = vst [vmem:[#allocation43_spill] sm:$0xff] %v4957_v15  ;;  %v944_v35 = vrot.slane %v4955_v4, %v4501_v11  ;;  %v940_v22 = vrot.slane %v4955_v4, %v4498_v10  ;;  %v976_v44 = vrot.slane %v4957_v15, %v4501_v11 }
  0x73   : > { %9067 = vst [vmem:[#allocation44_spill] sm:$0xff] %v4959_v29  ;;  %9068 = vst [vmem:[#allocation45_spill] sm:$0xff] %v4961_v7  ;;  %v972_v45 = vrot.slane %v4957_v15, %v4498_v10  ;;  %v1008_v9 = vrot.slane %v4959_v29, %v4501_v11  ;;  %v1004_v12 = vrot.slane %v4959_v29, %v4498_v10  ;;  %3590 = vmatprep.mubr.bf16.mxu1 %v4972_v1 }
  0x74   : > { %9069 = vst [vmem:[#allocation46_spill] sm:$0xff] %v4972_v1  ;;  %v1040_v46 = vrot.slane %v4961_v7, %v4501_v11  ;;  %v4990_v47 = vrot.slane %v4961_v7, %v4498_v10  ;;  %v4994_v43 = vmul.f32 %v944_v35, %v4637_v53  ;;  %v4997_v48 = vmul.f32 %v944_v35, %v4639_v54 }
  0x75   : > { %v5000_v60 = vmul.f32 %v940_v22, %v4667_v58  ;;  %v5003_v49 = vmul.f32 %v940_v22, %v4669_v59  ;;  %v5006_v61 = vmul.f32 %v976_v44, %v4637_v53  ;;  %v5009_v62 = vmul.f32 %v976_v44, %v4639_v54 }
  0x76   : > { %9070 = vst [vmem:[#allocation47_spill] sm:$0xff] %v4994_v43  ;;  %9071 = vst [vmem:[#allocation48_spill] sm:$0xff] %v4997_v48  ;;  %v5012_v17 = vmul.f32 %v972_v45, %v4667_v58  ;;  %v5015_v30 = vmul.f32 %v972_v45, %v4669_v59  ;;  %v2006_v63 = vmul.f32 %v4683_v0, %v4994_v43 }
  0x77   : > { %9072 = vst [vmem:[#allocation49_spill] sm:$0xff] %v5000_v60  ;;  %v2014_v35 = vmul.f32 %v4683_v0, %v4997_v48  ;;  %v2262_v22 = vmul.f32 %v4707_v41, %v4994_v43  ;;  %v2270_v1 = vmul.f32 %v4707_v41, %v4997_v48  ;;  %v2005_v44 = vmul.f32 %v4680_v2, %v5000_v60 }
  0x78   : > { %9073 = vst [vmem:[#allocation50_spill] sm:$0xff] %v5015_v30  ;;  %v2013_v3 = vmul.f32 %v4680_v2, %v5003_v49  ;;  %v2261_v45 = vmul.f32 %v4704_v40, %v5000_v60  ;;  %v2269_v7 = vmul.f32 %v4704_v40, %v5003_v49  ;;  %v2022_v4 = vmul.f32 %v4683_v0, %v5006_v61 }
  0x79   : > { %v2998_v29 = vpack.c.bf16 %v2014_v35, %v2006_v63  ;;  %v3126_v15 = vpack.c.bf16 %v2270_v1, %v2262_v22  ;;  %v2030_v16 = vmul.f32 %v4683_v0, %v5009_v62  ;;  %v2278_v28 = vmul.f32 %v4707_v41, %v5006_v61 }
  0x7a   : > { %v2997_v48 = vpack.c.bf16 %v2013_v3, %v2005_v44  ;;  %v3125_v43 = vpack.c.bf16 %v2269_v7, %v2261_v45  ;;  %v2286_v5 = vmul.f32 %v4707_v41, %v5009_v62  ;;  %v2021_v1 = vmul.f32 %v4680_v2, %v5012_v17 }
  0x7b   : > { %3525 = vmatprep.subr.bf16.mxu0 %v2998_v29  ;;  %3566 = vmatprep.subr.bf16.mxu1 %v3126_v15  ;;  %v3006_v60 = vpack.c.bf16 %v2030_v16, %v2022_v4  ;;  %v2029_v63 = vmul.f32 %v4680_v2, %v5015_v30  ;;  %v392_v35 = vsub.f32 1.0, %v4925_v39  ;;  %v2277_v7 = vmul.f32 %v4704_v40, %v5012_v17 }
  0x7c   : > { %3526 = vmatpush1.bf16.msra.mxu0 %v2997_v48  ;;  %3567 = vmatpush1.bf16.msra.mxu1 %v3125_v43  ;;  %v3134_v3 = vpack.c.bf16 %v2286_v5, %v2278_v28  ;;  %v2285_v22 = vmul.f32 %v4704_v40, %v5015_v30  ;;  %v393_v15 = vsub.f32 1.0, %v4940_v23  ;;  %v5052_v4 = vmul.f32 %v1008_v9, %v4637_v53 }
  0x7d   : > { %3527 = vmatprep.subr.bf16.mxu0 %v3006_v60  ;;  %v3005_v16 = vpack.c.bf16 %v2029_v63, %v2021_v1  ;;  %v5055_v29 = vmul.f32 %v1008_v9, %v4639_v54  ;;  %v5058_v39 = vmul.f32 %v1004_v12, %v4667_v58  ;;  %v5061_v28 = vmul.f32 %v1004_v12, %v4669_v59 }
  0x7e   : > { %9074 = vst [vmem:[#allocation51_spill] sm:$0xff] %v5052_v4  ;;  %3568 = vmatprep.subr.bf16.mxu1 %v3134_v3  ;;  %v3133_v5 = vpack.c.bf16 %v2285_v22, %v2277_v7  ;;  %v5064_v43 = vmul.f32 %v1040_v46, %v4637_v53  ;;  %v5067_v23 = vmul.f32 %v1040_v46, %v4639_v54  ;;  %v394_v1 = vsub.f32 1.0, %v4945_v51 }
  0x7f   : > { %9075 = vst [vmem:[#allocation52_spill] sm:$0xff] %v5055_v29  ;;  %9076 = vst [vmem:[#allocation53_spill] sm:$0xff] %v5058_v39  ;;  %v2038_v48 = vmul.f32 %v4683_v0, %v5052_v4  ;;  %v2046_v9 = vmul.f32 %v4683_v0, %v5055_v29  ;;  %v2294_v60 = vmul.f32 %v4707_v41, %v5052_v4 }
  0x80   : > { %9077 = vst [vmem:[#allocation54_spill] sm:$0xff] %v5061_v28  ;;  %9078 = vst [vmem:[#allocation55_spill] sm:$0xff] %v5064_v43  ;;  %v2302_v44 = vmul.f32 %v4707_v41, %v5055_v29  ;;  %3528 = vmatpush1.bf16.msra.mxu0 %v3005_v16  ;;  %3569 = vmatpush1.bf16.msra.mxu1 %v3133_v5  ;;  %v2037_v12 = vmul.f32 %v4680_v2, %v5058_v39 }
  0x81   : > { %9079 = vst [vmem:[#allocation56_spill] sm:$0xff] %v5067_v23  ;;  %v2045_v46 = vmul.f32 %v4680_v2, %v5061_v28  ;;  %v2293_v45 = vmul.f32 %v4704_v40, %v5058_v39  ;;  %v3014_v63 = vpack.c.bf16 %v2046_v9, %v2038_v48  ;;  %v2301_v7 = vmul.f32 %v4704_v40, %v5061_v28 }
  0x82   : > { %v3142_v3 = vpack.c.bf16 %v2302_v44, %v2294_v60  ;;  %v2054_v22 = vmul.f32 %v4683_v0, %v5064_v43  ;;  %v2062_v5 = vmul.f32 %v4683_v0, %v5067_v23  ;;  %v2310_v29 = vmul.f32 %v4707_v41, %v5064_v43 }
  0x83   : > { %v3013_v16 = vpack.c.bf16 %v2045_v46, %v2037_v12  ;;  %v2318_v39 = vmul.f32 %v4707_v41, %v5067_v23  ;;  %3529 = vmatprep.subr.bf16.mxu0 %v3014_v63  ;;  %v3141_v51 = vpack.c.bf16 %v2301_v7, %v2293_v45  ;;  %v5096_v48 = vmul.f32 %v4990_v47, %v4667_v58 }
  0x84   : > { %3570 = vmatprep.subr.bf16.mxu1 %v3142_v3  ;;  %v5100_v9 = vmul.f32 %v4990_v47, %v4669_v59  ;;  %v395_v60 = vsub.f32 1.0, %v4947_v21  ;;  %v3022_v44 = vpack.c.bf16 %v2062_v5, %v2054_v22  ;;  %v396_v46 = vsub.f32 1.0, %v4949_v55 }
  0x85   : > { %9080 = vst [vmem:[#allocation57_spill] sm:$0xff] %v5096_v48  ;;  %3530 = vmatpush1.bf16.msra.mxu0 %v3013_v16  ;;  %v3150_v12 = vpack.c.bf16 %v2318_v39, %v2310_v29  ;;  %v397_v23 = vsub.f32 1.0, %v4963_v14  ;;  %3571 = vmatpush1.bf16.msra.mxu1 %v3141_v51  ;;  %v2053_v45 = vmul.f32 %v4680_v2, %v5096_v48  ;;  %v398_v29 = vsub.f32 1.0, %v4965_v25 }
  0x86   : > { %9081 = vst [vmem:[#allocation58_spill] sm:$0xff] %v5100_v9  ;;  %v2061_v63 = vmul.f32 %v4680_v2, %v5100_v9  ;;  %v2309_v47 = vmul.f32 %v4704_v40, %v5096_v48  ;;  %v2317_v21 = vmul.f32 %v4704_v40, %v5100_v9  ;;  %3531 = vmatprep.subr.bf16.mxu0 %v3022_v44  ;;  %v399_v55 = vsub.f32 1.0, %v4967_v33 }
  0x87   : > { %3572 = vmatprep.subr.bf16.mxu1 %v3150_v12  ;;  %v408_v14 = vmax.f32 %v392_v35, 0.0  ;;  %v409_v39 = vmax.f32 %v393_v15, 0.0  ;;  %v410_v22 = vmax.f32 %v394_v1, 0.0  ;;  %v411_v16 = vmax.f32 %v395_v60, 0.0 }
  0x88   : > { %v3021_v3 = vpack.c.bf16 %v2061_v63, %v2053_v45  ;;  %v3149_v7 = vpack.c.bf16 %v2317_v21, %v2309_v47  ;;  %v412_v5 = vmax.f32 %v396_v46, 0.0  ;;  %v413_v51 = vmax.f32 %v397_v23, 0.0 }
  0x89   : > { %v414_v43 = vmax.f32 %v398_v29, 0.0  ;;  %v415_v28 = vmax.f32 %v399_v55, 0.0  ;;  %v673_v48 = vcombine.low %v408_v14, %v409_v39  ;;  %v675_v9 = vcombine.low %v410_v22, %v411_v16 }
  0x8a   : > { %3532 = vmatpush1.bf16.msra.mxu0 %v3021_v3  ;;  %3573 = vmatpush1.bf16.msra.mxu1 %v3149_v7  ;;  %v674_v44 = vcombine.high %v408_v14, %v409_v39  ;;  %v677_v12 = vcombine.low %v412_v5, %v413_v51  ;;  %v676_v25 = vcombine.high %v410_v22, %v411_v16 }
  0x8b   : > { %v679_v4 = vcombine.low %v414_v43, %v415_v28  ;;  %v678_v30 = vcombine.high %v412_v5, %v413_v51  ;;  %v687_v33 = vrot.slane %v673_v48, %v4620_v24  ;;  %v701_v35 = vrot.slane %v675_v9, %v4620_v24 }
  0x8c   : > { %v680_v15 = vcombine.high %v414_v43, %v415_v28  ;;  %v694_v1 = vrot.slane %v674_v44, %v4620_v24  ;;  %v715_v23 = vrot.slane %v677_v12, %v4620_v24  ;;  %v708_v46 = vrot.slane %v676_v25, %v4620_v24 }
  0x8d   : > { %v729_v60 = vrot.slane %v679_v4, %v4620_v24  ;;  %v722_v45 = vrot.slane %v678_v30, %v4620_v24  ;;  %v737_v63 = vcombine.low %v687_v33, %v701_v35  ;;  %v738_v47 = vcombine.high %v687_v33, %v701_v35 }
  0x8e   : > { %v736_v21 = vrot.slane %v680_v15, %v4620_v24  ;;  %v5125_v48 = vcombine.low %v4928_v13, %v4928_v13  ;;  %v739_v43 = vcombine.low %v694_v1, %v708_v46  ;;  %v740_v29 = vcombine.high %v694_v1, %v708_v46 }
  0x8f   : > { %v741_v9 = vcombine.low %v715_v23, %v729_v60  ;;  %v742_v28 = vcombine.high %v715_v23, %v729_v60  ;;  %v751_v55 = vrot.slane %v737_v63, %v4620_v24  ;;  %v765_v4 = vrot.slane %v738_v47, %v4620_v24 }
  0x90   : > { %v743_v14 = vcombine.low %v722_v45, %v736_v21  ;;  %v744_v39 = vcombine.high %v722_v45, %v736_v21  ;;  %v758_v7 = vrot.slane %v739_v43, %v4620_v24  ;;  %v772_v22 = vrot.slane %v740_v29, %v4620_v24 }
  0x91   : > { %v779_v30 = vrot.slane %v741_v9, %v4620_v24  ;;  %v793_v3 = vrot.slane %v742_v28, %v4620_v24  ;;  %v5137_v5 = vcombine.low %v4943_v50, %v4943_v50  ;;  %v5141_v51 = vmul.f32 %v4731_v20, %v4674_v34 }
  0x92   : > { %v786_v13 = vrot.slane %v743_v14, %v4620_v24  ;;  %v800_v16 = vrot.slane %v744_v39, %v4620_v24 }
  0x93   : > { %v5143_v44 = vcombine.low %v751_v55, %v779_v30  ;;  %v5145_v12 = vcombine.low %v765_v4, %v793_v3  ;;  %v5147_v25 = vcombine.high %v751_v55, %v779_v30  ;;  %v5149_v33 = vcombine.high %v765_v4, %v793_v3 }
  0x94   : > { %v5151_v35 = vcombine.low %v758_v7, %v786_v13  ;;  %v5153_v15 = vcombine.low %v772_v22, %v800_v16  ;;  %v5155_v24 = vcombine.high %v758_v7, %v786_v13  ;;  %v5157_v50 = vcombine.high %v772_v22, %v800_v16 }
  0x95   : > { %9082 = vst [vmem:[#allocation59_spill] sm:$0xff] %v5143_v44  ;;  %9083 = vst [vmem:[#allocation60_spill] sm:$0xff] %v5145_v12  ;;  %v1072_v1 = vrot.slane %v5143_v44, %v4501_v11  ;;  %v1068_v23 = vrot.slane %v5143_v44, %v4498_v10  ;;  %v1104_v60 = vrot.slane %v5145_v12, %v4501_v11 }
  0x96   : > { %9084 = vst [vmem:[#allocation61_spill] sm:$0xff] %v5147_v25  ;;  %9085 = vst [vmem:[#allocation62_spill] sm:$0xff] %v5149_v33  ;;  %v1100_v46 = vrot.slane %v5145_v12, %v4498_v10  ;;  %v1136_v45 = vrot.slane %v5147_v25, %v4501_v11  ;;  %v1132_v63 = vrot.slane %v5147_v25, %v4498_v10 }
  0x97   : > { %9086 = vst [vmem:[#allocation63_spill] sm:$0xff] %v5151_v35  ;;  %9087 = vst [vmem:[#allocation64_spill] sm:$0xff] %v5153_v15  ;;  %v1168_v47 = vrot.slane %v5149_v33, %v4501_v11  ;;  %v5175_v21 = vrot.slane %v5149_v33, %v4498_v10  ;;  %v5178_v9 = vmul.f32 %v1072_v1, %v4637_v53 }
  0x98   : > { %9088 = vst [vmem:[#allocation65_spill] sm:$0xff] %v5155_v24  ;;  %v5181_v28 = vmul.f32 %v1072_v1, %v4639_v54  ;;  %v5184_v43 = vmul.f32 %v1068_v23, %v4667_v58  ;;  %v5187_v29 = vmul.f32 %v1068_v23, %v4669_v59  ;;  %v5190_v55 = vmul.f32 %v1104_v60, %v4637_v53 }
  0x99   : > { %9089 = vst [vmem:[#allocation66_spill] sm:$0xff] %v5178_v9  ;;  %v5193_v4 = vmul.f32 %v1104_v60, %v4639_v54  ;;  %v5196_v14 = vmul.f32 %v1100_v46, %v4667_v58  ;;  %v5199_v39 = vmul.f32 %v1100_v46, %v4669_v59  ;;  %v2070_v30 = vmul.f32 %v4683_v0, %v5178_v9 }
  0x9a   : > { %9090 = vst [vmem:[#allocation67_spill] sm:$0xff] %v5181_v28  ;;  %9091 = vst [vmem:[#allocation68_spill] sm:$0xff] %v5184_v43  ;;  %v2078_v3 = vmul.f32 %v4683_v0, %v5181_v28  ;;  %v2326_v7 = vmul.f32 %v4707_v41, %v5178_v9  ;;  %v2334_v22 = vmul.f32 %v4707_v41, %v5181_v28 }
  0x9b   : > { %v2069_v13 = vmul.f32 %v4680_v2, %v5184_v43  ;;  %v2077_v16 = vmul.f32 %v4680_v2, %v5187_v29  ;;  %v2325_v1 = vmul.f32 %v4704_v40, %v5184_v43  ;;  %v2333_v23 = vmul.f32 %v4704_v40, %v5187_v29 }
  0x9c   : > { %v3030_v60 = vpack.c.bf16 %v2078_v3, %v2070_v30  ;;  %v3158_v46 = vpack.c.bf16 %v2334_v22, %v2326_v7  ;;  %v2086_v33 = vmul.f32 %v4683_v0, %v5190_v55  ;;  %v2094_v25 = vmul.f32 %v4683_v0, %v5193_v4 }
  0x9d   : > { %v3029_v12 = vpack.c.bf16 %v2077_v16, %v2069_v13  ;;  %v3157_v44 = vpack.c.bf16 %v2333_v23, %v2325_v1  ;;  %v2342_v28 = vmul.f32 %v4707_v41, %v5190_v55  ;;  %v2350_v9 = vmul.f32 %v4707_v41, %v5193_v4 }
  0x9e   : > { %3533 = vmatprep.subr.bf16.mxu0 %v3030_v60  ;;  %3574 = vmatprep.subr.bf16.mxu1 %v3158_v46  ;;  %v3038_v43 = vpack.c.bf16 %v2094_v25, %v2086_v33  ;;  %v2085_v30 = vmul.f32 %v4680_v2, %v5196_v14  ;;  %v2093_v3 = vmul.f32 %v4680_v2, %v5199_v39 }
  0x9f   : > { %3534 = vmatpush1.bf16.msra.mxu0 %v3029_v12  ;;  %3575 = vmatpush1.bf16.msra.mxu1 %v3157_v44  ;;  %v3166_v7 = vpack.c.bf16 %v2350_v9, %v2342_v28  ;;  %v2341_v22 = vmul.f32 %v4704_v40, %v5196_v14  ;;  %v2349_v13 = vmul.f32 %v4704_v40, %v5199_v39 }
  0xa0   : > { %3535 = vmatprep.subr.bf16.mxu0 %v3038_v43  ;;  %v3037_v16 = vpack.c.bf16 %v2093_v3, %v2085_v30  ;;  %v5234_v1 = vmul.f32 %v1136_v45, %v4637_v53  ;;  %v5237_v25 = vmul.f32 %v1136_v45, %v4639_v54  ;;  %v5240_v33 = vmul.f32 %v1132_v63, %v4667_v58 }
  0xa1   : > { %3576 = vmatprep.subr.bf16.mxu1 %v3166_v7  ;;  %v3165_v44 = vpack.c.bf16 %v2349_v13, %v2341_v22  ;;  %v5243_v12 = vmul.f32 %v1132_v63, %v4669_v59  ;;  %v5246_v9 = vmul.f32 %v1168_v47, %v4637_v53  ;;  %v5249_v28 = vmul.f32 %v1168_v47, %v4639_v54 }
  0xa2   : > { %9092 = vst [vmem:[#allocation69_spill] sm:$0xff] %v5237_v25  ;;  %v2102_v43 = vmul.f32 %v4683_v0, %v5234_v1  ;;  %v2110_v45 = vmul.f32 %v4683_v0, %v5237_v25  ;;  %v2358_v23 = vmul.f32 %v4707_v41, %v5234_v1  ;;  %v2366_v60 = vmul.f32 %v4707_v41, %v5237_v25 }
  0xa3   : > { %9093 = vst [vmem:[#allocation70_spill] sm:$0xff] %v5249_v28  ;;  %3536 = vmatpush1.bf16.msra.mxu0 %v3037_v16  ;;  %3577 = vmatpush1.bf16.msra.mxu1 %v3165_v44  ;;  %v2101_v63 = vmul.f32 %v4680_v2, %v5240_v33  ;;  %v2109_v47 = vmul.f32 %v4680_v2, %v5243_v12 }
  0xa4   : > { %v2357_v46 = vmul.f32 %v4704_v40, %v5240_v33  ;;  %v3046_v30 = vpack.c.bf16 %v2110_v45, %v2102_v43  ;;  %v3174_v3 = vpack.c.bf16 %v2366_v60, %v2358_v23  ;;  %v2365_v7 = vmul.f32 %v4704_v40, %v5243_v12 }
  0xa5   : > { %v2118_v22 = vmul.f32 %v4683_v0, %v5246_v9  ;;  %v3045_v13 = vpack.c.bf16 %v2109_v47, %v2101_v63  ;;  %v2126_v16 = vmul.f32 %v4683_v0, %v5249_v28  ;;  %v2374_v44 = vmul.f32 %v4707_v41, %v5246_v9 }
  0xa6   : > { %v2382_v25 = vmul.f32 %v4707_v41, %v5249_v28  ;;  %3537 = vmatprep.subr.bf16.mxu0 %v3046_v30  ;;  %3578 = vmatprep.subr.bf16.mxu1 %v3174_v3  ;;  %v3173_v43 = vpack.c.bf16 %v2365_v7, %v2357_v46  ;;  %v5277_v45 = vmul.f32 %v5175_v21, %v4667_v58 }
  0xa7   : > { %v5281_v23 = vmul.f32 %v5175_v21, %v4669_v59  ;;  %3538 = vmatpush1.bf16.msra.mxu0 %v3045_v13  ;;  %v3054_v60 = vpack.c.bf16 %v2126_v16, %v2118_v22  ;;  %v1200_v47 = vrot.slane %v5151_v35, %v4501_v11  ;;  %v1196_v28 = vrot.slane %v5151_v35, %v4498_v10 }
  0xa8   : > { %9094 = vst [vmem:[#allocation71_spill] sm:$0xff] %v5277_v45  ;;  %v3182_v63 = vpack.c.bf16 %v2382_v25, %v2374_v44  ;;  %3579 = vmatpush1.bf16.msra.mxu1 %v3173_v43  ;;  %v2117_v46 = vmul.f32 %v4680_v2, %v5277_v45  ;;  %v2373_v21 = vmul.f32 %v4704_v40, %v5277_v45 }
  0xa9   : > { %9095 = vst [vmem:[#allocation72_spill] sm:$0xff] %v5281_v23  ;;  %v2125_v30 = vmul.f32 %v4680_v2, %v5281_v23  ;;  %v2381_v3 = vmul.f32 %v4704_v40, %v5281_v23  ;;  %3539 = vmatprep.subr.bf16.mxu0 %v3054_v60  ;;  %v5296_v25 = vmul.f32 %v1200_v47, %v4637_v53 }
  0xaa   : > { %3580 = vmatprep.subr.bf16.mxu1 %v3182_v63  ;;  %v5299_v7 = vmul.f32 %v1200_v47, %v4639_v54  ;;  %v5302_v22 = vmul.f32 %v1196_v28, %v4667_v58  ;;  %v5305_v44 = vmul.f32 %v1196_v28, %v4669_v59  ;;  %v1232_v43 = vrot.slane %v5153_v15, %v4501_v11 }
  0xab   : > { %9096 = vst [vmem:[#allocation73_spill] sm:$0xff] %v5296_v25  ;;  %v3053_v13 = vpack.c.bf16 %v2125_v30, %v2117_v46  ;;  %v3181_v16 = vpack.c.bf16 %v2381_v3, %v2373_v21  ;;  %v2134_v60 = vmul.f32 %v4683_v0, %v5296_v25  ;;  %v2390_v47 = vmul.f32 %v4707_v41, %v5296_v25 }
  0xac   : > { %9097 = vst [vmem:[#allocation74_spill] sm:$0xff] %v5299_v7  ;;  %9098 = vst [vmem:[#allocation75_spill] sm:$0xff] %v5305_v44  ;;  %v2142_v63 = vmul.f32 %v4683_v0, %v5299_v7  ;;  %v2398_v35 = vmul.f32 %v4707_v41, %v5299_v7  ;;  %v2133_v28 = vmul.f32 %v4680_v2, %v5302_v22 }
  0xad   : > { %3540 = vmatpush1.bf16.msra.mxu0 %v3053_v13  ;;  %3581 = vmatpush1.bf16.msra.mxu1 %v3181_v16  ;;  %v2141_v46 = vmul.f32 %v4680_v2, %v5305_v44  ;;  %v2389_v30 = vmul.f32 %v4704_v40, %v5302_v22  ;;  %v2397_v23 = vmul.f32 %v4704_v40, %v5305_v44 }
  0xae   : > { %v3062_v21 = vpack.c.bf16 %v2142_v63, %v2134_v60  ;;  %v3190_v3 = vpack.c.bf16 %v2398_v35, %v2390_v47  ;;  %v5326_v25 = vmul.f32 %v1232_v43, %v4637_v53  ;;  %v5329_v13 = vmul.f32 %v1232_v43, %v4639_v54 }
  0xaf   : > { %v3061_v7 = vpack.c.bf16 %v2141_v46, %v2133_v28  ;;  %v1228_v16 = vrot.slane %v5153_v15, %v4498_v10  ;;  %v1264_v45 = vrot.slane %v5155_v24, %v4501_v11  ;;  %v3189_v60 = vpack.c.bf16 %v2397_v23, %v2389_v30 }
  0xb0   : > { %9099 = vst [vmem:[#allocation76_spill] sm:$0xff] %v5326_v25  ;;  %9100 = vst [vmem:[#allocation77_spill] sm:$0xff] %v5329_v13  ;;  %3541 = vmatprep.subr.bf16.mxu0 %v3062_v21  ;;  %3582 = vmatprep.subr.bf16.mxu1 %v3190_v3  ;;  %v2150_v35 = vmul.f32 %v4683_v0, %v5326_v25  ;;  %v2406_v63 = vmul.f32 %v4707_v41, %v5326_v25 }
  0xb1   : > { %3542 = vmatpush1.bf16.msra.mxu0 %v3061_v7  ;;  %v2158_v43 = vmul.f32 %v4683_v0, %v5329_v13  ;;  %v2414_v47 = vmul.f32 %v4707_v41, %v5329_v13  ;;  %v5344_v28 = vmul.f32 %v1228_v16, %v4667_v58  ;;  %v5347_v46 = vmul.f32 %v1228_v16, %v4669_v59 }
  0xb2   : > { %3583 = vmatpush1.bf16.msra.mxu1 %v3189_v60  ;;  %v5350_v23 = vmul.f32 %v1264_v45, %v4637_v53  ;;  %v5353_v30 = vmul.f32 %v1264_v45, %v4639_v54  ;;  %v1260_v7 = vrot.slane %v5155_v24, %v4498_v10  ;;  %v1296_v21 = vrot.slane %v5157_v50, %v4501_v11 }
  0xb3   : > { %9101 = vst [vmem:[#allocation78_spill] sm:$0xff] %v5344_v28  ;;  %9102 = vst [vmem:[#allocation79_spill] sm:$0xff] %v5347_v46  ;;  %v3070_v3 = vpack.c.bf16 %v2158_v43, %v2150_v35  ;;  %v3198_v15 = vpack.c.bf16 %v2414_v47, %v2406_v63  ;;  %v2149_v13 = vmul.f32 %v4680_v2, %v5344_v28 }
  0xb4   : > { %v2157_v16 = vmul.f32 %v4680_v2, %v5347_v46  ;;  %v2405_v60 = vmul.f32 %v4704_v40, %v5344_v28  ;;  %v2413_v45 = vmul.f32 %v4704_v40, %v5347_v46  ;;  %v2166_v24 = vmul.f32 %v4683_v0, %v5350_v23 }
  0xb5   : > { %v2174_v11 = vmul.f32 %v4683_v0, %v5353_v30  ;;  %3543 = vmatprep.subr.bf16.mxu0 %v3070_v3  ;;  %3584 = vmatprep.subr.bf16.mxu1 %v3198_v15  ;;  %v2422_v63 = vmul.f32 %v4707_v41, %v5350_v23  ;;  %v2430_v43 = vmul.f32 %v4707_v41, %v5353_v30 }
  0xb6   : > { %v3069_v35 = vpack.c.bf16 %v2157_v16, %v2149_v13  ;;  %v3197_v47 = vpack.c.bf16 %v2413_v45, %v2405_v60  ;;  %v5376_v25 = vmul.f32 %v1260_v7, %v4667_v58  ;;  %v5379_v46 = vmul.f32 %v1260_v7, %v4669_v59 }
  0xb7   : > { %v3078_v28 = vpack.c.bf16 %v2174_v11, %v2166_v24  ;;  %v3206_v44 = vpack.c.bf16 %v2430_v43, %v2422_v63  ;;  %v5382_v3 = vmul.f32 %v1296_v21, %v4637_v53  ;;  %v5385_v15 = vmul.f32 %v1296_v21, %v4639_v54 }
  0xb8   : > { %3544 = vmatpush1.bf16.msra.mxu0 %v3069_v35  ;;  %v1292_v13 = vrot.slane %v5157_v50, %v4498_v10  ;;  %3585 = vmatpush1.bf16.msra.mxu1 %v3197_v47  ;;  %v2165_v24 = vmul.f32 %v4680_v2, %v5376_v25  ;;  %v2173_v7 = vmul.f32 %v4680_v2, %v5379_v46 }
  0xb9   : > { %3545 = vmatprep.subr.bf16.mxu0 %v3078_v28  ;;  %v2421_v16 = vmul.f32 %v4704_v40, %v5376_v25  ;;  %3586 = vmatprep.subr.bf16.mxu1 %v3206_v44  ;;  %v2429_v53 = vmul.f32 %v4704_v40, %v5379_v46  ;;  %v2182_v54 = vmul.f32 %v4683_v0, %v5382_v3 }
  0xba   : > { %v2190_v10 = vmul.f32 %v4683_v0, %v5385_v15  ;;  %v2438_v28 = vmul.f32 %v4707_v41, %v5382_v3  ;;  %v3077_v21 = vpack.c.bf16 %v2173_v7, %v2165_v24  ;;  %v2446_v60 = vmul.f32 %v4707_v41, %v5385_v15 }
  0xbb   : > { %v5406_v45 = vmul.f32 %v1292_v13, %v4667_v58  ;;  %v5409_v44 = vmul.f32 %v1292_v13, %v4669_v59  ;;  %v3205_v11 = vpack.c.bf16 %v2429_v53, %v2421_v16  ;;  %v2462_v63 = vmul.f32 %v4731_v20, %v4677_v52 }
  0xbc   : > { %v3086_v35 = vpack.c.bf16 %v2190_v10, %v2182_v54  ;;  %v2710_v0 = vmul.f32 %v4755_v37, %v4674_v34  ;;  %3546 = vmatpush1.bf16.msra.mxu0 %v3077_v21  ;;  %v3214_v43 = vpack.c.bf16 %v2446_v60, %v2438_v28  ;;  %v2718_v34 = vmul.f32 %v4755_v37, %v4677_v52 }
  0xbd   : > { %v2181_v47 = vmul.f32 %v4680_v2, %v5406_v45  ;;  %v2189_v58 = vmul.f32 %v4680_v2, %v5409_v44  ;;  %v2437_v59 = vmul.f32 %v4704_v40, %v5406_v45  ;;  %3587 = vmatpush1.bf16.msra.mxu1 %v3205_v11  ;;  %v2445_v41 = vmul.f32 %v4704_v40, %v5409_v44 }
  0xbe   : > { %3547 = vmatprep.subr.bf16.mxu0 %v3086_v35  ;;  %v3222_v13 = vpack.c.bf16 %v2462_v63, %v5141_v51  ;;  %3588 = vmatprep.subr.bf16.mxu1 %v3214_v43  ;;  %v2453_v7 = vmul.f32 %v4728_v19, %v4784_v32  ;;  %v2461_v2 = vmul.f32 %v4728_v19, %v4787_v31  ;;  %v9103_v43 = vld [vmem:[#allocation37_spill] sm:$0xff] }
  0xbf   : > { %v3085_v24 = vpack.c.bf16 %v2189_v58, %v2181_v47  ;;  %v2709_v16 = vmul.f32 %v4752_v8, %v4784_v32  ;;  %v3213_v53 = vpack.c.bf16 %v2445_v41, %v2437_v59  ;;  %v3350_v54 = vpack.c.bf16 %v2718_v34, %v2710_v0 }
  0xc0   : > { %v2717_v40 = vmul.f32 %v4752_v8, %v4787_v31  ;;  %v2470_v51 = vmul.f32 %v4731_v20, %v4831_v36  ;;  %v3221_v52 = vpack.c.bf16 %v2461_v2, %v2453_v7  ;;  %v2478_v10 = vmul.f32 %v4731_v20, %v4834_v57 }
  0xc1   : > { %3548 = vmatpush1.bf16.msra.mxu0 %v3085_v24  ;;  %v2726_v28 = vmul.f32 %v4755_v37, %v4831_v36  ;;  %v2734_v21 = vmul.f32 %v4755_v37, %v4834_v57  ;;  %3589 = vmatpush1.bf16.msra.mxu1 %v3213_v53  ;;  %v2469_v31 = vmul.f32 %v4728_v19, %v4837_v6 }
  0xc2   : > { %3599 = vmatprep.subr.bf16.mxu0 %v3222_v13  ;;  %v3349_v32 = vpack.c.bf16 %v2717_v40, %v2709_v16  ;;  %v2477_v60 = vmul.f32 %v4728_v19, %v4840_v56  ;;  %3640 = vmatprep.subr.bf16.mxu1 %v3350_v54  ;;  %v3230_v11 = vpack.c.bf16 %v2478_v10, %v2470_v51  ;;  %v9104_v40 = vld [vmem:[#allocation39_spill] sm:$0xff] }
  0xc3   : > { %v3358_v35 = vpack.c.bf16 %v2734_v21, %v2726_v28  ;;  %v2725_v63 = vmul.f32 %v4752_v8, %v4837_v6  ;;  %v2733_v36 = vmul.f32 %v4752_v8, %v4840_v56  ;;  %v2486_v0 = vmul.f32 %v4731_v20, %v4804_v27 }
  0xc4   : > { %3550 = vmatmul.mubr.bf16.vlgmr.msra.gmra.mrb[0].mxu0 %v5125_v48  ;;  %v3229_v57 = vpack.c.bf16 %v2477_v60, %v2469_v31  ;;  %v2494_v47 = vmul.f32 %v4731_v20, %v9103_v43  ;;  %v2742_v58 = vmul.f32 %v4755_v37, %v4804_v27  ;;  %3591 = vmatmul.mubr.bf16.vlgmr.msra.gmra.mrb[0].mxu1 %v5137_v5  ;;  %v9107_v60 = vld [vmem:[#allocation48_spill] sm:$0xff] }
  0xc5   : > { %3600 = vmatpush1.bf16.msra.mxu0 %v3221_v52  ;;  %v3357_v59 = vpack.c.bf16 %v2733_v36, %v2725_v63  ;;  %v2750_v6 = vmul.f32 %v4755_v37, %v9103_v43  ;;  %v2485_v56 = vmul.f32 %v4728_v19, %v4828_v18  ;;  %3641 = vmatpush1.bf16.msra.mxu1 %v3349_v32  ;;  %v9106_v32 = vld [vmem:[#allocation47_spill] sm:$0xff] }
  0xc6   : > { %3601 = vmatprep.subr.bf16.mxu0 %v3230_v11  ;;  %v3238_v41 = vpack.c.bf16 %v2494_v47, %v2486_v0  ;;  %v2493_v13 = vmul.f32 %v4728_v19, %v4843_v42  ;;  %v2741_v34 = vmul.f32 %v4752_v8, %v4828_v18  ;;  %3642 = vmatprep.subr.bf16.mxu1 %v3358_v35 }
  0xc7   : > { %v3366_v27 = vpack.c.bf16 %v2750_v6, %v2742_v58  ;;  %v2749_v24 = vmul.f32 %v4752_v8, %v4843_v42  ;;  %v2502_v7 = vmul.f32 %v4731_v20, %v4876_v38  ;;  %v2510_v2 = vmul.f32 %v4731_v20, %v4879_v26  ;;  %v9105_v42 = vld [vmem:[#allocation40_spill] sm:$0xff] }
  0xc8   : > { %v3237_v16 = vpack.c.bf16 %v2493_v13, %v2485_v56  ;;  %v2758_v53 = vmul.f32 %v4755_v37, %v4876_v38  ;;  %v2766_v54 = vmul.f32 %v4755_v37, %v4879_v26  ;;  %v2501_v18 = vmul.f32 %v4728_v19, %v9104_v40 }
  0xc9   : > { %3602 = vmatpush1.bf16.msra.mxu0 %v3229_v57  ;;  %v3365_v51 = vpack.c.bf16 %v2749_v24, %v2741_v34  ;;  %v3246_v52 = vpack.c.bf16 %v2510_v2, %v2502_v7  ;;  %v2509_v10 = vmul.f32 %v4728_v19, %v9105_v42  ;;  %v2757_v28 = vmul.f32 %v4752_v8, %v9104_v40  ;;  %v9108_v57 = vld [vmem:[#allocation49_spill] sm:$0xff]  ;;  %v9109_v7 = vld [vmem:[#allocation50_spill] sm:$0xff]  ;;  %v9110_v40 = vld [vmem:[#allocation51_spill] sm:$0xff] }
  0xca   : > { %3643 = vmatpush1.bf16.msra.mxu1 %v3357_v59  ;;  %3603 = vmatprep.subr.bf16.mxu0 %v3238_v41  ;;  %v3374_v21 = vpack.c.bf16 %v2766_v54, %v2758_v53  ;;  %v2765_v38 = vmul.f32 %v4752_v8, %v9105_v42  ;;  %v2518_v26 = vmul.f32 %v4731_v20, %v9106_v32 }
  0xcb   : > { %3644 = vmatprep.subr.bf16.mxu1 %v3366_v27  ;;  %v3245_v31 = vpack.c.bf16 %v2509_v10, %v2501_v18  ;;  %v2526_v11 = vmul.f32 %v4731_v20, %v9107_v60  ;;  %v2774_v35 = vmul.f32 %v4755_v37, %v9106_v32  ;;  %v2782_v63 = vmul.f32 %v4755_v37, %v9107_v60  ;;  %v9113_v32 = vld [vmem:[#allocation54_spill] sm:$0xff] }
  0xcc   : > { %v3373_v36 = vpack.c.bf16 %v2765_v38, %v2757_v28  ;;  %v2517_v0 = vmul.f32 %v4728_v19, %v9108_v57  ;;  %v2525_v43 = vmul.f32 %v4728_v19, %v5003_v49  ;;  %v2773_v47 = vmul.f32 %v4752_v8, %v9108_v57  ;;  %v9112_v28 = vld [vmem:[#allocation53_spill] sm:$0xff] }
  0xcd   : > { %3604 = vmatpush1.bf16.msra.mxu0 %v3237_v16  ;;  %v3254_v58 = vpack.c.bf16 %v2526_v11, %v2518_v26  ;;  %v3382_v59 = vpack.c.bf16 %v2782_v63, %v2774_v35  ;;  %v2781_v6 = vmul.f32 %v4752_v8, %v5003_v49  ;;  %v2534_v56 = vmul.f32 %v4731_v20, %v5006_v61  ;;  %v9114_v35 = vld [vmem:[#allocation55_spill] sm:$0xff] }
  0xce   : > { %3645 = vmatpush1.bf16.msra.mxu1 %v3365_v51  ;;  %3605 = vmatprep.subr.bf16.mxu0 %v3246_v52  ;;  %v3253_v41 = vpack.c.bf16 %v2525_v43, %v2517_v0  ;;  %v2542_v13 = vmul.f32 %v4731_v20, %v5009_v62  ;;  %v2790_v34 = vmul.f32 %v4755_v37, %v5006_v61 }
  0xcf   : > { %3646 = vmatprep.subr.bf16.mxu1 %v3374_v21  ;;  %v3381_v27 = vpack.c.bf16 %v2781_v6, %v2773_v47  ;;  %v2798_v24 = vmul.f32 %v4755_v37, %v5009_v62  ;;  %v2533_v49 = vmul.f32 %v4728_v19, %v5012_v17  ;;  %v2541_v2 = vmul.f32 %v4728_v19, %v9109_v7  ;;  %v9111_v62 = vld [vmem:[#allocation52_spill] sm:$0xff] }
  0xd0   : > { %v3262_v16 = vpack.c.bf16 %v2542_v13, %v2534_v56  ;;  %v2789_v53 = vmul.f32 %v4752_v8, %v5012_v17  ;;  %v2797_v54 = vmul.f32 %v4752_v8, %v9109_v7  ;;  %v2550_v61 = vmul.f32 %v4731_v20, %v9110_v40  ;;  %v9117_v13 = vld [vmem:[#allocation58_spill] sm:$0xff] }
  0xd1   : > { %3606 = vmatpush1.bf16.msra.mxu0 %v3245_v31  ;;  %v3390_v18 = vpack.c.bf16 %v2798_v24, %v2790_v34  ;;  %v3261_v51 = vpack.c.bf16 %v2541_v2, %v2533_v49  ;;  %v2558_v52 = vmul.f32 %v4731_v20, %v9111_v62  ;;  %v2806_v42 = vmul.f32 %v4755_v37, %v9110_v40  ;;  %v9118_v7 = vld [vmem:[#allocation66_spill] sm:$0xff] }
  0xd2   : > { %3647 = vmatpush1.bf16.msra.mxu1 %v3373_v36  ;;  %3607 = vmatprep.subr.bf16.mxu0 %v3254_v58  ;;  %v3389_v10 = vpack.c.bf16 %v2797_v54, %v2789_v53  ;;  %v2814_v17 = vmul.f32 %v4755_v37, %v9111_v62  ;;  %v2549_v21 = vmul.f32 %v4728_v19, %v9112_v28  ;;  %v9115_v36 = vld [vmem:[#allocation56_spill] sm:$0xff]  ;;  %v9119_v53 = vld [vmem:[#allocation67_spill] sm:$0xff] }
  0xd3   : > { %3648 = vmatprep.subr.bf16.mxu1 %v3382_v59  ;;  %v3270_v38 = vpack.c.bf16 %v2558_v52, %v2550_v61  ;;  %v2557_v26 = vmul.f32 %v4728_v19, %v9113_v32  ;;  %v2805_v31 = vmul.f32 %v4752_v8, %v9112_v28  ;;  %v2813_v60 = vmul.f32 %v4752_v8, %v9113_v32  ;;  %v9116_v59 = vld [vmem:[#allocation57_spill] sm:$0xff]  ;;  %v9120_v61 = vld [vmem:[#allocation68_spill] sm:$0xff] }
  0xd4   : > { %v3398_v11 = vpack.c.bf16 %v2814_v17, %v2806_v42  ;;  %v2566_v63 = vmul.f32 %v4731_v20, %v9114_v35  ;;  %v2574_v57 = vmul.f32 %v4731_v20, %v9115_v36  ;;  %v2822_v0 = vmul.f32 %v4755_v37, %v9114_v35 }
  0xd5   : > { %3608 = vmatpush1.bf16.msra.mxu0 %v3253_v41  ;;  %v3269_v43 = vpack.c.bf16 %v2557_v26, %v2549_v21  ;;  %v3397_v47 = vpack.c.bf16 %v2813_v60, %v2805_v31  ;;  %v2830_v58 = vmul.f32 %v4755_v37, %v9115_v36  ;;  %v2565_v6 = vmul.f32 %v4728_v19, %v9116_v59 }
  0xd6   : > { %3649 = vmatpush1.bf16.msra.mxu1 %v3381_v27  ;;  %3609 = vmatprep.subr.bf16.mxu0 %v3262_v16  ;;  %v3278_v56 = vpack.c.bf16 %v2574_v57, %v2566_v63  ;;  %v2573_v34 = vmul.f32 %v4728_v19, %v9117_v13  ;;  %v2821_v24 = vmul.f32 %v4752_v8, %v9116_v59  ;;  %v9121_v57 = vld [vmem:[#allocation69_spill] sm:$0xff] }
  0xd7   : > { %3650 = vmatprep.subr.bf16.mxu1 %v3390_v18  ;;  %v3406_v49 = vpack.c.bf16 %v2830_v58, %v2822_v0  ;;  %v2829_v41 = vmul.f32 %v4752_v8, %v9117_v13  ;;  %v2582_v2 = vmul.f32 %v4731_v20, %v9118_v7  ;;  %v2590_v54 = vmul.f32 %v4731_v20, %v9119_v53 }
  0xd8   : > { %v3277_v27 = vpack.c.bf16 %v2573_v34, %v2565_v6  ;;  %v2838_v16 = vmul.f32 %v4755_v37, %v9118_v7  ;;  %v2846_v40 = vmul.f32 %v4755_v37, %v9119_v53  ;;  %v2581_v18 = vmul.f32 %v4728_v19, %v9120_v61  ;;  %v9123_v7 = vld [vmem:[#allocation71_spill] sm:$0xff] }
  0xd9   : > { %3610 = vmatpush1.bf16.msra.mxu0 %v3261_v51  ;;  %v3405_v62 = vpack.c.bf16 %v2829_v41, %v2821_v24  ;;  %v3286_v52 = vpack.c.bf16 %v2590_v54, %v2582_v2  ;;  %v2589_v42 = vmul.f32 %v4728_v19, %v5187_v29  ;;  %v2837_v17 = vmul.f32 %v4752_v8, %v9120_v61  ;;  %v9122_v24 = vld [vmem:[#allocation70_spill] sm:$0xff]  ;;  %v9124_v54 = vld [vmem:[#allocation72_spill] sm:$0xff]  ;;  %v9125_v61 = vld [vmem:[#allocation73_spill] sm:$0xff] }
  0xda   : > { %3651 = vmatpush1.bf16.msra.mxu1 %v3389_v10  ;;  %3611 = vmatprep.subr.bf16.mxu0 %v3270_v38  ;;  %v3414_v28 = vpack.c.bf16 %v2846_v40, %v2838_v16  ;;  %v2845_v21 = vmul.f32 %v4752_v8, %v5187_v29  ;;  %v2598_v32 = vmul.f32 %v4731_v20, %v5190_v55 }
  0xdb   : > { %3652 = vmatprep.subr.bf16.mxu1 %v3398_v11  ;;  %v3285_v26 = vpack.c.bf16 %v2589_v42, %v2581_v18  ;;  %v2606_v51 = vmul.f32 %v4731_v20, %v5193_v4  ;;  %v2854_v31 = vmul.f32 %v4755_v37, %v5190_v55  ;;  %v2862_v60 = vmul.f32 %v4755_v37, %v5193_v4 }
  0xdc   : > { %v3413_v10 = vpack.c.bf16 %v2845_v21, %v2837_v17  ;;  %v2597_v38 = vmul.f32 %v4728_v19, %v5196_v14  ;;  %v2605_v29 = vmul.f32 %v4728_v19, %v5199_v39  ;;  %v5578_v11 = vmul.f32 %v4752_v8, %v5196_v14 }
  0xdd   : > { %3612 = vmatpush1.bf16.msra.mxu0 %v3269_v43  ;;  %v3294_v35 = vpack.c.bf16 %v2606_v51, %v2598_v32  ;;  %v3422_v63 = vpack.c.bf16 %v2862_v60, %v2854_v31  ;;  %v2861_v55 = vmul.f32 %v4752_v8, %v5199_v39  ;;  %v2614_v4 = vmul.f32 %v4731_v20, %v5234_v1 }
  0xde   : > { %3653 = vmatpush1.bf16.msra.mxu1 %v3397_v47  ;;  %3613 = vmatprep.subr.bf16.mxu0 %v3278_v56  ;;  %v3293_v36 = vpack.c.bf16 %v2605_v29, %v2597_v38  ;;  %v2622_v0 = vmul.f32 %v4731_v20, %v9121_v57  ;;  %v2870_v58 = vmul.f32 %v4755_v37, %v5234_v1 }
  0xdf   : > { %3654 = vmatprep.subr.bf16.mxu1 %v3406_v49  ;;  %v3421_v14 = vpack.c.bf16 %v2861_v55, %v5578_v11  ;;  %v2878_v43 = vmul.f32 %v4755_v37, %v9121_v57  ;;  %v5593_v39 = vmul.f32 %v4728_v19, %v5240_v33  ;;  %v2621_v47 = vmul.f32 %v4728_v19, %v5243_v12  ;;  %v9130_v57 = vld [vmem:[#allocation78_spill] sm:$0xff] }
  0xe0   : > { %v3302_v59 = vpack.c.bf16 %v2622_v0, %v2614_v4  ;;  %v5599_v6 = vmul.f32 %v4752_v8, %v5240_v33  ;;  %v5603_v1 = vmul.f32 %v4752_v8, %v5243_v12  ;;  %v5607_v56 = vmul.f32 %v4731_v20, %v5246_v9 }
  0xe1   : > { %3614 = vmatpush1.bf16.msra.mxu0 %v3277_v27  ;;  %v3430_v13 = vpack.c.bf16 %v2878_v43, %v2870_v58  ;;  %v3301_v34 = vpack.c.bf16 %v2621_v47, %v5593_v39  ;;  %v2638_v49 = vmul.f32 %v4731_v20, %v9122_v24  ;;  %v5614_v41 = vmul.f32 %v4755_v37, %v5246_v9  ;;  %v9131_v39 = vld [vmem:[#allocation79_spill] sm:$0xff] }
  0xe2   : > { %3655 = vmatpush1.bf16.msra.mxu1 %v3405_v62  ;;  %3615 = vmatprep.subr.bf16.mxu0 %v3286_v52  ;;  %v3429_v33 = vpack.c.bf16 %v5603_v1, %v5599_v6  ;;  %v2894_v12 = vmul.f32 %v4755_v37, %v9122_v24  ;;  %v5622_v2 = vmul.f32 %v4728_v19, %v9123_v7  ;;  %v9126_v62 = vld [vmem:[#allocation74_spill] sm:$0xff] }
  0xe3   : > { %3656 = vmatprep.subr.bf16.mxu1 %v3414_v28  ;;  %v3310_v53 = vpack.c.bf16 %v2638_v49, %v5607_v56  ;;  %v5627_v27 = vmul.f32 %v4728_v19, %v9124_v54  ;;  %v5631_v9 = vmul.f32 %v4752_v8, %v9123_v7  ;;  %v5635_v16 = vmul.f32 %v4752_v8, %v9124_v54 }
  0xe4   : > { %v3438_v40 = vpack.c.bf16 %v2894_v12, %v5614_v41  ;;  %v5640_v18 = vmul.f32 %v4731_v20, %v9125_v61  ;;  %v5644_v52 = vmul.f32 %v4731_v20, %v9126_v62  ;;  %v5648_v42 = vmul.f32 %v4755_v37, %v9125_v61 }
  0xe5   : > { %3616 = vmatpush1.bf16.msra.mxu0 %v3285_v26  ;;  %v3309_v17 = vpack.c.bf16 %v5627_v27, %v5622_v2  ;;  %v3437_v28 = vpack.c.bf16 %v5635_v16, %v5631_v9  ;;  %v5656_v21 = vmul.f32 %v4755_v37, %v9126_v62  ;;  %v5660_v32 = vmul.f32 %v4728_v19, %v5302_v22  ;;  %v9127_v26 = vld [vmem:[#allocation75_spill] sm:$0xff]  ;;  %v3487_v27 = vld [vmem:[%s4470_s26 + $0x10] sm:$0xff] }
  0xe6   : > { %3657 = vmatpush1.bf16.msra.mxu1 %v3413_v10  ;;  %3617 = vmatprep.subr.bf16.mxu0 %v3294_v35  ;;  %v3318_v51 = vpack.c.bf16 %v5644_v52, %v5640_v18  ;;  %v5666_v31 = vmul.f32 %v4728_v19, %v9127_v26  ;;  %v5670_v60 = vmul.f32 %v4752_v8, %v5302_v22  ;;  %v9128_v10 = vld [vmem:[#allocation76_spill] sm:$0xff]  ;;  %v9129_v35 = vld [vmem:[#allocation77_spill] sm:$0xff] }
  0xe7   : > { %3658 = vmatprep.subr.bf16.mxu1 %v3422_v63  ;;  %v3446_v38 = vpack.c.bf16 %v5656_v21, %v5648_v42  ;;  %v5676_v29 = vmul.f32 %v4752_v8, %v9127_v26  ;;  %v5680_v11 = vmul.f32 %v4731_v20, %v9128_v10  ;;  %v5684_v55 = vmul.f32 %v4731_v20, %v9129_v35  ;;  %v9135_v52 = vld [vmem:[#allocation4_spill] sm:$0xff]  ;;  %v9137_v26 = vld [vmem:[#allocation3_spill] sm:$0xff] }
  0xe8   : > { %v3317_v22 = vpack.c.bf16 %v5666_v31, %v5660_v32  ;;  %v5690_v63 = vmul.f32 %v4755_v37, %v9128_v10  ;;  %v5694_v4 = vmul.f32 %v4755_v37, %v9129_v35  ;;  %v5698_v0 = vmul.f32 %v4728_v19, %v9130_v57 }
  0xe9   : > { %3618 = vmatpush1.bf16.msra.mxu0 %v3293_v36  ;;  %v3445_v58 = vpack.c.bf16 %v5676_v29, %v5670_v60  ;;  %v3326_v43 = vpack.c.bf16 %v5684_v55, %v5680_v11  ;;  %v5706_v47 = vmul.f32 %v4728_v19, %v9131_v39  ;;  %v5710_v6 = vmul.f32 %v4752_v8, %v9130_v57  ;;  %v9139_v57 = vld [vmem:[#allocation6_spill] sm:$0xff] }
  0xea   : > { %3659 = vmatpush1.bf16.msra.mxu1 %v3421_v14  ;;  %3619 = vmatprep.subr.bf16.mxu0 %v3302_v59  ;;  %v3454_v1 = vpack.c.bf16 %v5694_v4, %v5690_v63  ;;  %v5716_v36 = vmul.f32 %v4752_v8, %v9131_v39  ;;  %v5720_v56 = vmul.f32 %v4731_v20, %v5350_v23 }
  0xeb   : > { %3660 = vmatprep.subr.bf16.mxu1 %v3430_v13  ;;  %v3325_v24 = vpack.c.bf16 %v5706_v47, %v5698_v0  ;;  %v5726_v14 = vmul.f32 %v4731_v20, %v5353_v30  ;;  %v5730_v59 = vmul.f32 %v4755_v37, %v5350_v23  ;;  %v5734_v49 = vmul.f32 %v4755_v37, %v5353_v30 }
  0xec   : > { %v3453_v41 = vpack.c.bf16 %v5716_v36, %v5710_v6  ;;  %v5740_v13 = vmul.f32 %v4728_v19, %v5376_v25  ;;  %v5744_v12 = vmul.f32 %v4728_v19, %v5379_v46  ;;  %v5748_v23 = vmul.f32 %v4752_v8, %v5376_v25 }
  0xed   : > { %3620 = vmatpush1.bf16.msra.mxu0 %v3301_v34  ;;  %v3334_v30 = vpack.c.bf16 %v5726_v14, %v5720_v56  ;;  %v3462_v7 = vpack.c.bf16 %v5734_v49, %v5730_v59  ;;  %v5756_v2 = vmul.f32 %v4752_v8, %v5379_v46  ;;  %v5760_v54 = vmul.f32 %v4731_v20, %v5382_v3  ;;  %v3488_v46 = vld [vmem:[%s4470_s26 + $0x18] sm:$0xff]  ;;  %v9147_v56 = vld [vmem:[#allocation59_spill] sm:$0xff] }
  0xee   : > { %3661 = vmatpush1.bf16.msra.mxu1 %v3429_v33  ;;  %3621 = vmatprep.subr.bf16.mxu0 %v3310_v53  ;;  %v3333_v25 = vpack.c.bf16 %v5744_v12, %v5740_v13  ;;  %v5767_v34 = vmul.f32 %v4731_v20, %v5385_v15  ;;  %v5771_v9 = vmul.f32 %v4755_v37, %v5382_v3  ;;  %v9150_v12 = vld [vmem:[#allocation13_spill] sm:$0xff] }
  0xef   : > { %3662 = vmatprep.subr.bf16.mxu1 %v3438_v40  ;;  %v5778_v33 = vmul.f32 %v4755_v37, %v5385_v15  ;;  %v5782_v53 = vmul.f32 %v4728_v19, %v5406_v45  ;;  %v5786_v20 = vmul.f32 %v4728_v19, %v5409_v44  ;;  %v5792_v40 = vmul.f32 %v4752_v8, %v5406_v45  ;;  %v9141_v19 = vld [vmem:[#allocation11_spill] sm:$0xff] }
  0xf0   : > { %v5796_v37 = vmul.f32 %v4752_v8, %v5409_v44  ;;  %v5798_v15 = vcombine.high %v3487_v27, %v3487_v27  ;;  %v5804_v18 = vcombine.high %v3488_v46, %v3488_v46  ;;  %v5806_v62 = vcombine.low %v3487_v27, %v3487_v27  ;;  %v4369_v44 = vld [vmem:[%s4465_s22] ss:$4 sm:$0xff] }
  0xf1   : > { %3622 = vmatpush1.bf16.msra.mxu0 %v3309_v17  ;;  %v5810_v8 = vcombine.low %v3488_v46, %v3488_v46  ;;  %v432_v42 = vrot.slane %v4369_v44, %v9135_v52  ;;  %v9136_v17 = vld [vmem:[#allocation10_spill] sm:$0xff]  ;;  %v428_v10 = vrot.slane %v4369_v44, %v9137_v26  ;;  %v9140_v27 = vld [vmem:[#allocation36_spill] sm:$0xff]  ;;  %v5834_v61 = vrot.slane %v9141_v19, %v9135_v52 }
  0xf2   : > { %9132 = vst [vmem:[#allocation37_spill] sm:$0xff] %v5804_v18  ;;  %9133 = vst [vmem:[#allocation39_spill] sm:$0xff] %v5806_v62  ;;  %3663 = vmatpush1.bf16.msra.mxu1 %v3437_v28  ;;  %3623 = vmatprep.subr.bf16.mxu0 %v3318_v51  ;;  %v824_v21 = vrot.slane %v9136_v17, %v9135_v52  ;;  %v820_v28 = vrot.slane %v9136_v17, %v9137_v26  ;;  %v9138_v51 = vld [vmem:[#allocation2_spill] sm:$0xff] }
  0xf3   : > { %9134 = vst [vmem:[#allocation40_spill] sm:$0xff] %v5810_v8  ;;  %3664 = vmatprep.subr.bf16.mxu1 %v3446_v38  ;;  %3631 = vmatprep.mubr.bf16.mxu0 %v5798_v15  ;;  %v460_v35 = vsub.f32 %v9138_v51, %v432_v42  ;;  %v468_v39 = vsub.f32 %v9139_v57, %v432_v42 }
  0xf4   : > { %3672 = vmatprep.mubr.bf16.mxu1 %v5804_v18  ;;  %v856_v46 = vrot.slane %v9140_v27, %v9135_v52  ;;  %v852_v38 = vrot.slane %v9140_v27, %v9137_v26  ;;  %v459_v44 = vsub.f32 %v9138_v51, %v428_v10  ;;  %v467_v45 = vsub.f32 %v9139_v57, %v428_v10 }
  0xf5   : > { %3624 = vmatpush1.bf16.msra.mxu0 %v3317_v22  ;;  %v5838_v42 = vrot.slane %v9141_v19, %v9137_v26  ;;  %v476_v32 = vand.u32 2147483647, %v460_v35  ;;  %v484_v31 = vand.u32 2147483647, %v468_v39  ;;  %v9142_v22 = vld [vmem:[#allocation38_spill] sm:$0xff]  ;;  %v9144_v39 = vld [vmem:[#allocation43_spill] sm:$0xff]  ;;  %v5911_v14 = vrot.slane %v9147_v56, %v9135_v52 }
  0xf6   : > { %3665 = vmatpush1.bf16.msra.mxu1 %v3445_v58  ;;  %3625 = vmatprep.subr.bf16.mxu0 %v3326_v43  ;;  %v5848_v10 = vrot.slane %v9142_v22, %v9135_v52  ;;  %v5852_v3 = vrot.slane %v9142_v22, %v9137_v26  ;;  %v475_v60 = vand.u32 2147483647, %v459_v44  ;;  %v483_v29 = vand.u32 2147483647, %v467_v45  ;;  %v9143_v58 = vld [vmem:[#allocation42_spill] sm:$0xff]  ;;  %v9145_v45 = vld [vmem:[#allocation44_spill] sm:$0xff] }
  0xf7   : > { %3666 = vmatprep.subr.bf16.mxu1 %v3454_v1  ;;  %v5859_v11 = vrot.slane %v9143_v58, %v9135_v52  ;;  %v5863_v55 = vrot.slane %v9143_v58, %v9137_v26  ;;  %v492_v43 = vsub.f32 1.0, %v476_v32  ;;  %v500_v35 = vsub.f32 1.0, %v484_v31 }
  0xf8   : > { %v5867_v16 = vrot.slane %v9144_v39, %v9135_v52  ;;  %v5871_v63 = vrot.slane %v9144_v39, %v9137_v26  ;;  %v491_v4 = vsub.f32 1.0, %v475_v60  ;;  %v499_v1 = vsub.f32 1.0, %v483_v29 }
  0xf9   : > { %3626 = vmatpush1.bf16.msra.mxu0 %v3325_v24  ;;  %v5878_v44 = vrot.slane %v9145_v45, %v9135_v52  ;;  %v5882_v32 = vrot.slane %v9145_v45, %v9137_v26  ;;  %v5890_v0 = vmax.f32 %v492_v43, 0.0  ;;  %v5892_v47 = vmax.f32 %v500_v35, 0.0  ;;  %v9146_v24 = vld [vmem:[#allocation45_spill] sm:$0xff] }
  0xfa   : > { %3667 = vmatpush1.bf16.msra.mxu1 %v3453_v41  ;;  %3627 = vmatprep.subr.bf16.mxu0 %v3334_v30  ;;  %v5896_v31 = vrot.slane %v9146_v24, %v9135_v52  ;;  %v5900_v60 = vrot.slane %v9146_v24, %v9137_v26  ;;  %v5905_v6 = vmax.f32 %v491_v4, 0.0  ;;  %v5907_v36 = vmax.f32 %v499_v1, 0.0  ;;  %v9151_v4 = vld [vmem:[#allocation19_spill] sm:$0xff] }
  0xfb   : > { %3668 = vmatprep.subr.bf16.mxu1 %v3462_v7  ;;  %v5915_v41 = vrot.slane %v9147_v56, %v9137_v26  ;;  %v5918_v30 = vmul.f32 %v824_v21, %v5890_v0  ;;  %v5921_v29 = vmul.f32 %v824_v21, %v5892_v47  ;;  %v5924_v59 = vmul.f32 %v856_v46, %v5890_v0 }
  0xfc   : > { %v5927_v49 = vmul.f32 %v856_v46, %v5892_v47  ;;  %v5933_v7 = vmul.f32 %v820_v28, %v5905_v6  ;;  %v5936_v43 = vmul.f32 %v820_v28, %v5907_v36  ;;  %v5939_v35 = vmul.f32 %v852_v38, %v5905_v6 }
  0xfd   : > { %3628 = vmatpush1.bf16.msra.mxu0 %v3333_v25  ;;  %v5942_v21 = vmul.f32 %v852_v38, %v5907_v36  ;;  %v9148_v46 = vpack.c.bf16 %v5756_v2, %v5748_v23  ;;  %v9149_v13 = vpack.c.bf16 %v5767_v34, %v5760_v54  ;;  %v1944_v25 = vmul.f32 %v9150_v12, %v5918_v30  ;;  %v9153_v2 = vld [vmem:[#allocation12_spill] sm:$0xff] }
  0xfe   : > { %v1952_v28 = vmul.f32 %v9150_v12, %v5921_v29  ;;  %v2200_v1 = vmul.f32 %v9151_v4, %v5918_v30  ;;  %v9152_v38 = vpack.c.bf16 %v5778_v33, %v5771_v9  ;;  %v2208_v23 = vmul.f32 %v9151_v4, %v5921_v29 }
  0xff   : > { %3669 = vmatpush1.bf16.msra.mxu1 %v9148_v46  ;;  %3629 = vmatprep.subr.bf16.mxu0 %v9149_v13  ;;  %v1943_v54 = vmul.f32 %v9153_v2, %v5933_v7  ;;  %v1951_v34 = vmul.f32 %v9153_v2, %v5936_v43  ;;  %v9154_v46 = vld [vmem:[#allocation18_spill] sm:$0xff]  ;;  %v1960_v9 = vmul.f32 %v9150_v12, %v5924_v59 }
 0x100   : > { %3670 = vmatprep.subr.bf16.mxu1 %v9152_v38  ;;  %v2199_v13 = vmul.f32 %v9154_v46, %v5933_v7  ;;  %v2968_v56 = vpack.c.bf16 %v1952_v28, %v1944_v25  ;;  %v2207_v24 = vmul.f32 %v9154_v46, %v5936_v43  ;;  %v1968_v33 = vmul.f32 %v9150_v12, %v5927_v49 }
 0x101   : > { %v9155_v38 = vpack.c.bf16 %v5786_v20, %v5782_v53  ;;  %v3096_v45 = vpack.c.bf16 %v2208_v23, %v2200_v1  ;;  %v2967_v39 = vpack.c.bf16 %v1951_v34, %v1943_v54  ;;  %v2216_v58 = vmul.f32 %v9151_v4, %v5924_v59 }
 0x102   : > { %v2224_v25 = vmul.f32 %v9151_v4, %v5927_v49  ;;  %v9156_v28 = vpack.c.bf16 %v5796_v37, %v5792_v40  ;;  %v3095_v22 = vpack.c.bf16 %v2207_v24, %v2199_v13  ;;  %v2976_v19 = vpack.c.bf16 %v1968_v33, %v1960_v9 }
 0x103   : > { %3630 = vmatpush1.bf16.msra.mxu0 %v9155_v38  ;;  %v1959_v27 = vmul.f32 %v9153_v2, %v5939_v35  ;;  %v1967_v20 = vmul.f32 %v9153_v2, %v5942_v21  ;;  %v2215_v1 = vmul.f32 %v9154_v46, %v5939_v35  ;;  %v2223_v23 = vmul.f32 %v9154_v46, %v5942_v21 }
 0x104   : > { %3671 = vmatpush1.bf16.msra.mxu1 %v9156_v28  ;;  %3681 = vmatprep.subr.bf16.mxu0 %v2968_v56  ;;  %v3104_v53 = vpack.c.bf16 %v2224_v25, %v2216_v58  ;;  %v5994_v40 = vmul.f32 %v5834_v61, %v5890_v0  ;;  %v5998_v37 = vmul.f32 %v5834_v61, %v5892_v47  ;;  %v9157_v25 = vld [vmem:[#allocation41_spill] sm:$0xff] }
 0x105   : > { %3722 = vmatprep.subr.bf16.mxu1 %v3096_v45  ;;  %v6002_v58 = vmul.f32 %v5838_v42, %v5905_v6  ;;  %v6006_v45 = vmul.f32 %v5838_v42, %v5907_v36  ;;  %v2975_v24 = vpack.c.bf16 %v1967_v20, %v1959_v27  ;;  %v3103_v56 = vpack.c.bf16 %v2223_v23, %v2215_v1 }
 0x106   : > { %3632 = vmatmul.mubr.bf16.vlgmr.msra.gmra.mrb[4].mxu0 %v5806_v62  ;;  %v6011_v54 = vmul.f32 %v5848_v10, %v5890_v0  ;;  %v1976_v61 = vmul.f32 %v9150_v12, %v5994_v40  ;;  %v1984_v34 = vmul.f32 %v9150_v12, %v5998_v37  ;;  %v2232_v42 = vmul.f32 %v9151_v4, %v5994_v40 }
 0x107   : > { %3673 = vmatmul.mubr.bf16.vlgmr.msra.gmra.mrb[4].mxu1 %v5810_v8  ;;  %3682 = vmatpush1.bf16.msra.mxu0 %v2967_v39  ;;  %v2240_v27 = vmul.f32 %v9151_v4, %v5998_v37  ;;  %v1975_v39 = vmul.f32 %v9153_v2, %v6002_v58  ;;  %v2239_v9 = vmul.f32 %v9154_v46, %v6006_v45 }
 0x108   : > { %3723 = vmatpush1.bf16.msra.mxu1 %v3095_v22  ;;  %3683 = vmatprep.subr.bf16.mxu0 %v2976_v19  ;;  %v1983_v22 = vmul.f32 %v9153_v2, %v6006_v45  ;;  %v2231_v19 = vmul.f32 %v9154_v46, %v6002_v58  ;;  %v2984_v13 = vpack.c.bf16 %v1984_v34, %v1976_v61 }
 0x109   : > { %3724 = vmatprep.subr.bf16.mxu1 %v3104_v53  ;;  %v6031_v33 = vmul.f32 %v5848_v10, %v5892_v47  ;;  %v1992_v38 = vmul.f32 %v9150_v12, %v6011_v54  ;;  %3713 = vmatprep.mubr.bf16.mxu0 %v9157_v25  ;;  %v3112_v28 = vpack.c.bf16 %v2240_v27, %v2232_v42 }
 0x10a   : > { %v2983_v53 = vpack.c.bf16 %v1983_v22, %v1975_v39  ;;  %v2248_v20 = vmul.f32 %v9151_v4, %v6011_v54  ;;  %v6040_v1 = vmul.f32 %v5852_v3, %v5905_v6  ;;  %v3111_v23 = vpack.c.bf16 %v2239_v9, %v2231_v19  ;;  %v9158_v19 = vld [vmem:[#allocation46_spill] sm:$0xff] }
 0x10b   : > { %3684 = vmatpush1.bf16.msra.mxu0 %v2975_v24  ;;  %v2000_v10 = vmul.f32 %v9150_v12, %v6031_v33  ;;  %v2256_v61 = vmul.f32 %v9151_v4, %v6031_v33  ;;  %v6048_v24 = vmul.f32 %v5852_v3, %v5907_v36  ;;  %v6060_v22 = vmul.f32 %v5859_v11, %v5892_v47 }
 0x10c   : > { %3725 = vmatpush1.bf16.msra.mxu1 %v3103_v56  ;;  %3685 = vmatprep.subr.bf16.mxu0 %v2984_v13  ;;  %v1991_v34 = vmul.f32 %v9153_v2, %v6040_v1  ;;  %v2247_v42 = vmul.f32 %v9154_v46, %v6040_v1  ;;  %v6056_v56 = vmul.f32 %v5859_v11, %v5890_v0 }
 0x10d   : > { %3726 = vmatprep.subr.bf16.mxu1 %v3112_v28  ;;  %v2992_v27 = vpack.c.bf16 %v2000_v10, %v1992_v38  ;;  %v3120_v39 = vpack.c.bf16 %v2256_v61, %v2248_v20  ;;  %v6064_v3 = vmul.f32 %v5863_v55, %v5905_v6  ;;  %3754 = vmatprep.mubr.bf16.mxu1 %v9158_v19 }
 0x10e   : > { %v1999_v13 = vmul.f32 %v9153_v2, %v6048_v24  ;;  %v2255_v9 = vmul.f32 %v9154_v46, %v6048_v24  ;;  %v2008_v38 = vmul.f32 %v9150_v12, %v6056_v56  ;;  %v2264_v11 = vmul.f32 %v9151_v4, %v6056_v56 }
 0x10f   : > { %3686 = vmatpush1.bf16.msra.mxu0 %v2983_v53  ;;  %v2016_v28 = vmul.f32 %v9150_v12, %v6060_v22  ;;  %v2272_v53 = vmul.f32 %v9151_v4, %v6060_v22  ;;  %v6081_v20 = vmul.f32 %v5863_v55, %v5907_v36  ;;  %v2007_v19 = vmul.f32 %v9153_v2, %v6064_v3 }
 0x110   : > { %3727 = vmatpush1.bf16.msra.mxu1 %v3111_v23  ;;  %3687 = vmatprep.subr.bf16.mxu0 %v2992_v27  ;;  %v2991_v10 = vpack.c.bf16 %v1999_v13, %v1991_v34  ;;  %v3119_v61 = vpack.c.bf16 %v2255_v9, %v2247_v42  ;;  %v2263_v23 = vmul.f32 %v9154_v46, %v6064_v3 }
 0x111   : > { %3728 = vmatprep.subr.bf16.mxu1 %v3120_v39  ;;  %v3000_v27 = vpack.c.bf16 %v2016_v28, %v2008_v38  ;;  %v3128_v25 = vpack.c.bf16 %v2272_v53, %v2264_v11  ;;  %v2015_v8 = vmul.f32 %v9153_v2, %v6081_v20  ;;  %v2271_v62 = vmul.f32 %v9154_v46, %v6081_v20 }
 0x112   : > { %v6093_v55 = vmul.f32 %v5867_v16, %v5890_v0  ;;  %v6097_v34 = vmul.f32 %v5867_v16, %v5892_v47  ;;  %v6101_v42 = vmul.f32 %v5871_v63, %v5905_v6  ;;  %v6105_v39 = vmul.f32 %v5871_v63, %v5907_v36 }
 0x113   : > { %3688 = vmatpush1.bf16.msra.mxu0 %v2991_v10  ;;  %v2999_v13 = vpack.c.bf16 %v2015_v8, %v2007_v19  ;;  %v3127_v9 = vpack.c.bf16 %v2271_v62, %v2263_v23  ;;  %v6109_v38 = vmul.f32 %v5878_v44, %v5890_v0  ;;  %v6137_v17 = vmul.f32 %v5882_v32, %v5905_v6 }
 0x114   : > { %3729 = vmatpush1.bf16.msra.mxu1 %v3119_v61  ;;  %3689 = vmatprep.subr.bf16.mxu0 %v3000_v27  ;;  %v2024_v16 = vmul.f32 %v9150_v12, %v6093_v55  ;;  %v2032_v11 = vmul.f32 %v9150_v12, %v6097_v34  ;;  %v2280_v28 = vmul.f32 %v9151_v4, %v6093_v55 }
 0x115   : > { %3730 = vmatprep.subr.bf16.mxu1 %v3128_v25  ;;  %v2288_v63 = vmul.f32 %v9151_v4, %v6097_v34  ;;  %v2023_v62 = vmul.f32 %v9153_v2, %v6101_v42  ;;  %v2031_v8 = vmul.f32 %v9153_v2, %v6105_v39  ;;  %v2279_v25 = vmul.f32 %v9154_v46, %v6101_v42 }
 0x116   : > { %v2287_v19 = vmul.f32 %v9154_v46, %v6105_v39  ;;  %v3008_v53 = vpack.c.bf16 %v2032_v11, %v2024_v16  ;;  %v6129_v61 = vmul.f32 %v5878_v44, %v5892_v47  ;;  %v2040_v23 = vmul.f32 %v9150_v12, %v6109_v38  ;;  %9160 = vst [vmem:[#allocation48_spill] sm:$0xff] %v6137_v17 }
 0x117   : > { %3690 = vmatpush1.bf16.msra.mxu0 %v2999_v13  ;;  %v3136_v10 = vpack.c.bf16 %v2288_v63, %v2280_v28  ;;  %v3007_v27 = vpack.c.bf16 %v2031_v8, %v2023_v62  ;;  %v2296_v51 = vmul.f32 %v9151_v4, %v6109_v38  ;;  %v2039_v16 = vmul.f32 %v9153_v2, %v6137_v17 }
 0x118   : > { %9159 = vst [vmem:[#allocation47_spill] sm:$0xff] %v6129_v61  ;;  %3731 = vmatpush1.bf16.msra.mxu1 %v3127_v9  ;;  %v3135_v57 = vpack.c.bf16 %v2287_v19, %v2279_v25  ;;  %3691 = vmatprep.subr.bf16.mxu0 %v3008_v53  ;;  %v2048_v13 = vmul.f32 %v9150_v12, %v6129_v61 }
 0x119   : > { %3732 = vmatprep.subr.bf16.mxu1 %v3136_v10  ;;  %v2304_v44 = vmul.f32 %v9151_v4, %v6129_v61  ;;  %v6145_v9 = vmul.f32 %v5882_v32, %v5907_v36  ;;  %v2295_v11 = vmul.f32 %v9154_v46, %v6137_v17  ;;  %v6153_v28 = vmul.f32 %v5896_v31, %v5890_v0 }
 0x11a   : > { %v6157_v63 = vmul.f32 %v5896_v31, %v5892_v47  ;;  %v3016_v62 = vpack.c.bf16 %v2048_v13, %v2040_v23 }
 0x11b   : > { %9161 = vst [vmem:[#allocation49_spill] sm:$0xff] %v6145_v9  ;;  %9162 = vst [vmem:[#allocation50_spill] sm:$0xff] %v6153_v28  ;;  %3692 = vmatpush1.bf16.msra.mxu0 %v3007_v27  ;;  %v3144_v8 = vpack.c.bf16 %v2304_v44, %v2296_v51  ;;  %v2047_v32 = vmul.f32 %v9153_v2, %v6145_v9  ;;  %v2303_v25 = vmul.f32 %v9154_v46, %v6145_v9 }
 0x11c   : > { %9163 = vst [vmem:[#allocation51_spill] sm:$0xff] %v6157_v63  ;;  %3733 = vmatpush1.bf16.msra.mxu1 %v3135_v57  ;;  %v2056_v19 = vmul.f32 %v9150_v12, %v6153_v28  ;;  %v2064_v53 = vmul.f32 %v9150_v12, %v6157_v63  ;;  %v2312_v31 = vmul.f32 %v9151_v4, %v6153_v28 }
 0x11d   : > { %v2320_v10 = vmul.f32 %v9151_v4, %v6157_v63  ;;  %3693 = vmatprep.subr.bf16.mxu0 %v3016_v62  ;;  %3734 = vmatprep.subr.bf16.mxu1 %v3144_v8  ;;  %v3015_v51 = vpack.c.bf16 %v2047_v32, %v2039_v16  ;;  %v3143_v23 = vpack.c.bf16 %v2303_v25, %v2295_v11 }
 0x11e   : > { %v6173_v27 = vmul.f32 %v5900_v60, %v5905_v6  ;;  %v3024_v57 = vpack.c.bf16 %v2064_v53, %v2056_v19  ;;  %v6177_v44 = vmul.f32 %v5900_v60, %v5907_v36  ;;  %v6181_v28 = vmul.f32 %v5911_v14, %v5890_v0 }
 0x11f   : > { %v3152_v13 = vpack.c.bf16 %v2320_v10, %v2312_v31  ;;  %3694 = vmatpush1.bf16.msra.mxu0 %v3015_v51  ;;  %v6189_v11 = vmul.f32 %v5911_v14, %v5892_v47  ;;  %v6193_v8 = vmul.f32 %v5915_v41, %v5905_v6  ;;  %v6209_v31 = vmul.f32 %v5915_v41, %v5907_v36  ;;  %v9170_v41 = vld [vmem:[#allocation60_spill] sm:$0xff] }
 0x120   : > { %9164 = vst [vmem:[#allocation52_spill] sm:$0xff] %v6173_v27  ;;  %9165 = vst [vmem:[#allocation53_spill] sm:$0xff] %v6177_v44  ;;  %v2055_v62 = vmul.f32 %v9153_v2, %v6173_v27  ;;  %v2311_v16 = vmul.f32 %v9154_v46, %v6173_v27  ;;  %3735 = vmatpush1.bf16.msra.mxu1 %v3143_v23  ;;  %3695 = vmatprep.subr.bf16.mxu0 %v3024_v57 }
 0x121   : > { %9166 = vst [vmem:[#allocation54_spill] sm:$0xff] %v6181_v28  ;;  %9167 = vst [vmem:[#allocation55_spill] sm:$0xff] %v6189_v11  ;;  %v2063_v60 = vmul.f32 %v9153_v2, %v6177_v44  ;;  %v2319_v32 = vmul.f32 %v9154_v46, %v6177_v44  ;;  %v2072_v25 = vmul.f32 %v9150_v12, %v6181_v28  ;;  %3736 = vmatprep.subr.bf16.mxu1 %v3152_v13 }
 0x122   : > { %9168 = vst [vmem:[#allocation56_spill] sm:$0xff] %v6193_v8  ;;  %v2080_v14 = vmul.f32 %v9150_v12, %v6189_v11  ;;  %v2328_v19 = vmul.f32 %v9151_v4, %v6181_v28  ;;  %v2336_v53 = vmul.f32 %v9151_v4, %v6189_v11  ;;  %9169 = vst [vmem:[#allocation57_spill] sm:$0xff] %v6209_v31 }
 0x123   : > { %v3023_v10 = vpack.c.bf16 %v2063_v60, %v2055_v62  ;;  %v3151_v51 = vpack.c.bf16 %v2319_v32, %v2311_v16  ;;  %v2071_v23 = vmul.f32 %v9153_v2, %v6193_v8  ;;  %v2327_v57 = vmul.f32 %v9154_v46, %v6193_v8  ;;  %v9171_v60 = vld [vmem:[#allocation61_spill] sm:$0xff] }
 0x124   : > { %v3032_v13 = vpack.c.bf16 %v2080_v14, %v2072_v25  ;;  %v3160_v44 = vpack.c.bf16 %v2336_v53, %v2328_v19  ;;  %v2079_v28 = vmul.f32 %v9153_v2, %v6209_v31  ;;  %v2335_v11 = vmul.f32 %v9154_v46, %v6209_v31 }
 0x125   : > { %3696 = vmatpush1.bf16.msra.mxu0 %v3023_v10  ;;  %3737 = vmatpush1.bf16.msra.mxu1 %v3151_v51  ;;  %v1112_v62 = vrot.slane %v9170_v41, %v9135_v52  ;;  %v1108_v16 = vrot.slane %v9170_v41, %v9137_v26  ;;  %v1144_v32 = vrot.slane %v9171_v60, %v9135_v52 }
 0x126   : > { %3697 = vmatprep.subr.bf16.mxu0 %v3032_v13  ;;  %3738 = vmatprep.subr.bf16.mxu1 %v3160_v44  ;;  %v3031_v25 = vpack.c.bf16 %v2079_v28, %v2071_v23  ;;  %v3159_v14 = vpack.c.bf16 %v2335_v11, %v2327_v57  ;;  %v1140_v19 = vrot.slane %v9171_v60, %v9137_v26 }
 0x127   : > { %v6228_v53 = vmul.f32 %v1112_v62, %v5890_v0  ;;  %v6231_v10 = vmul.f32 %v1112_v62, %v5892_v47  ;;  %v6234_v51 = vmul.f32 %v1108_v16, %v5905_v6  ;;  %v6237_v41 = vmul.f32 %v1108_v16, %v5907_v36 }
 0x128   : > { %v6240_v13 = vmul.f32 %v1144_v32, %v5890_v0  ;;  %v6243_v28 = vmul.f32 %v1144_v32, %v5892_v47  ;;  %v6246_v44 = vmul.f32 %v1140_v19, %v5905_v6  ;;  %v6249_v11 = vmul.f32 %v1140_v19, %v5907_v36 }
 0x129   : > { %9172 = vst [vmem:[#allocation58_spill] sm:$0xff] %v6228_v53  ;;  %9173 = vst [vmem:[#allocation66_spill] sm:$0xff] %v6231_v10  ;;  %3698 = vmatpush1.bf16.msra.mxu0 %v3031_v25  ;;  %3739 = vmatpush1.bf16.msra.mxu1 %v3159_v14  ;;  %v2088_v23 = vmul.f32 %v9150_v12, %v6228_v53  ;;  %v2096_v57 = vmul.f32 %v9150_v12, %v6231_v10 }
 0x12a   : > { %9174 = vst [vmem:[#allocation67_spill] sm:$0xff] %v6234_v51  ;;  %9175 = vst [vmem:[#allocation68_spill] sm:$0xff] %v6237_v41  ;;  %v2344_v62 = vmul.f32 %v9151_v4, %v6228_v53  ;;  %v2352_v16 = vmul.f32 %v9151_v4, %v6231_v10  ;;  %v2087_v32 = vmul.f32 %v9153_v2, %v6234_v51 }
 0x12b   : > { %9176 = vst [vmem:[#allocation69_spill] sm:$0xff] %v6240_v13  ;;  %9177 = vst [vmem:[#allocation70_spill] sm:$0xff] %v6243_v28  ;;  %v2095_v19 = vmul.f32 %v9153_v2, %v6237_v41  ;;  %v2343_v25 = vmul.f32 %v9154_v46, %v6234_v51  ;;  %v3040_v14 = vpack.c.bf16 %v2096_v57, %v2088_v23 }
 0x12c   : > { %9178 = vst [vmem:[#allocation71_spill] sm:$0xff] %v6246_v44  ;;  %9179 = vst [vmem:[#allocation72_spill] sm:$0xff] %v6249_v11  ;;  %v2351_v60 = vmul.f32 %v9154_v46, %v6237_v41  ;;  %v2104_v31 = vmul.f32 %v9150_v12, %v6240_v13  ;;  %v2112_v53 = vmul.f32 %v9150_v12, %v6243_v28 }
 0x12d   : > { %v3168_v10 = vpack.c.bf16 %v2352_v16, %v2344_v62  ;;  %v3039_v8 = vpack.c.bf16 %v2095_v19, %v2087_v32  ;;  %v2360_v27 = vmul.f32 %v9151_v4, %v6240_v13  ;;  %v2368_v63 = vmul.f32 %v9151_v4, %v6243_v28  ;;  %3699 = vmatprep.subr.bf16.mxu0 %v3040_v14 }
 0x12e   : > { %v3167_v51 = vpack.c.bf16 %v2351_v60, %v2343_v25  ;;  %v3048_v23 = vpack.c.bf16 %v2112_v53, %v2104_v31  ;;  %v2103_v57 = vmul.f32 %v9153_v2, %v6246_v44  ;;  %v2111_v41 = vmul.f32 %v9153_v2, %v6249_v11  ;;  %v9180_v31 = vld [vmem:[#allocation62_spill] sm:$0xff] }
 0x12f   : > { %3740 = vmatprep.subr.bf16.mxu1 %v3168_v10  ;;  %3700 = vmatpush1.bf16.msra.mxu0 %v3039_v8  ;;  %v3176_v9 = vpack.c.bf16 %v2368_v63, %v2360_v27  ;;  %v2359_v62 = vmul.f32 %v9154_v46, %v6246_v44  ;;  %v2367_v16 = vmul.f32 %v9154_v46, %v6249_v11  ;;  %v9181_v8 = vld [vmem:[#allocation63_spill] sm:$0xff]  ;;  %v9182_v10 = vld [vmem:[#allocation64_spill] sm:$0xff] }
 0x130   : > { %3741 = vmatpush1.bf16.msra.mxu1 %v3167_v51  ;;  %3701 = vmatprep.subr.bf16.mxu0 %v3048_v23  ;;  %v3047_v32 = vpack.c.bf16 %v2111_v41, %v2103_v57  ;;  %v1176_v60 = vrot.slane %v9180_v31, %v9135_v52  ;;  %v1172_v53 = vrot.slane %v9180_v31, %v9137_v26 }
 0x131   : > { %3742 = vmatprep.subr.bf16.mxu1 %v3176_v9  ;;  %v3175_v19 = vpack.c.bf16 %v2367_v16, %v2359_v62  ;;  %v1208_v63 = vrot.slane %v9181_v8, %v9135_v52  ;;  %v1204_v27 = vrot.slane %v9181_v8, %v9137_v26  ;;  %v1240_v25 = vrot.slane %v9182_v10, %v9135_v52 }
 0x132   : > { %v6294_v51 = vmul.f32 %v1176_v60, %v5890_v0  ;;  %v6297_v41 = vmul.f32 %v1176_v60, %v5892_v47  ;;  %v6300_v14 = vmul.f32 %v1172_v53, %v5905_v6  ;;  %v6303_v9 = vmul.f32 %v1172_v53, %v5907_v36 }
 0x133   : > { %3702 = vmatpush1.bf16.msra.mxu0 %v3047_v32  ;;  %v6306_v23 = vmul.f32 %v1208_v63, %v5890_v0  ;;  %v6309_v57 = vmul.f32 %v1208_v63, %v5892_v47  ;;  %v6312_v62 = vmul.f32 %v1204_v27, %v5905_v6  ;;  %v6315_v16 = vmul.f32 %v1204_v27, %v5907_v36 }
 0x134   : > { %9183 = vst [vmem:[#allocation73_spill] sm:$0xff] %v6294_v51  ;;  %9184 = vst [vmem:[#allocation74_spill] sm:$0xff] %v6297_v41  ;;  %3743 = vmatpush1.bf16.msra.mxu1 %v3175_v19  ;;  %v2120_v60 = vmul.f32 %v9150_v12, %v6294_v51  ;;  %v2128_v53 = vmul.f32 %v9150_v12, %v6297_v41  ;;  %v2376_v32 = vmul.f32 %v9151_v4, %v6294_v51 }
 0x135   : > { %9185 = vst [vmem:[#allocation75_spill] sm:$0xff] %v6300_v14  ;;  %v2384_v63 = vmul.f32 %v9151_v4, %v6297_v41  ;;  %v2119_v8 = vmul.f32 %v9153_v2, %v6300_v14  ;;  %v2127_v27 = vmul.f32 %v9153_v2, %v6303_v9  ;;  %v2375_v19 = vmul.f32 %v9154_v46, %v6300_v14 }
 0x136   : > { %v2383_v31 = vmul.f32 %v9154_v46, %v6303_v9  ;;  %v3056_v11 = vpack.c.bf16 %v2128_v53, %v2120_v60  ;;  %v2136_v51 = vmul.f32 %v9150_v12, %v6306_v23  ;;  %v2144_v41 = vmul.f32 %v9150_v12, %v6309_v57 }
 0x137   : > { %v3184_v44 = vpack.c.bf16 %v2384_v63, %v2376_v32  ;;  %v3055_v28 = vpack.c.bf16 %v2127_v27, %v2119_v8  ;;  %v2392_v17 = vmul.f32 %v9151_v4, %v6306_v23  ;;  %v2400_v61 = vmul.f32 %v9151_v4, %v6309_v57 }
 0x138   : > { %v3183_v13 = vpack.c.bf16 %v2383_v31, %v2375_v19  ;;  %3703 = vmatprep.subr.bf16.mxu0 %v3056_v11  ;;  %v3064_v14 = vpack.c.bf16 %v2144_v41, %v2136_v51  ;;  %v2135_v60 = vmul.f32 %v9153_v2, %v6312_v62  ;;  %v2143_v53 = vmul.f32 %v9153_v2, %v6315_v16 }
 0x139   : > { %3744 = vmatprep.subr.bf16.mxu1 %v3184_v44  ;;  %3704 = vmatpush1.bf16.msra.mxu0 %v3055_v28  ;;  %v3192_v32 = vpack.c.bf16 %v2400_v61, %v2392_v17  ;;  %v2391_v31 = vmul.f32 %v9154_v46, %v6312_v62  ;;  %v2399_v8 = vmul.f32 %v9154_v46, %v6315_v16  ;;  %v9188_v17 = vld [vmem:[#allocation65_spill] sm:$0xff] }
 0x13a   : > { %3745 = vmatpush1.bf16.msra.mxu1 %v3183_v13  ;;  %3705 = vmatprep.subr.bf16.mxu0 %v3064_v14  ;;  %v3063_v63 = vpack.c.bf16 %v2143_v53, %v2135_v60  ;;  %v6350_v44 = vmul.f32 %v1240_v25, %v5890_v0  ;;  %v6353_v11 = vmul.f32 %v1240_v25, %v5892_v47 }
 0x13b   : > { %v1236_v51 = vrot.slane %v9182_v10, %v9137_v26  ;;  %3746 = vmatprep.subr.bf16.mxu1 %v3192_v32  ;;  %v3191_v13 = vpack.c.bf16 %v2399_v8, %v2391_v31  ;;  %v1272_v61 = vrot.slane %v9188_v17, %v9135_v52  ;;  %v1268_v28 = vrot.slane %v9188_v17, %v9137_v26 }
 0x13c   : > { %9186 = vst [vmem:[#allocation76_spill] sm:$0xff] %v6350_v44  ;;  %9187 = vst [vmem:[#allocation77_spill] sm:$0xff] %v6353_v11  ;;  %v1304_v41 = vrot.slane %v5157_v50, %v9135_v52  ;;  %v2152_v14 = vmul.f32 %v9150_v12, %v6350_v44  ;;  %v2160_v25 = vmul.f32 %v9150_v12, %v6353_v11 }
 0x13d   : > { %v2408_v27 = vmul.f32 %v9151_v4, %v6350_v44  ;;  %v2416_v19 = vmul.f32 %v9151_v4, %v6353_v11  ;;  %3706 = vmatpush1.bf16.msra.mxu0 %v3063_v63  ;;  %v6372_v60 = vmul.f32 %v1236_v51, %v5905_v6  ;;  %v6375_v53 = vmul.f32 %v1236_v51, %v5907_v36 }
 0x13e   : > { %3747 = vmatpush1.bf16.msra.mxu1 %v3191_v13  ;;  %v6378_v52 = vmul.f32 %v1272_v61, %v5890_v0  ;;  %v3072_v32 = vpack.c.bf16 %v2160_v25, %v2152_v14  ;;  %v6381_v8 = vmul.f32 %v1272_v61, %v5892_v47  ;;  %v6384_v17 = vmul.f32 %v1268_v28, %v5905_v6 }
 0x13f   : > { %9189 = vst [vmem:[#allocation78_spill] sm:$0xff] %v6372_v60  ;;  %9190 = vst [vmem:[#allocation79_spill] sm:$0xff] %v6375_v53  ;;  %v3200_v31 = vpack.c.bf16 %v2416_v19, %v2408_v27  ;;  %v2151_v63 = vmul.f32 %v9153_v2, %v6372_v60  ;;  %v2159_v13 = vmul.f32 %v9153_v2, %v6375_v53 }
 0x140   : > { %v2407_v51 = vmul.f32 %v9154_v46, %v6372_v60  ;;  %v2415_v10 = vmul.f32 %v9154_v46, %v6375_v53  ;;  %3707 = vmatprep.subr.bf16.mxu0 %v3072_v32  ;;  %v2168_v61 = vmul.f32 %v9150_v12, %v6378_v52  ;;  %v2176_v14 = vmul.f32 %v9150_v12, %v6381_v8 }
 0x141   : > { %3748 = vmatprep.subr.bf16.mxu1 %v3200_v31  ;;  %v2424_v25 = vmul.f32 %v9151_v4, %v6378_v52  ;;  %v3071_v27 = vpack.c.bf16 %v2159_v13, %v2151_v63  ;;  %v2432_v11 = vmul.f32 %v9151_v4, %v6381_v8  ;;  %v6403_v60 = vmul.f32 %v1268_v28, %v5907_v36 }
 0x142   : > { %v3199_v19 = vpack.c.bf16 %v2415_v10, %v2407_v51  ;;  %v3080_v53 = vpack.c.bf16 %v2176_v14, %v2168_v61  ;;  %v2167_v32 = vmul.f32 %v9153_v2, %v6384_v17  ;;  %v2423_v31 = vmul.f32 %v9154_v46, %v6384_v17 }
 0x143   : > { %v6410_v44 = vmul.f32 %v1304_v41, %v5890_v0  ;;  %3708 = vmatpush1.bf16.msra.mxu0 %v3071_v27  ;;  %v3208_v63 = vpack.c.bf16 %v2432_v11, %v2424_v25  ;;  %v2175_v10 = vmul.f32 %v9153_v2, %v6403_v60  ;;  %v2431_v28 = vmul.f32 %v9154_v46, %v6403_v60  ;;  %v9191_v25 = vld [vmem:[#allocation25_spill] sm:$0xff] }
 0x144   : > { %3749 = vmatpush1.bf16.msra.mxu1 %v3199_v19  ;;  %3709 = vmatprep.subr.bf16.mxu0 %v3080_v53  ;;  %v6417_v13 = vmul.f32 %v1304_v41, %v5892_v47  ;;  %v1300_v61 = vrot.slane %v5157_v50, %v9137_v26  ;;  %v2456_v27 = vmul.f32 %v9191_v25, %v5918_v30 }
 0x145   : > { %v2184_v51 = vmul.f32 %v9150_v12, %v6410_v44  ;;  %v2440_v0 = vmul.f32 %v9151_v4, %v6410_v44  ;;  %3750 = vmatprep.subr.bf16.mxu1 %v3208_v63  ;;  %v3079_v11 = vpack.c.bf16 %v2175_v10, %v2167_v32  ;;  %v3207_v14 = vpack.c.bf16 %v2431_v28, %v2423_v31  ;;  %v9192_v31 = vld [vmem:[#allocation31_spill] sm:$0xff] }
 0x146   : > { %v2464_v53 = vmul.f32 %v9191_v25, %v5921_v29  ;;  %v2192_v47 = vmul.f32 %v9150_v12, %v6417_v13  ;;  %v2448_v41 = vmul.f32 %v9151_v4, %v6417_v13  ;;  %v6434_v19 = vmul.f32 %v1300_v61, %v5905_v6 }
 0x147   : > { %v6437_v26 = vmul.f32 %v1300_v61, %v5907_v36  ;;  %3710 = vmatpush1.bf16.msra.mxu0 %v3079_v11  ;;  %v2712_v63 = vmul.f32 %v9192_v31, %v5918_v30  ;;  %v2720_v10 = vmul.f32 %v9192_v31, %v5921_v29  ;;  %v9193_v30 = vld [vmem:[#allocation24_spill] sm:$0xff] }
 0x148   : > { %3751 = vmatpush1.bf16.msra.mxu1 %v3207_v14  ;;  %v3224_v32 = vpack.c.bf16 %v2464_v53, %v2456_v27  ;;  %v3088_v28 = vpack.c.bf16 %v2192_v47, %v2184_v51  ;;  %v3216_v12 = vpack.c.bf16 %v2448_v41, %v2440_v0  ;;  %v2183_v4 = vmul.f32 %v9153_v2, %v6434_v19  ;;  %v9194_v0 = vld [vmem:[#allocation30_spill] sm:$0xff] }
 0x149   : > { %v2191_v6 = vmul.f32 %v9153_v2, %v6437_v26  ;;  %v2439_v36 = vmul.f32 %v9154_v46, %v6434_v19  ;;  %v2447_v61 = vmul.f32 %v9154_v46, %v6437_v26  ;;  %v3352_v11 = vpack.c.bf16 %v2720_v10, %v2712_v63 }
 0x14a   : > { %v2455_v14 = vmul.f32 %v9193_v30, %v5933_v7  ;;  %3711 = vmatprep.subr.bf16.mxu0 %v3088_v28  ;;  %3752 = vmatprep.subr.bf16.mxu1 %v3216_v12  ;;  %v2463_v51 = vmul.f32 %v9193_v30, %v5936_v43  ;;  %v2711_v27 = vmul.f32 %v9194_v0, %v5933_v7 }
 0x14b   : > { %v3087_v29 = vpack.c.bf16 %v2191_v6, %v2183_v4  ;;  %v3215_v2 = vpack.c.bf16 %v2447_v61, %v2439_v36  ;;  %v2719_v53 = vmul.f32 %v9194_v0, %v5936_v43  ;;  %v2472_v46 = vmul.f32 %v9191_v25, %v5924_v59 }
 0x14c   : > { %v2480_v47 = vmul.f32 %v9191_v25, %v5927_v49  ;;  %v3223_v41 = vpack.c.bf16 %v2463_v51, %v2455_v14  ;;  %v2728_v63 = vmul.f32 %v9192_v31, %v5924_v59  ;;  %v2736_v10 = vmul.f32 %v9192_v31, %v5927_v49 }
 0x14d   : > { %3712 = vmatpush1.bf16.msra.mxu0 %v3087_v29  ;;  %v2471_v7 = vmul.f32 %v9193_v30, %v5939_v35  ;;  %3753 = vmatpush1.bf16.msra.mxu1 %v3215_v2  ;;  %v3351_v43 = vpack.c.bf16 %v2719_v53, %v2711_v27  ;;  %v2479_v12 = vmul.f32 %v9193_v30, %v5942_v21 }
 0x14e   : > { %3763 = vmatprep.subr.bf16.mxu0 %v3224_v32  ;;  %v3232_v28 = vpack.c.bf16 %v2480_v47, %v2472_v46  ;;  %3804 = vmatprep.subr.bf16.mxu1 %v3352_v11  ;;  %v3360_v4 = vpack.c.bf16 %v2736_v10, %v2728_v63  ;;  %v2727_v6 = vmul.f32 %v9194_v0, %v5939_v35 }
 0x14f   : > { %v2735_v59 = vmul.f32 %v9194_v0, %v5942_v21  ;;  %v2488_v49 = vmul.f32 %v9191_v25, %v5994_v40  ;;  %v3231_v36 = vpack.c.bf16 %v2479_v12, %v2471_v7  ;;  %v2496_v32 = vmul.f32 %v9191_v25, %v5998_v37 }
 0x150   : > { %3714 = vmatmul.mubr.bf16.vlgmr.msra.gmra.mrb[8].mxu0 %v5125_v48  ;;  %v2744_v61 = vmul.f32 %v9192_v31, %v5994_v40  ;;  %v2752_v11 = vmul.f32 %v9192_v31, %v5998_v37  ;;  %3755 = vmatmul.mubr.bf16.vlgmr.msra.gmra.mrb[8].mxu1 %v5137_v5  ;;  %v2487_v21 = vmul.f32 %v9193_v30, %v6002_v58 }
 0x151   : > { %3764 = vmatpush1.bf16.msra.mxu0 %v3223_v41  ;;  %v3359_v35 = vpack.c.bf16 %v2735_v59, %v2727_v6  ;;  %v2495_v14 = vmul.f32 %v9193_v30, %v6006_v45  ;;  %3805 = vmatpush1.bf16.msra.mxu1 %v3351_v43  ;;  %v3240_v29 = vpack.c.bf16 %v2496_v32, %v2488_v49 }
 0x152   : > { %3765 = vmatprep.subr.bf16.mxu0 %v3232_v28  ;;  %v3368_v51 = vpack.c.bf16 %v2752_v11, %v2744_v61  ;;  %v2743_v40 = vmul.f32 %v9194_v0, %v6002_v58  ;;  %3806 = vmatprep.subr.bf16.mxu1 %v3360_v4  ;;  %v2751_v37 = vmul.f32 %v9194_v0, %v6006_v45 }
 0x153   : > { %v3239_v27 = vpack.c.bf16 %v2495_v14, %v2487_v21  ;;  %v2504_v2 = vmul.f32 %v9191_v25, %v6011_v54  ;;  %v2512_v53 = vmul.f32 %v9191_v25, %v6031_v33  ;;  %v2760_v46 = vmul.f32 %v9192_v31, %v6011_v54  ;;  %3795 = vmatprep.mubr.bf16.mxu0 %v5798_v15 }
 0x154   : > { %v2768_v47 = vmul.f32 %v9192_v31, %v6031_v33  ;;  %v2503_v58 = vmul.f32 %v9193_v30, %v6040_v1  ;;  %v2511_v41 = vmul.f32 %v9193_v30, %v6048_v24  ;;  %v3367_v45 = vpack.c.bf16 %v2751_v37, %v2743_v40  ;;  %3836 = vmatprep.mubr.bf16.mxu1 %v5804_v18  ;;  %v9195_v40 = vld [vmem:[#allocation47_spill] sm:$0xff] }
 0x155   : > { %3766 = vmatpush1.bf16.msra.mxu0 %v3231_v36  ;;  %v3248_v63 = vpack.c.bf16 %v2512_v53, %v2504_v2  ;;  %v2759_v10 = vmul.f32 %v9194_v0, %v6040_v1  ;;  %v2767_v54 = vmul.f32 %v9194_v0, %v6048_v24  ;;  %3807 = vmatpush1.bf16.msra.mxu1 %v3359_v35 }
 0x156   : > { %3767 = vmatprep.subr.bf16.mxu0 %v3240_v29  ;;  %v3376_v33 = vpack.c.bf16 %v2768_v47, %v2760_v46  ;;  %v3247_v7 = vpack.c.bf16 %v2511_v41, %v2503_v58  ;;  %v2520_v43 = vmul.f32 %v9191_v25, %v6056_v56  ;;  %3808 = vmatprep.subr.bf16.mxu1 %v3368_v51  ;;  %v9197_v41 = vld [vmem:[#allocation49_spill] sm:$0xff] }
 0x157   : > { %v3375_v28 = vpack.c.bf16 %v2767_v54, %v2759_v10  ;;  %v2528_v12 = vmul.f32 %v9191_v25, %v6060_v22  ;;  %v2776_v4 = vmul.f32 %v9192_v31, %v6056_v56  ;;  %v2784_v1 = vmul.f32 %v9192_v31, %v6060_v22  ;;  %v9198_v10 = vld [vmem:[#allocation50_spill] sm:$0xff] }
 0x158   : > { %v2519_v24 = vmul.f32 %v9193_v30, %v6064_v3  ;;  %v2527_v6 = vmul.f32 %v9193_v30, %v6081_v20  ;;  %v2775_v59 = vmul.f32 %v9194_v0, %v6064_v3  ;;  %v2783_v49 = vmul.f32 %v9194_v0, %v6081_v20 }
 0x159   : > { %3768 = vmatpush1.bf16.msra.mxu0 %v3239_v27  ;;  %v3256_v36 = vpack.c.bf16 %v2528_v12, %v2520_v43  ;;  %v3384_v56 = vpack.c.bf16 %v2784_v1, %v2776_v4  ;;  %v2536_v22 = vmul.f32 %v9191_v25, %v6093_v55  ;;  %v2544_v32 = vmul.f32 %v9191_v25, %v6097_v34  ;;  %v9200_v1 = vld [vmem:[#allocation52_spill] sm:$0xff] }
 0x15a   : > { %3809 = vmatpush1.bf16.msra.mxu1 %v3367_v45  ;;  %3769 = vmatprep.subr.bf16.mxu0 %v3248_v63  ;;  %v3255_v61 = vpack.c.bf16 %v2527_v6, %v2519_v24  ;;  %v3383_v11 = vpack.c.bf16 %v2783_v49, %v2775_v59  ;;  %v2792_v3 = vmul.f32 %v9192_v31, %v6093_v55  ;;  %v9201_v6 = vld [vmem:[#allocation53_spill] sm:$0xff] }
 0x15b   : > { %3810 = vmatprep.subr.bf16.mxu1 %v3376_v33  ;;  %v3264_v20 = vpack.c.bf16 %v2544_v32, %v2536_v22  ;;  %v2800_v35 = vmul.f32 %v9192_v31, %v6097_v34  ;;  %v2535_v21 = vmul.f32 %v9193_v30, %v6101_v42  ;;  %v2543_v14 = vmul.f32 %v9193_v30, %v6105_v39  ;;  %v9199_v33 = vld [vmem:[#allocation51_spill] sm:$0xff] }
 0x15c   : > { %v2791_v29 = vmul.f32 %v9194_v0, %v6101_v42  ;;  %v2799_v51 = vmul.f32 %v9194_v0, %v6105_v39  ;;  %v2552_v55 = vmul.f32 %v9191_v25, %v6109_v38  ;;  %v2560_v27 = vmul.f32 %v9191_v25, %v9195_v40  ;;  %v9196_v39 = vld [vmem:[#allocation48_spill] sm:$0xff] }
 0x15d   : > { %3770 = vmatpush1.bf16.msra.mxu0 %v3247_v7  ;;  %v3392_v34 = vpack.c.bf16 %v2800_v35, %v2792_v3  ;;  %v3263_v37 = vpack.c.bf16 %v2543_v14, %v2535_v21  ;;  %v2808_v2 = vmul.f32 %v9192_v31, %v6109_v38  ;;  %v2816_v53 = vmul.f32 %v9192_v31, %v9195_v40  ;;  %v9203_v35 = vld [vmem:[#allocation55_spill] sm:$0xff]  ;;  %v9204_v14 = vld [vmem:[#allocation56_spill] sm:$0xff] }
 0x15e   : > { %3811 = vmatpush1.bf16.msra.mxu1 %v3375_v28  ;;  %3771 = vmatprep.subr.bf16.mxu0 %v3256_v36  ;;  %v3391_v42 = vpack.c.bf16 %v2799_v51, %v2791_v29  ;;  %v3272_v46 = vpack.c.bf16 %v2560_v27, %v2552_v55  ;;  %v2551_v47 = vmul.f32 %v9193_v30, %v9196_v39  ;;  %v9205_v51 = vld [vmem:[#allocation57_spill] sm:$0xff] }
 0x15f   : > { %3812 = vmatprep.subr.bf16.mxu1 %v3384_v56  ;;  %v3400_v58 = vpack.c.bf16 %v2816_v53, %v2808_v2  ;;  %v2559_v45 = vmul.f32 %v9193_v30, %v9197_v41  ;;  %v2807_v63 = vmul.f32 %v9194_v0, %v9196_v39  ;;  %v2815_v38 = vmul.f32 %v9194_v0, %v9197_v41 }
 0x160   : > { %v2568_v54 = vmul.f32 %v9191_v25, %v9198_v10  ;;  %v2576_v7 = vmul.f32 %v9191_v25, %v9199_v33  ;;  %v2824_v43 = vmul.f32 %v9192_v31, %v9198_v10  ;;  %v2832_v28 = vmul.f32 %v9192_v31, %v9199_v33 }
 0x161   : > { %3772 = vmatpush1.bf16.msra.mxu0 %v3255_v61  ;;  %v3271_v12 = vpack.c.bf16 %v2559_v45, %v2551_v47  ;;  %v3399_v4 = vpack.c.bf16 %v2815_v38, %v2807_v63  ;;  %v2567_v24 = vmul.f32 %v9193_v30, %v9200_v1  ;;  %v2575_v59 = vmul.f32 %v9193_v30, %v9201_v6  ;;  %v9202_v61 = vld [vmem:[#allocation54_spill] sm:$0xff] }
 0x162   : > { %3813 = vmatpush1.bf16.msra.mxu1 %v3383_v11  ;;  %3773 = vmatprep.subr.bf16.mxu0 %v3264_v20  ;;  %v3280_v49 = vpack.c.bf16 %v2576_v7, %v2568_v54  ;;  %v3408_v36 = vpack.c.bf16 %v2832_v28, %v2824_v43  ;;  %v2823_v56 = vmul.f32 %v9194_v0, %v9200_v1  ;;  %v9206_v47 = vld [vmem:[#allocation58_spill] sm:$0xff]  ;;  %v9208_v54 = vld [vmem:[#allocation67_spill] sm:$0xff]  ;;  %v9210_v1 = vld [vmem:[#allocation69_spill] sm:$0xff] }
 0x163   : > { %3814 = vmatprep.subr.bf16.mxu1 %v3392_v34  ;;  %v3279_v22 = vpack.c.bf16 %v2575_v59, %v2567_v24  ;;  %v2831_v32 = vmul.f32 %v9194_v0, %v9201_v6  ;;  %v2584_v3 = vmul.f32 %v9191_v25, %v9202_v61  ;;  %v2592_v21 = vmul.f32 %v9191_v25, %v9203_v35  ;;  %v9207_v63 = vld [vmem:[#allocation66_spill] sm:$0xff] }
 0x164   : > { %v2840_v11 = vmul.f32 %v9192_v31, %v9202_v61  ;;  %v2848_v20 = vmul.f32 %v9192_v31, %v9203_v35  ;;  %v2583_v29 = vmul.f32 %v9193_v30, %v9204_v14  ;;  %v2591_v55 = vmul.f32 %v9193_v30, %v9205_v51  ;;  %v9211_v6 = vld [vmem:[#allocation70_spill] sm:$0xff]  ;;  %v9212_v35 = vld [vmem:[#allocation71_spill] sm:$0xff] }
 0x165   : > { %3774 = vmatpush1.bf16.msra.mxu0 %v3263_v37  ;;  %v3407_v40 = vpack.c.bf16 %v2831_v32, %v2823_v56  ;;  %v3288_v27 = vpack.c.bf16 %v2592_v21, %v2584_v3  ;;  %v2839_v34 = vmul.f32 %v9194_v0, %v9204_v14  ;;  %v2847_v2 = vmul.f32 %v9194_v0, %v9205_v51 }
 0x166   : > { %3815 = vmatpush1.bf16.msra.mxu1 %v3391_v42  ;;  %3775 = vmatprep.subr.bf16.mxu0 %v3272_v46  ;;  %v3416_v53 = vpack.c.bf16 %v2848_v20, %v2840_v11  ;;  %v3287_v39 = vpack.c.bf16 %v2591_v55, %v2583_v29  ;;  %v2600_v41 = vmul.f32 %v9191_v25, %v9206_v47  ;;  %v9209_v46 = vld [vmem:[#allocation68_spill] sm:$0xff]  ;;  %v9215_v29 = vld [vmem:[#allocation74_spill] sm:$0xff] }
 0x167   : > { %3816 = vmatprep.subr.bf16.mxu1 %v3400_v58  ;;  %v3415_v45 = vpack.c.bf16 %v2847_v2, %v2839_v34  ;;  %v2608_v37 = vmul.f32 %v9191_v25, %v9207_v63  ;;  %v2856_v38 = vmul.f32 %v9192_v31, %v9206_v47  ;;  %v2864_v10 = vmul.f32 %v9192_v31, %v9207_v63  ;;  %v9213_v11 = vld [vmem:[#allocation72_spill] sm:$0xff] }
 0x168   : > { %v2599_v42 = vmul.f32 %v9193_v30, %v9208_v54  ;;  %v2607_v33 = vmul.f32 %v9193_v30, %v9209_v46  ;;  %v6605_v7 = vmul.f32 %v9194_v0, %v9208_v54  ;;  %v6609_v58 = vmul.f32 %v9194_v0, %v9209_v46 }
 0x169   : > { %3776 = vmatpush1.bf16.msra.mxu0 %v3271_v12  ;;  %v3296_v43 = vpack.c.bf16 %v2608_v37, %v2600_v41  ;;  %v3424_v28 = vpack.c.bf16 %v2864_v10, %v2856_v38  ;;  %v2616_v24 = vmul.f32 %v9191_v25, %v9210_v1  ;;  %v2624_v59 = vmul.f32 %v9191_v25, %v9211_v6 }
 0x16a   : > { %3817 = vmatpush1.bf16.msra.mxu1 %v3399_v4  ;;  %3777 = vmatprep.subr.bf16.mxu0 %v3280_v49  ;;  %v3295_v56 = vpack.c.bf16 %v2607_v33, %v2599_v42  ;;  %v3423_v32 = vpack.c.bf16 %v6609_v58, %v6605_v7  ;;  %v2872_v61 = vmul.f32 %v9192_v31, %v9210_v1 }
 0x16b   : > { %3818 = vmatprep.subr.bf16.mxu1 %v3408_v36  ;;  %v3304_v3 = vpack.c.bf16 %v2624_v59, %v2616_v24  ;;  %v2880_v12 = vmul.f32 %v9192_v31, %v9211_v6  ;;  %v6623_v21 = vmul.f32 %v9193_v30, %v9212_v35  ;;  %v2623_v4 = vmul.f32 %v9193_v30, %v9213_v11  ;;  %v9214_v36 = vld [vmem:[#allocation73_spill] sm:$0xff] }
 0x16c   : > { %v6629_v49 = vmul.f32 %v9194_v0, %v9212_v35  ;;  %v6633_v20 = vmul.f32 %v9194_v0, %v9213_v11  ;;  %v6637_v14 = vmul.f32 %v9191_v25, %v9214_v36  ;;  %v6641_v51 = vmul.f32 %v9191_v25, %v9215_v29  ;;  %v9218_v6 = vld [vmem:[#allocation77_spill] sm:$0xff] }
 0x16d   : > { %3778 = vmatpush1.bf16.msra.mxu0 %v3279_v22  ;;  %v3432_v55 = vpack.c.bf16 %v2880_v12, %v2872_v61  ;;  %v3303_v34 = vpack.c.bf16 %v2623_v4, %v6623_v21  ;;  %v6646_v2 = vmul.f32 %v9192_v31, %v9214_v36  ;;  %v6650_v47 = vmul.f32 %v9192_v31, %v9215_v29  ;;  %v9216_v22 = vld [vmem:[#allocation75_spill] sm:$0xff]  ;;  %v9219_v61 = vld [vmem:[#allocation78_spill] sm:$0xff] }
 0x16e   : > { %3819 = vmatpush1.bf16.msra.mxu1 %v3407_v40  ;;  %3779 = vmatprep.subr.bf16.mxu0 %v3288_v27  ;;  %v3431_v41 = vpack.c.bf16 %v6633_v20, %v6629_v49  ;;  %v3312_v63 = vpack.c.bf16 %v6641_v51, %v6637_v14  ;;  %v6658_v37 = vmul.f32 %v9193_v30, %v9216_v22  ;;  %v9220_v12 = vld [vmem:[#allocation79_spill] sm:$0xff] }
 0x16f   : > { %3820 = vmatprep.subr.bf16.mxu1 %v3416_v53  ;;  %v3440_v38 = vpack.c.bf16 %v6650_v47, %v6646_v2  ;;  %v6664_v10 = vmul.f32 %v9193_v30, %v6303_v9  ;;  %v6668_v40 = vmul.f32 %v9194_v0, %v9216_v22  ;;  %v6672_v27 = vmul.f32 %v9194_v0, %v6303_v9 }
 0x170   : > { %v6676_v54 = vmul.f32 %v9191_v25, %v6306_v23  ;;  %v6680_v53 = vmul.f32 %v9191_v25, %v6309_v57  ;;  %v6684_v42 = vmul.f32 %v9192_v31, %v6306_v23  ;;  %v6688_v46 = vmul.f32 %v9192_v31, %v6309_v57 }
 0x171   : > { %3780 = vmatpush1.bf16.msra.mxu0 %v3287_v39  ;;  %v3311_v9 = vpack.c.bf16 %v6664_v10, %v6658_v37  ;;  %v3439_v33 = vpack.c.bf16 %v6672_v27, %v6668_v40  ;;  %v6696_v7 = vmul.f32 %v9193_v30, %v6312_v62  ;;  %v6700_v58 = vmul.f32 %v9193_v30, %v6315_v16  ;;  %v4370_v40 = vld [vmem:[%s4465_s22] ss:$4 sm:$0xff] }
 0x172   : > { %3821 = vmatpush1.bf16.msra.mxu1 %v3415_v45  ;;  %3781 = vmatprep.subr.bf16.mxu0 %v3296_v43  ;;  %v3320_v23 = vpack.c.bf16 %v6680_v53, %v6676_v54  ;;  %v3448_v57 = vpack.c.bf16 %v6688_v46, %v6684_v42  ;;  %v6708_v39 = vmul.f32 %v9194_v0, %v6312_v62  ;;  %v9217_v45 = vld [vmem:[#allocation76_spill] sm:$0xff]  ;;  %v9221_v27 = vld [vmem:[#allocation7_spill] sm:$0xff]  ;;  %v9223_v42 = vld [vmem:[#allocation5_spill] sm:$0xff] }
 0x173   : > { %3822 = vmatprep.subr.bf16.mxu1 %v3424_v28  ;;  %v3319_v1 = vpack.c.bf16 %v6700_v58, %v6696_v7  ;;  %v6714_v24 = vmul.f32 %v9194_v0, %v6315_v16  ;;  %v6718_v43 = vmul.f32 %v9191_v25, %v9217_v45  ;;  %v6722_v59 = vmul.f32 %v9191_v25, %v9218_v6 }
 0x174   : > { %v6726_v62 = vmul.f32 %v9192_v31, %v9217_v45  ;;  %v6730_v28 = vmul.f32 %v9192_v31, %v9218_v6  ;;  %v6734_v16 = vmul.f32 %v9193_v30, %v9219_v61  ;;  %v6738_v35 = vmul.f32 %v9193_v30, %v9220_v12  ;;  %v9226_v6 = vld [vmem:[#allocation36_spill] sm:$0xff] }
 0x175   : > { %3782 = vmatpush1.bf16.msra.mxu0 %v3295_v56  ;;  %v3447_v21 = vpack.c.bf16 %v6714_v24, %v6708_v39  ;;  %v3328_v11 = vpack.c.bf16 %v6722_v59, %v6718_v43  ;;  %v6746_v4 = vmul.f32 %v9194_v0, %v9219_v61  ;;  %v6750_v49 = vmul.f32 %v9194_v0, %v9220_v12  ;;  %v9225_v24 = vld [vmem:[#allocation6_spill] sm:$0xff] }
 0x176   : > { %3823 = vmatpush1.bf16.msra.mxu1 %v3423_v32  ;;  %3783 = vmatprep.subr.bf16.mxu0 %v3304_v3  ;;  %v3456_v20 = vpack.c.bf16 %v6730_v28, %v6726_v62  ;;  %v3327_v56 = vpack.c.bf16 %v6738_v35, %v6734_v16  ;;  %v6758_v36 = vmul.f32 %v9191_v25, %v6378_v52  ;;  %v9227_v28 = vld [vmem:[#allocation11_spill] sm:$0xff] }
 0x177   : > { %3824 = vmatprep.subr.bf16.mxu1 %v3432_v55  ;;  %v3455_v14 = vpack.c.bf16 %v6750_v49, %v6746_v4  ;;  %v6764_v29 = vmul.f32 %v9191_v25, %v6381_v8  ;;  %v6768_v32 = vmul.f32 %v9192_v31, %v6378_v52  ;;  %v6772_v3 = vmul.f32 %v9192_v31, %v6381_v8 }
 0x178   : > { %v6776_v51 = vmul.f32 %v9193_v30, %v6384_v17  ;;  %v6780_v55 = vmul.f32 %v9193_v30, %v6403_v60  ;;  %v6784_v2 = vmul.f32 %v9194_v0, %v6384_v17  ;;  %v6788_v52 = vmul.f32 %v9194_v0, %v6403_v60 }
 0x179   : > { %3784 = vmatpush1.bf16.msra.mxu0 %v3303_v34  ;;  %v3336_v8 = vpack.c.bf16 %v6764_v29, %v6758_v36  ;;  %v3464_v47 = vpack.c.bf16 %v6772_v3, %v6768_v32  ;;  %v6796_v22 = vmul.f32 %v9191_v25, %v6410_v44  ;;  %v6800_v17 = vmul.f32 %v9191_v25, %v6417_v13  ;;  %v9233_v29 = vld [vmem:[#allocation15_spill] sm:$0xff]  ;;  %v9234_v32 = vld [vmem:[#allocation21_spill] sm:$0xff] }
 0x17a   : > { %3825 = vmatpush1.bf16.msra.mxu1 %v3431_v41  ;;  %3785 = vmatprep.subr.bf16.mxu0 %v3312_v63  ;;  %v3335_v60 = vpack.c.bf16 %v6780_v55, %v6776_v51  ;;  %v6808_v37 = vmul.f32 %v9192_v31, %v6410_v44  ;;  %v6814_v25 = vmul.f32 %v9192_v31, %v6417_v13  ;;  %v9222_v31 = vld [vmem:[#allocation10_spill] sm:$0xff] }
 0x17b   : > { %3826 = vmatprep.subr.bf16.mxu1 %v3440_v38  ;;  %v6818_v41 = vmul.f32 %v9193_v30, %v6434_v19  ;;  %v6822_v63 = vmul.f32 %v9193_v30, %v6437_v26  ;;  %v6826_v44 = vmul.f32 %v9194_v0, %v6434_v19  ;;  %v6830_v38 = vmul.f32 %v9194_v0, %v6437_v26  ;;  %v9224_v0 = vld [vmem:[#allocation2_spill] sm:$0xff] }
 0x17c   : > { %v440_v13 = vrot.slane %v4370_v40, %v9221_v27  ;;  %v832_v54 = vrot.slane %v9222_v31, %v9221_v27  ;;  %v436_v19 = vrot.slane %v4370_v40, %v9223_v42  ;;  %v828_v46 = vrot.slane %v9222_v31, %v9223_v42  ;;  %v9229_v30 = vld [vmem:[#allocation42_spill] sm:$0xff] }
 0x17d   : > { %3786 = vmatpush1.bf16.msra.mxu0 %v3311_v9  ;;  %v864_v59 = vrot.slane %v9226_v6, %v9221_v27  ;;  %v860_v62 = vrot.slane %v9226_v6, %v9223_v42  ;;  %v6855_v61 = vrot.slane %v9227_v28, %v9221_v27  ;;  %v6859_v12 = vrot.slane %v9227_v28, %v9223_v42 }
 0x17e   : > { %3827 = vmatpush1.bf16.msra.mxu1 %v3439_v33  ;;  %3787 = vmatprep.subr.bf16.mxu0 %v3320_v23  ;;  %v462_v39 = vsub.f32 %v9224_v0, %v440_v13  ;;  %v470_v9 = vsub.f32 %v9225_v24, %v440_v13  ;;  %v461_v45 = vsub.f32 %v9224_v0, %v436_v19  ;;  %v9228_v13 = vld [vmem:[#allocation38_spill] sm:$0xff] }
 0x17f   : > { %3828 = vmatprep.subr.bf16.mxu1 %v3448_v57  ;;  %v469_v43 = vsub.f32 %v9225_v24, %v436_v19  ;;  %v6866_v19 = vrot.slane %v9228_v13, %v9221_v27  ;;  %v6874_v53 = vrot.slane %v9229_v30, %v9221_v27  ;;  %v6878_v7 = vrot.slane %v9229_v30, %v9223_v42 }
 0x180   : > { %v478_v33 = vand.u32 2147483647, %v462_v39  ;;  %v486_v23 = vand.u32 2147483647, %v470_v9  ;;  %v477_v57 = vand.u32 2147483647, %v461_v45  ;;  %v6870_v39 = vrot.slane %v9228_v13, %v9223_v42 }
 0x181   : > { %3788 = vmatpush1.bf16.msra.mxu0 %v3319_v1  ;;  %v485_v40 = vand.u32 2147483647, %v469_v43  ;;  %v9230_v45 = vld [vmem:[#allocation43_spill] sm:$0xff]  ;;  %v9238_v51 = vpack.c.bf16 %v6800_v17, %v6796_v22  ;;  %v9239_v13 = vpack.c.bf16 %v6814_v25, %v6808_v37  ;;  %v9240_v25 = vpack.c.bf16 %v6822_v63, %v6818_v41 }
 0x182   : > { %3829 = vmatpush1.bf16.msra.mxu1 %v3447_v21  ;;  %3789 = vmatprep.subr.bf16.mxu0 %v3328_v11  ;;  %v494_v9 = vsub.f32 1.0, %v478_v33  ;;  %v502_v26 = vsub.f32 1.0, %v486_v23  ;;  %v493_v58 = vsub.f32 1.0, %v477_v57  ;;  %v6882_v43 = vrot.slane %v9230_v45, %v9221_v27  ;;  %v9231_v23 = vld [vmem:[#allocation44_spill] sm:$0xff] }
 0x183   : > { %3830 = vmatprep.subr.bf16.mxu1 %v3456_v20  ;;  %v501_v1 = vsub.f32 1.0, %v485_v40  ;;  %v6886_v21 = vrot.slane %v9230_v45, %v9223_v42  ;;  %v6894_v10 = vrot.slane %v9231_v23, %v9221_v27  ;;  %v6898_v20 = vrot.slane %v9231_v23, %v9223_v42 }
 0x184   : > { %v6888_v11 = vmax.f32 %v494_v9, 0.0  ;;  %v6890_v33 = vmax.f32 %v502_v26, 0.0  ;;  %v6903_v57 = vmax.f32 %v493_v58, 0.0  ;;  %v9232_v9 = vld [vmem:[#allocation45_spill] sm:$0xff]  ;;  %v9237_v45 = vpack.c.bf16 %v6788_v52, %v6784_v2 }
 0x185   : > { %3790 = vmatpush1.bf16.msra.mxu0 %v3327_v56  ;;  %v6905_v40 = vmax.f32 %v501_v1, 0.0  ;;  %v6909_v26 = vrot.slane %v9232_v9, %v9221_v27  ;;  %v6913_v34 = vrot.slane %v9232_v9, %v9223_v42  ;;  %v9236_v1 = vld [vmem:[#allocation20_spill] sm:$0xff] }
 0x186   : > { %3831 = vmatpush1.bf16.msra.mxu1 %v3455_v14  ;;  %3791 = vmatprep.subr.bf16.mxu0 %v3336_v8  ;;  %v6922_v16 = vmul.f32 %v832_v54, %v6888_v11  ;;  %v6925_v35 = vmul.f32 %v832_v54, %v6890_v33  ;;  %v6928_v56 = vmul.f32 %v864_v59, %v6888_v11 }
 0x187   : > { %3832 = vmatprep.subr.bf16.mxu1 %v3464_v47  ;;  %v6934_v4 = vmul.f32 %v828_v46, %v6903_v57  ;;  %v6937_v49 = vmul.f32 %v828_v46, %v6905_v40  ;;  %v6940_v36 = vmul.f32 %v864_v59, %v6890_v33  ;;  %v6943_v14 = vmul.f32 %v860_v62, %v6903_v57  ;;  %v9235_v46 = vld [vmem:[#allocation14_spill] sm:$0xff] }
 0x188   : > { %v1946_v8 = vmul.f32 %v9233_v29, %v6922_v16  ;;  %v1954_v54 = vmul.f32 %v9233_v29, %v6925_v35  ;;  %v2202_v3 = vmul.f32 %v9234_v32, %v6922_v16  ;;  %v2210_v47 = vmul.f32 %v9234_v32, %v6925_v35 }
 0x189   : > { %3792 = vmatpush1.bf16.msra.mxu0 %v3335_v60  ;;  %v1945_v59 = vmul.f32 %v9235_v46, %v6934_v4  ;;  %v1953_v58 = vmul.f32 %v9235_v46, %v6937_v49  ;;  %v2201_v9 = vmul.f32 %v9236_v1, %v6934_v4  ;;  %v2209_v23 = vmul.f32 %v9236_v1, %v6937_v49 }
 0x18a   : > { %3833 = vmatpush1.bf16.msra.mxu1 %v9237_v45  ;;  %3793 = vmatprep.subr.bf16.mxu0 %v9238_v51  ;;  %v2970_v55 = vpack.c.bf16 %v1954_v54, %v1946_v8  ;;  %v3098_v60 = vpack.c.bf16 %v2210_v47, %v2202_v3  ;;  %v1962_v30 = vmul.f32 %v9233_v29, %v6928_v56 }
 0x18b   : > { %3834 = vmatprep.subr.bf16.mxu1 %v9239_v13  ;;  %v2969_v28 = vpack.c.bf16 %v1953_v58, %v1945_v59  ;;  %v3097_v24 = vpack.c.bf16 %v2209_v23, %v2201_v9  ;;  %v1970_v0 = vmul.f32 %v9233_v29, %v6940_v36  ;;  %v2218_v2 = vmul.f32 %v9234_v32, %v6928_v56  ;;  %v9243_v58 = vld [vmem:[#allocation40_spill] sm:$0xff] }
 0x18c   : > { %v2226_v52 = vmul.f32 %v9234_v32, %v6940_v36  ;;  %v6982_v22 = vmul.f32 %v860_v62, %v6905_v40  ;;  %v1961_v17 = vmul.f32 %v9235_v46, %v6943_v14  ;;  %v2217_v37 = vmul.f32 %v9236_v1, %v6943_v14 }
 0x18d   : > { %3794 = vmatpush1.bf16.msra.mxu0 %v9240_v25  ;;  %v2978_v13 = vpack.c.bf16 %v1970_v0, %v1962_v30  ;;  %v6993_v45 = vmul.f32 %v6855_v61, %v6888_v11  ;;  %v6997_v23 = vmul.f32 %v6855_v61, %v6890_v33  ;;  %v7001_v62 = vmul.f32 %v6859_v12, %v6903_v57 }
 0x18e   : > { %v9241_v9 = vpack.c.bf16 %v6830_v38, %v6826_v44  ;;  %3845 = vmatprep.subr.bf16.mxu0 %v2970_v55  ;;  %v3106_v41 = vpack.c.bf16 %v2226_v52, %v2218_v2  ;;  %v1969_v63 = vmul.f32 %v9235_v46, %v6982_v22  ;;  %v2225_v30 = vmul.f32 %v9236_v1, %v6982_v22  ;;  %v9242_v38 = vld [vmem:[#allocation39_spill] sm:$0xff] }
 0x18f   : > { %v1978_v0 = vmul.f32 %v9233_v29, %v6993_v45  ;;  %v1986_v61 = vmul.f32 %v9233_v29, %v6997_v23  ;;  %v2234_v8 = vmul.f32 %v9234_v32, %v6993_v45  ;;  %v2242_v44 = vmul.f32 %v9234_v32, %v6997_v23 }
 0x190   : > { %3835 = vmatpush1.bf16.msra.mxu1 %v9241_v9  ;;  %3796 = vmatmul.mubr.bf16.vlgmr.msra.gmra.mrb[12].mxu0 %v9242_v38  ;;  %v2977_v54 = vpack.c.bf16 %v1969_v63, %v1961_v17  ;;  %v3105_v3 = vpack.c.bf16 %v2225_v30, %v2217_v37  ;;  %v7021_v47 = vmul.f32 %v6859_v12, %v6905_v40 }
 0x191   : > { %3886 = vmatprep.subr.bf16.mxu1 %v3098_v60  ;;  %v1977_v59 = vmul.f32 %v9235_v46, %v7001_v62  ;;  %3846 = vmatpush1.bf16.msra.mxu0 %v2969_v28  ;;  %v2986_v51 = vpack.c.bf16 %v1986_v61, %v1978_v0  ;;  %v3114_v55 = vpack.c.bf16 %v2242_v44, %v2234_v8 }
 0x192   : > { %v2233_v60 = vmul.f32 %v9236_v1, %v7001_v62  ;;  %3847 = vmatprep.subr.bf16.mxu0 %v2978_v13  ;;  %v1985_v2 = vmul.f32 %v9235_v46, %v7021_v47  ;;  %v2241_v12 = vmul.f32 %v9236_v1, %v7021_v47  ;;  %v7034_v52 = vmul.f32 %v6866_v19, %v6888_v11 }
 0x193   : > { %3837 = vmatmul.mubr.bf16.vlgmr.msra.gmra.mrb[12].mxu1 %v9243_v58  ;;  %v7038_v28 = vmul.f32 %v6866_v19, %v6890_v33  ;;  %v7042_v17 = vmul.f32 %v6870_v39, %v6903_v57  ;;  %v7050_v37 = vmul.f32 %v6874_v53, %v6888_v11  ;;  %v7071_v44 = vmul.f32 %v6874_v53, %v6890_v33  ;;  %v9245_v58 = vld [vmem:[#allocation46_spill] sm:$0xff] }
 0x194   : > { %3887 = vmatpush1.bf16.msra.mxu1 %v3097_v24  ;;  %v7046_v24 = vmul.f32 %v6870_v39, %v6905_v40  ;;  %v2985_v25 = vpack.c.bf16 %v1985_v2, %v1977_v59  ;;  %v3113_v13 = vpack.c.bf16 %v2241_v12, %v2233_v60  ;;  %v1994_v9 = vmul.f32 %v9233_v29, %v7034_v52 }
 0x195   : > { %3888 = vmatprep.subr.bf16.mxu1 %v3106_v41  ;;  %v2250_v19 = vmul.f32 %v9234_v32, %v7034_v52  ;;  %v9244_v41 = vld [vmem:[#allocation41_spill] sm:$0xff]  ;;  %3848 = vmatpush1.bf16.msra.mxu0 %v2977_v54  ;;  %v2002_v63 = vmul.f32 %v9233_v29, %v7038_v28  ;;  %v2258_v39 = vmul.f32 %v9234_v32, %v7038_v28 }
 0x196   : > { %3877 = vmatprep.mubr.bf16.mxu0 %v9244_v41  ;;  %v1993_v30 = vmul.f32 %v9235_v46, %v7042_v17  ;;  %v2001_v0 = vmul.f32 %v9235_v46, %v7046_v24  ;;  %3849 = vmatprep.subr.bf16.mxu0 %v2986_v51  ;;  %v2249_v61 = vmul.f32 %v9236_v1, %v7042_v17 }
 0x197   : > { %v2257_v8 = vmul.f32 %v9236_v1, %v7046_v24  ;;  %v2994_v54 = vpack.c.bf16 %v2002_v63, %v1994_v9  ;;  %v3122_v59 = vpack.c.bf16 %v2258_v39, %v2250_v19  ;;  %v2010_v2 = vmul.f32 %v9233_v29, %v7050_v37  ;;  %3918 = vmatprep.mubr.bf16.mxu1 %v9245_v58 }
 0x198   : > { %3889 = vmatpush1.bf16.msra.mxu1 %v3105_v3  ;;  %v2993_v60 = vpack.c.bf16 %v2001_v0, %v1993_v30  ;;  %v2018_v3 = vmul.f32 %v9233_v29, %v7071_v44  ;;  %v2266_v51 = vmul.f32 %v9234_v32, %v7050_v37  ;;  %v2274_v41 = vmul.f32 %v9234_v32, %v7071_v44 }
 0x199   : > { %3890 = vmatprep.subr.bf16.mxu1 %v3114_v55  ;;  %v3121_v12 = vpack.c.bf16 %v2257_v8, %v2249_v61  ;;  %3850 = vmatpush1.bf16.msra.mxu0 %v2985_v25  ;;  %v7084_v53 = vmul.f32 %v6878_v7, %v6903_v57  ;;  %v7088_v55 = vmul.f32 %v6878_v7, %v6905_v40 }
 0x19a   : > { %v7092_v9 = vmul.f32 %v6882_v43, %v6888_v11  ;;  %v7096_v19 = vmul.f32 %v6882_v43, %v6890_v33  ;;  %3851 = vmatprep.subr.bf16.mxu0 %v2994_v54  ;;  %v3002_v63 = vpack.c.bf16 %v2018_v3, %v2010_v2  ;;  %v3130_v25 = vpack.c.bf16 %v2274_v41, %v2266_v51  ;;  %v3592_v3 = vpop.f32.mrb[0].mxu1 }
 0x19b   : > { %v7100_v39 = vmul.f32 %v6886_v21, %v6903_v57  ;;  %v2009_v7 = vmul.f32 %v9235_v46, %v7084_v53  ;;  %v2017_v30 = vmul.f32 %v9235_v46, %v7088_v55  ;;  %v2265_v0 = vmul.f32 %v9236_v1, %v7084_v53  ;;  %v3594_v31 = vpop.f32.mrb[1].mxu1 }
 0x19c   : > { %9246 = vst [vmem:[#allocation4_spill] sm:$0xff] %v7092_v9  ;;  %9247 = vst [vmem:[#allocation3_spill] sm:$0xff] %v7096_v19  ;;  %3891 = vmatpush1.bf16.msra.mxu1 %v3113_v13  ;;  %v2273_v43 = vmul.f32 %v9236_v1, %v7088_v55  ;;  %v3551_v13 = vpop.f32.mrb[0].mxu0  ;;  %v2026_v41 = vmul.f32 %v9233_v29, %v7092_v9  ;;  %v2034_v61 = vmul.f32 %v9233_v29, %v7096_v19 }
 0x19d   : > { %3892 = vmatprep.subr.bf16.mxu1 %v3122_v59  ;;  %v2282_v8 = vmul.f32 %v9234_v32, %v7092_v9  ;;  %v2290_v54 = vmul.f32 %v9234_v32, %v7096_v19  ;;  %3852 = vmatpush1.bf16.msra.mxu0 %v2993_v60  ;;  %v3001_v59 = vpack.c.bf16 %v2017_v30, %v2009_v7  ;;  %v3553_v51 = vpop.f32.mrb[1].mxu0  ;;  %v3596_v7 = vpop.f32.mrb[2].mxu1 }
 0x19e   : > { %v3129_v2 = vpack.c.bf16 %v2273_v43, %v2265_v0  ;;  %v7120_v58 = vmul.f32 %v6886_v21, %v6905_v40  ;;  %v2025_v38 = vmul.f32 %v9235_v46, %v7100_v39  ;;  %3853 = vmatprep.subr.bf16.mxu0 %v3002_v63  ;;  %v7124_v6 = vadd.f32 %v3592_v3, %v3551_v13  ;;  %v3555_v19 = vpop.f32.mrb[2].mxu0  ;;  %v3597_v0 = vpop.f32.mrb[3].mxu1 }
 0x19f   : > { %v3010_v9 = vpack.c.bf16 %v2034_v61, %v2026_v41  ;;  %v3138_v18 = vpack.c.bf16 %v2290_v54, %v2282_v8  ;;  %v7126_v60 = vadd.f32 %v3594_v31, %v3553_v51  ;;  %v2281_v21 = vmul.f32 %v9236_v1, %v7100_v39  ;;  %v3556_v63 = vpop.f32.mrb[3].mxu0 }
 0x1a0   : > { %3893 = vmatpush1.bf16.msra.mxu1 %v3121_v12  ;;  %v2033_v30 = vmul.f32 %v9235_v46, %v7120_v58  ;;  %v2289_v12 = vmul.f32 %v9236_v1, %v7120_v58  ;;  %v7136_v43 = vmul.f32 %v6894_v10, %v6888_v11  ;;  %v7140_v31 = vmul.f32 %v6894_v10, %v6890_v33 }
 0x1a1   : > { %3894 = vmatprep.subr.bf16.mxu1 %v3130_v25  ;;  %v7144_v19 = vmul.f32 %v6898_v20, %v6903_v57  ;;  %v7148_v25 = vmul.f32 %v6898_v20, %v6905_v40  ;;  %3854 = vmatpush1.bf16.msra.mxu0 %v3001_v59  ;;  %v7152_v61 = vmul.f32 %v6909_v26, %v6888_v11 }
 0x1a2   : > { %v3009_v13 = vpack.c.bf16 %v2033_v30, %v2025_v38  ;;  %v3137_v41 = vpack.c.bf16 %v2289_v12, %v2281_v21  ;;  %v7156_v8 = vmul.f32 %v6909_v26, %v6890_v33  ;;  %3855 = vmatprep.subr.bf16.mxu0 %v3010_v9  ;;  %v2042_v10 = vmul.f32 %v9233_v29, %v7136_v43 }
 0x1a3   : > { %v2050_v20 = vmul.f32 %v9233_v29, %v7140_v31  ;;  %v2298_v38 = vmul.f32 %v9234_v32, %v7136_v43  ;;  %v2306_v54 = vmul.f32 %v9234_v32, %v7140_v31  ;;  %v2041_v59 = vmul.f32 %v9235_v46, %v7144_v19 }
 0x1a4   : > { %9248 = vst [vmem:[#allocation13_spill] sm:$0xff] %v7156_v8  ;;  %3895 = vmatpush1.bf16.msra.mxu1 %v3129_v2  ;;  %v2049_v26 = vmul.f32 %v9235_v46, %v7148_v25  ;;  %v2297_v9 = vmul.f32 %v9236_v1, %v7144_v19  ;;  %v2305_v3 = vmul.f32 %v9236_v1, %v7148_v25 }
 0x1a5   : > { %3896 = vmatprep.subr.bf16.mxu1 %v3138_v18  ;;  %v3018_v2 = vpack.c.bf16 %v2050_v20, %v2042_v10  ;;  %v2058_v51 = vmul.f32 %v9233_v29, %v7152_v61  ;;  %v2066_v18 = vmul.f32 %v9233_v29, %v7156_v8  ;;  %3856 = vmatpush1.bf16.msra.mxu0 %v3009_v13 }
 0x1a6   : > { %v3146_v7 = vpack.c.bf16 %v2306_v54, %v2298_v38  ;;  %v3017_v30 = vpack.c.bf16 %v2049_v26, %v2041_v59  ;;  %v2314_v21 = vmul.f32 %v9234_v32, %v7152_v61  ;;  %v2322_v12 = vmul.f32 %v9234_v32, %v7156_v8  ;;  %v9251_v38 = vld [vmem:[#allocation59_spill] sm:$0xff] }
 0x1a7   : > { %3857 = vmatprep.subr.bf16.mxu0 %v3018_v2  ;;  %v3145_v63 = vpack.c.bf16 %v2305_v3, %v2297_v9  ;;  %v3026_v0 = vpack.c.bf16 %v2066_v18, %v2058_v51  ;;  %v7184_v10 = vmul.f32 %v6913_v34, %v6903_v57  ;;  %v7188_v13 = vmul.f32 %v6913_v34, %v6905_v40  ;;  %v9252_v9 = vld [vmem:[#allocation60_spill] sm:$0xff] }
 0x1a8   : > { %3897 = vmatpush1.bf16.msra.mxu1 %v3137_v41  ;;  %v3154_v20 = vpack.c.bf16 %v2322_v12, %v2314_v21  ;;  %v1088_v54 = vrot.slane %v9251_v38, %v9221_v27  ;;  %v1084_v59 = vrot.slane %v9251_v38, %v9223_v42  ;;  %v1120_v2 = vrot.slane %v9252_v9, %v9221_v27 }
 0x1a9   : > { %9249 = vst [vmem:[#allocation19_spill] sm:$0xff] %v7184_v10  ;;  %3898 = vmatprep.subr.bf16.mxu1 %v3146_v7  ;;  %9250 = vst [vmem:[#allocation12_spill] sm:$0xff] %v7188_v13  ;;  %v2057_v41 = vmul.f32 %v9235_v46, %v7184_v10  ;;  %v2313_v26 = vmul.f32 %v9236_v1, %v7184_v10  ;;  %v1116_v3 = vrot.slane %v9252_v9, %v9223_v42 }
 0x1aa   : > { %3858 = vmatpush1.bf16.msra.mxu0 %v3017_v30  ;;  %v2065_v34 = vmul.f32 %v9235_v46, %v7188_v13  ;;  %v2321_v51 = vmul.f32 %v9236_v1, %v7188_v13  ;;  %v7207_v18 = vmul.f32 %v1088_v54, %v6888_v11  ;;  %v7210_v7 = vmul.f32 %v1088_v54, %v6890_v33 }
 0x1ab   : > { %3859 = vmatprep.subr.bf16.mxu0 %v3026_v0  ;;  %v7213_v21 = vmul.f32 %v1084_v59, %v6903_v57  ;;  %v7216_v12 = vmul.f32 %v1084_v59, %v6905_v40  ;;  %v7219_v30 = vmul.f32 %v1120_v2, %v6888_v11 }
 0x1ac   : > { %9253 = vst [vmem:[#allocation18_spill] sm:$0xff] %v7207_v18  ;;  %9254 = vst [vmem:[#allocation25_spill] sm:$0xff] %v7210_v7  ;;  %3899 = vmatpush1.bf16.msra.mxu1 %v3145_v63  ;;  %v3025_v9 = vpack.c.bf16 %v2065_v34, %v2057_v41  ;;  %v3153_v38 = vpack.c.bf16 %v2321_v51, %v2313_v26  ;;  %v2074_v13 = vmul.f32 %v9233_v29, %v7207_v18 }
 0x1ad   : > { %9255 = vst [vmem:[#allocation31_spill] sm:$0xff] %v7213_v21  ;;  %9256 = vst [vmem:[#allocation24_spill] sm:$0xff] %v7216_v12  ;;  %3900 = vmatprep.subr.bf16.mxu1 %v3154_v20  ;;  %v2082_v54 = vmul.f32 %v9233_v29, %v7210_v7  ;;  %v2330_v63 = vmul.f32 %v9234_v32, %v7207_v18  ;;  %v2338_v0 = vmul.f32 %v9234_v32, %v7210_v7 }
 0x1ae   : > { %9257 = vst [vmem:[#allocation30_spill] sm:$0xff] %v7219_v30  ;;  %v2073_v59 = vmul.f32 %v9235_v46, %v7213_v21  ;;  %v2081_v20 = vmul.f32 %v9235_v46, %v7216_v12  ;;  %3860 = vmatpush1.bf16.msra.mxu0 %v3025_v9  ;;  %v2329_v26 = vmul.f32 %v9236_v1, %v7213_v21 }
 0x1af   : > { %v3034_v41 = vpack.c.bf16 %v2082_v54, %v2074_v13  ;;  %v2337_v34 = vmul.f32 %v9236_v1, %v7216_v12  ;;  %v7238_v51 = vmul.f32 %v1120_v2, %v6890_v33  ;;  %v3162_v18 = vpack.c.bf16 %v2338_v0, %v2330_v63  ;;  %v9261_v63 = vld [vmem:[#allocation61_spill] sm:$0xff] }
 0x1b0   : > { %3901 = vmatpush1.bf16.msra.mxu1 %v3153_v38  ;;  %v3033_v7 = vpack.c.bf16 %v2081_v20, %v2073_v59  ;;  %v2090_v10 = vmul.f32 %v9233_v29, %v7219_v30  ;;  %v2346_v8 = vmul.f32 %v9234_v32, %v7219_v30  ;;  %v7249_v2 = vmul.f32 %v1116_v3, %v6903_v57  ;;  %v9262_v20 = vld [vmem:[#allocation62_spill] sm:$0xff] }
 0x1b1   : > { %9258 = vst [vmem:[#allocation47_spill] sm:$0xff] %v7238_v51  ;;  %3861 = vmatprep.subr.bf16.mxu0 %v3034_v41  ;;  %v3161_v13 = vpack.c.bf16 %v2337_v34, %v2329_v26  ;;  %v2098_v9 = vmul.f32 %v9233_v29, %v7238_v51  ;;  %v2354_v54 = vmul.f32 %v9234_v32, %v7238_v51 }
 0x1b2   : > { %9259 = vst [vmem:[#allocation48_spill] sm:$0xff] %v7249_v2  ;;  %3902 = vmatprep.subr.bf16.mxu1 %v3162_v18  ;;  %v7252_v38 = vmul.f32 %v1116_v3, %v6905_v40  ;;  %v1152_v0 = vrot.slane %v9261_v63, %v9221_v27  ;;  %v1148_v59 = vrot.slane %v9261_v63, %v9223_v42 }
 0x1b3   : > { %v1184_v41 = vrot.slane %v9262_v20, %v9221_v27  ;;  %3862 = vmatpush1.bf16.msra.mxu0 %v3033_v7  ;;  %v3042_v26 = vpack.c.bf16 %v2098_v9, %v2090_v10  ;;  %v3170_v34 = vpack.c.bf16 %v2354_v54, %v2346_v8  ;;  %v2089_v51 = vmul.f32 %v9235_v46, %v7249_v2 }
 0x1b4   : > { %9260 = vst [vmem:[#allocation49_spill] sm:$0xff] %v7252_v38  ;;  %v2345_v18 = vmul.f32 %v9236_v1, %v7249_v2  ;;  %3903 = vmatpush1.bf16.msra.mxu1 %v3161_v13  ;;  %v2097_v3 = vmul.f32 %v9235_v46, %v7252_v38  ;;  %v2353_v30 = vmul.f32 %v9236_v1, %v7252_v38 }
 0x1b5   : > { %v7269_v63 = vmul.f32 %v1152_v0, %v6888_v11  ;;  %v7272_v7 = vmul.f32 %v1152_v0, %v6890_v33  ;;  %3863 = vmatprep.subr.bf16.mxu0 %v3042_v26  ;;  %3904 = vmatprep.subr.bf16.mxu1 %v3170_v34  ;;  %v7275_v8 = vmul.f32 %v1148_v59, %v6903_v57 }
 0x1b6   : > { %v7278_v10 = vmul.f32 %v1148_v59, %v6905_v40  ;;  %v7281_v13 = vmul.f32 %v1184_v41, %v6888_v11  ;;  %v3041_v9 = vpack.c.bf16 %v2097_v3, %v2089_v51  ;;  %v3169_v54 = vpack.c.bf16 %v2353_v30, %v2345_v18 }
 0x1b7   : > { %9263 = vst [vmem:[#allocation50_spill] sm:$0xff] %v7269_v63  ;;  %9264 = vst [vmem:[#allocation51_spill] sm:$0xff] %v7272_v7  ;;  %v2106_v38 = vmul.f32 %v9233_v29, %v7269_v63  ;;  %v2114_v0 = vmul.f32 %v9233_v29, %v7272_v7  ;;  %v2362_v26 = vmul.f32 %v9234_v32, %v7269_v63 }
 0x1b8   : > { %9265 = vst [vmem:[#allocation52_spill] sm:$0xff] %v7275_v8  ;;  %9266 = vst [vmem:[#allocation53_spill] sm:$0xff] %v7278_v10  ;;  %v2370_v34 = vmul.f32 %v9234_v32, %v7272_v7  ;;  %v2105_v59 = vmul.f32 %v9235_v46, %v7275_v8  ;;  %v2113_v2 = vmul.f32 %v9235_v46, %v7278_v10  ;;  %3864 = vmatpush1.bf16.msra.mxu0 %v3041_v9 }
 0x1b9   : > { %9267 = vst [vmem:[#allocation54_spill] sm:$0xff] %v7281_v13  ;;  %3905 = vmatpush1.bf16.msra.mxu1 %v3169_v54  ;;  %v3050_v30 = vpack.c.bf16 %v2114_v0, %v2106_v38  ;;  %v2361_v51 = vmul.f32 %v9236_v1, %v7275_v8  ;;  %v2369_v18 = vmul.f32 %v9236_v1, %v7278_v10  ;;  %v9269_v54 = vld [vmem:[#allocation63_spill] sm:$0xff] }
 0x1ba   : > { %v3178_v3 = vpack.c.bf16 %v2370_v34, %v2362_v26  ;;  %v3049_v63 = vpack.c.bf16 %v2113_v2, %v2105_v59  ;;  %v7300_v12 = vmul.f32 %v1184_v41, %v6890_v33  ;;  %v2122_v7 = vmul.f32 %v9233_v29, %v7281_v13  ;;  %v9270_v34 = vld [vmem:[#allocation64_spill] sm:$0xff] }
 0x1bb   : > { %3865 = vmatprep.subr.bf16.mxu0 %v3050_v30  ;;  %v3177_v21 = vpack.c.bf16 %v2369_v18, %v2361_v51  ;;  %v2378_v9 = vmul.f32 %v9234_v32, %v7281_v13  ;;  %v1180_v38 = vrot.slane %v9262_v20, %v9223_v42  ;;  %v1216_v0 = vrot.slane %v9269_v54, %v9221_v27 }
 0x1bc   : > { %9268 = vst [vmem:[#allocation55_spill] sm:$0xff] %v7300_v12  ;;  %3906 = vmatprep.subr.bf16.mxu1 %v3178_v3  ;;  %v2130_v2 = vmul.f32 %v9233_v29, %v7300_v12  ;;  %v2386_v41 = vmul.f32 %v9234_v32, %v7300_v12  ;;  %v1212_v26 = vrot.slane %v9269_v54, %v9223_v42 }
 0x1bd   : > { %v1248_v59 = vrot.slane %v9270_v34, %v9221_v27  ;;  %3866 = vmatpush1.bf16.msra.mxu0 %v3049_v63  ;;  %3907 = vmatpush1.bf16.msra.mxu1 %v3177_v21  ;;  %v7319_v30 = vmul.f32 %v1180_v38, %v6903_v57  ;;  %v7322_v51 = vmul.f32 %v1180_v38, %v6905_v40 }
 0x1be   : > { %v7325_v18 = vmul.f32 %v1216_v0, %v6888_v11  ;;  %v3058_v3 = vpack.c.bf16 %v2130_v2, %v2122_v7  ;;  %v3186_v20 = vpack.c.bf16 %v2386_v41, %v2378_v9  ;;  %v7328_v12 = vmul.f32 %v1216_v0, %v6890_v33 }
 0x1bf   : > { %9271 = vst [vmem:[#allocation56_spill] sm:$0xff] %v7319_v30  ;;  %9272 = vst [vmem:[#allocation57_spill] sm:$0xff] %v7322_v51  ;;  %v7331_v54 = vmul.f32 %v1212_v26, %v6903_v57  ;;  %v2121_v21 = vmul.f32 %v9235_v46, %v7319_v30  ;;  %v2129_v63 = vmul.f32 %v9235_v46, %v7322_v51 }
 0x1c0   : > { %9273 = vst [vmem:[#allocation58_spill] sm:$0xff] %v7328_v12  ;;  %v2377_v38 = vmul.f32 %v9236_v1, %v7319_v30  ;;  %v2385_v13 = vmul.f32 %v9236_v1, %v7322_v51  ;;  %3867 = vmatprep.subr.bf16.mxu0 %v3058_v3  ;;  %3908 = vmatprep.subr.bf16.mxu1 %v3186_v20 }
 0x1c1   : > { %9274 = vst [vmem:[#allocation66_spill] sm:$0xff] %v7331_v54  ;;  %v2138_v7 = vmul.f32 %v9233_v29, %v7325_v18  ;;  %v2146_v9 = vmul.f32 %v9233_v29, %v7328_v12  ;;  %v2394_v0 = vmul.f32 %v9234_v32, %v7325_v18  ;;  %v3057_v2 = vpack.c.bf16 %v2129_v63, %v2121_v21 }
 0x1c2   : > { %v3185_v41 = vpack.c.bf16 %v2385_v13, %v2377_v38  ;;  %v2402_v10 = vmul.f32 %v9234_v32, %v7328_v12  ;;  %v7350_v30 = vmul.f32 %v1212_v26, %v6905_v40  ;;  %v2137_v20 = vmul.f32 %v9235_v46, %v7331_v54 }
 0x1c3   : > { %v3066_v51 = vpack.c.bf16 %v2146_v9, %v2138_v7  ;;  %v2393_v3 = vmul.f32 %v9236_v1, %v7331_v54  ;;  %v7357_v8 = vmul.f32 %v1248_v59, %v6888_v11  ;;  %3868 = vmatpush1.bf16.msra.mxu0 %v3057_v2  ;;  %v7364_v63 = vmul.f32 %v1248_v59, %v6890_v33  ;;  %v9278_v2 = vld [vmem:[#allocation65_spill] sm:$0xff] }
 0x1c4   : > { %9275 = vst [vmem:[#allocation67_spill] sm:$0xff] %v7350_v30  ;;  %3909 = vmatpush1.bf16.msra.mxu1 %v3185_v41  ;;  %v3194_v21 = vpack.c.bf16 %v2402_v10, %v2394_v0  ;;  %v2145_v13 = vmul.f32 %v9235_v46, %v7350_v30  ;;  %v2401_v26 = vmul.f32 %v9236_v1, %v7350_v30 }
 0x1c5   : > { %9276 = vst [vmem:[#allocation68_spill] sm:$0xff] %v7357_v8  ;;  %3869 = vmatprep.subr.bf16.mxu0 %v3066_v51  ;;  %9277 = vst [vmem:[#allocation69_spill] sm:$0xff] %v7364_v63  ;;  %v2154_v38 = vmul.f32 %v9233_v29, %v7357_v8  ;;  %v2410_v7 = vmul.f32 %v9234_v32, %v7357_v8  ;;  %v1244_v9 = vrot.slane %v9270_v34, %v9223_v42 }
 0x1c6   : > { %3910 = vmatprep.subr.bf16.mxu1 %v3194_v21  ;;  %v3065_v10 = vpack.c.bf16 %v2145_v13, %v2137_v20  ;;  %v3193_v0 = vpack.c.bf16 %v2401_v26, %v2393_v3  ;;  %v1280_v41 = vrot.slane %v9278_v2, %v9221_v27  ;;  %v1276_v51 = vrot.slane %v9278_v2, %v9223_v42 }
 0x1c7   : > { %v2162_v59 = vmul.f32 %v9233_v29, %v7364_v63  ;;  %v2418_v30 = vmul.f32 %v9234_v32, %v7364_v63  ;;  %v7381_v8 = vmul.f32 %v1244_v9, %v6903_v57  ;;  %v7384_v34 = vmul.f32 %v1244_v9, %v6905_v40 }
 0x1c8   : > { %3870 = vmatpush1.bf16.msra.mxu0 %v3065_v10  ;;  %3911 = vmatpush1.bf16.msra.mxu1 %v3193_v0  ;;  %v7387_v20 = vmul.f32 %v1280_v41, %v6888_v11  ;;  %v7390_v3 = vmul.f32 %v1280_v41, %v6890_v33  ;;  %v7393_v21 = vmul.f32 %v1276_v51, %v6903_v57 }
 0x1c9   : > { %9279 = vst [vmem:[#allocation70_spill] sm:$0xff] %v7381_v8  ;;  %9280 = vst [vmem:[#allocation71_spill] sm:$0xff] %v7384_v34  ;;  %v3074_v13 = vpack.c.bf16 %v2162_v59, %v2154_v38  ;;  %v3202_v26 = vpack.c.bf16 %v2418_v30, %v2410_v7  ;;  %v2153_v2 = vmul.f32 %v9235_v46, %v7381_v8 }
 0x1ca   : > { %v2161_v9 = vmul.f32 %v9235_v46, %v7384_v34  ;;  %v2409_v10 = vmul.f32 %v9236_v1, %v7381_v8  ;;  %v2417_v0 = vmul.f32 %v9236_v1, %v7384_v34  ;;  %v2170_v41 = vmul.f32 %v9233_v29, %v7387_v20 }
 0x1cb   : > { %v2178_v63 = vmul.f32 %v9233_v29, %v7390_v3  ;;  %3871 = vmatprep.subr.bf16.mxu0 %v3074_v13  ;;  %3912 = vmatprep.subr.bf16.mxu1 %v3202_v26  ;;  %v2426_v38 = vmul.f32 %v9234_v32, %v7387_v20  ;;  %v2434_v7 = vmul.f32 %v9234_v32, %v7390_v3 }
 0x1cc   : > { %v3073_v30 = vpack.c.bf16 %v2161_v9, %v2153_v2  ;;  %v3201_v59 = vpack.c.bf16 %v2417_v0, %v2409_v10  ;;  %v7412_v54 = vmul.f32 %v1276_v51, %v6905_v40  ;;  %v2169_v34 = vmul.f32 %v9235_v46, %v7393_v21  ;;  %v9281_v9 = vld [vmem:[#allocation27_spill] sm:$0xff] }
 0x1cd   : > { %v3082_v8 = vpack.c.bf16 %v2178_v63, %v2170_v41  ;;  %v3210_v12 = vpack.c.bf16 %v2434_v7, %v2426_v38  ;;  %v2425_v13 = vmul.f32 %v9236_v1, %v7393_v21  ;;  %v1312_v2 = vrot.slane %v5157_v50, %v9221_v27  ;;  %v9282_v7 = vld [vmem:[#allocation33_spill] sm:$0xff] }
 0x1ce   : > { %3872 = vmatpush1.bf16.msra.mxu0 %v3073_v30  ;;  %v1308_v26 = vrot.slane %v5157_v50, %v9223_v42  ;;  %3913 = vmatpush1.bf16.msra.mxu1 %v3201_v59  ;;  %v2177_v63 = vmul.f32 %v9235_v46, %v7412_v54  ;;  %v2433_v51 = vmul.f32 %v9236_v1, %v7412_v54 }
 0x1cf   : > { %3873 = vmatprep.subr.bf16.mxu0 %v3082_v8  ;;  %v2458_v10 = vmul.f32 %v9281_v9, %v6922_v16  ;;  %3914 = vmatprep.subr.bf16.mxu1 %v3210_v12  ;;  %v7429_v0 = vmul.f32 %v1312_v2, %v6888_v11  ;;  %v7432_v27 = vmul.f32 %v1312_v2, %v6890_v33 }
 0x1d0   : > { %v7435_v42 = vmul.f32 %v1308_v26, %v6903_v57  ;;  %v7438_v8 = vmul.f32 %v1308_v26, %v6905_v40  ;;  %v3081_v41 = vpack.c.bf16 %v2177_v63, %v2169_v34  ;;  %v3209_v30 = vpack.c.bf16 %v2433_v51, %v2425_v13  ;;  %v9283_v51 = vld [vmem:[#allocation26_spill] sm:$0xff] }
 0x1d1   : > { %v2466_v38 = vmul.f32 %v9281_v9, %v6925_v35  ;;  %v2714_v12 = vmul.f32 %v9282_v7, %v6922_v16  ;;  %v2186_v11 = vmul.f32 %v9233_v29, %v7429_v0  ;;  %v2194_v33 = vmul.f32 %v9233_v29, %v7432_v27 }
 0x1d2   : > { %v2442_v57 = vmul.f32 %v9234_v32, %v7429_v0  ;;  %v2450_v40 = vmul.f32 %v9234_v32, %v7432_v27  ;;  %3874 = vmatpush1.bf16.msra.mxu0 %v3081_v41  ;;  %3915 = vmatpush1.bf16.msra.mxu1 %v3209_v30  ;;  %v2185_v34 = vmul.f32 %v9235_v46, %v7435_v42 }
 0x1d3   : > { %v2193_v16 = vmul.f32 %v9235_v46, %v7438_v8  ;;  %v2441_v59 = vmul.f32 %v9236_v1, %v7435_v42  ;;  %v3090_v13 = vpack.c.bf16 %v2194_v33, %v2186_v11  ;;  %v2449_v29 = vmul.f32 %v9236_v1, %v7438_v8  ;;  %v9284_v11 = vld [vmem:[#allocation32_spill] sm:$0xff] }
 0x1d4   : > { %v3218_v2 = vpack.c.bf16 %v2450_v40, %v2442_v57  ;;  %v3226_v26 = vpack.c.bf16 %v2466_v38, %v2458_v10  ;;  %v2722_v32 = vmul.f32 %v9282_v7, %v6925_v35  ;;  %v2457_v41 = vmul.f32 %v9283_v51, %v6934_v4 }
 0x1d5   : > { %v3089_v63 = vpack.c.bf16 %v2193_v16, %v2185_v34  ;;  %v2465_v30 = vmul.f32 %v9283_v51, %v6937_v49  ;;  %3875 = vmatprep.subr.bf16.mxu0 %v3090_v13  ;;  %v3217_v46 = vpack.c.bf16 %v2449_v29, %v2441_v59  ;;  %v2713_v33 = vmul.f32 %v9284_v11, %v6934_v4 }
 0x1d6   : > { %3916 = vmatprep.subr.bf16.mxu1 %v3218_v2  ;;  %v2721_v1 = vmul.f32 %v9284_v11, %v6937_v49  ;;  %v3354_v10 = vpack.c.bf16 %v2722_v32, %v2714_v12  ;;  %v2474_v35 = vmul.f32 %v9281_v9, %v6928_v56  ;;  %v2482_v57 = vmul.f32 %v9281_v9, %v6940_v36 }
 0x1d7   : > { %3876 = vmatpush1.bf16.msra.mxu0 %v3089_v63  ;;  %v3225_v38 = vpack.c.bf16 %v2465_v30, %v2457_v41  ;;  %3917 = vmatpush1.bf16.msra.mxu1 %v3217_v46  ;;  %v2730_v34 = vmul.f32 %v9282_v7, %v6928_v56  ;;  %v2738_v4 = vmul.f32 %v9282_v7, %v6940_v36 }
 0x1d8   : > { %3927 = vmatprep.subr.bf16.mxu0 %v3226_v26  ;;  %v3353_v40 = vpack.c.bf16 %v2721_v1, %v2713_v33  ;;  %3968 = vmatprep.subr.bf16.mxu1 %v3354_v10  ;;  %v3234_v49 = vpack.c.bf16 %v2482_v57, %v2474_v35  ;;  %v2473_v12 = vmul.f32 %v9283_v51, %v6943_v14 }
 0x1d9   : > { %v2481_v16 = vmul.f32 %v9283_v51, %v6982_v22  ;;  %v2729_v59 = vmul.f32 %v9284_v11, %v6943_v14  ;;  %v3362_v13 = vpack.c.bf16 %v2738_v4, %v2730_v34  ;;  %v2737_v56 = vmul.f32 %v9284_v11, %v6982_v22 }
 0x1da   : > { %3878 = vmatmul.mubr.bf16.vlgmr.msra.gmra.mrb[16].mxu0 %v5125_v48  ;;  %v2490_v36 = vmul.f32 %v9281_v9, %v6993_v45  ;;  %v2498_v2 = vmul.f32 %v9281_v9, %v6997_v23  ;;  %3919 = vmatmul.mubr.bf16.vlgmr.msra.gmra.mrb[16].mxu1 %v5137_v5  ;;  %v2746_v26 = vmul.f32 %v9282_v7, %v6993_v45 }
 0x1db   : > { %3928 = vmatpush1.bf16.msra.mxu0 %v3225_v38  ;;  %v3233_v29 = vpack.c.bf16 %v2481_v16, %v2473_v12  ;;  %v2754_v14 = vmul.f32 %v9282_v7, %v6997_v23  ;;  %3969 = vmatpush1.bf16.msra.mxu1 %v3353_v40  ;;  %v3361_v63 = vpack.c.bf16 %v2737_v56, %v2729_v59  ;;  %v3633_v12 = vpop.f32.mrb[4].mxu0 }
 0x1dc   : > { %3929 = vmatprep.subr.bf16.mxu0 %v3234_v49  ;;  %v3242_v22 = vpack.c.bf16 %v2498_v2, %v2490_v36  ;;  %v2489_v32 = vmul.f32 %v9283_v51, %v7001_v62  ;;  %3970 = vmatprep.subr.bf16.mxu1 %v3362_v13  ;;  %v2497_v30 = vmul.f32 %v9283_v51, %v7021_v47  ;;  %v3635_v56 = vpop.f32.mrb[5].mxu0  ;;  %v9285_v36 = vld [vmem:[#allocation37_spill] sm:$0xff] }
 0x1dd   : > { %v3370_v41 = vpack.c.bf16 %v2754_v14, %v2746_v26  ;;  %v2745_v46 = vmul.f32 %v9284_v11, %v7001_v62  ;;  %v2753_v45 = vmul.f32 %v9284_v11, %v7021_v47  ;;  %v2506_v23 = vmul.f32 %v9281_v9, %v7034_v52  ;;  %3959 = vmatprep.mubr.bf16.mxu0 %v5798_v15  ;;  %v3637_v14 = vpop.f32.mrb[6].mxu0 }
 0x1de   : > { %v2514_v33 = vmul.f32 %v9281_v9, %v7038_v28  ;;  %v2762_v1 = vmul.f32 %v9282_v7, %v7034_v52  ;;  %v2770_v10 = vmul.f32 %v9282_v7, %v7038_v28  ;;  %v3241_v38 = vpack.c.bf16 %v2497_v30, %v2489_v32  ;;  %4000 = vmatprep.mubr.bf16.mxu1 %v9285_v36  ;;  %v3638_v30 = vpop.f32.mrb[7].mxu0 }
 0x1df   : > { %3930 = vmatpush1.bf16.msra.mxu0 %v3233_v29  ;;  %v3369_v62 = vpack.c.bf16 %v2753_v45, %v2745_v46  ;;  %v2505_v47 = vmul.f32 %v9283_v51, %v7042_v17  ;;  %v2513_v35 = vmul.f32 %v9283_v51, %v7046_v24  ;;  %3971 = vmatpush1.bf16.msra.mxu1 %v3361_v63  ;;  %v3477_v45 = vld [vmem:[%s4475_s29] sm:$0xff] }
 0x1e0   : > { %3931 = vmatprep.subr.bf16.mxu0 %v3242_v22  ;;  %v3250_v57 = vpack.c.bf16 %v2514_v33, %v2506_v23  ;;  %v3378_v40 = vpack.c.bf16 %v2770_v10, %v2762_v1  ;;  %v2761_v52 = vmul.f32 %v9284_v11, %v7042_v17  ;;  %3972 = vmatprep.subr.bf16.mxu1 %v3370_v41 }
 0x1e1   : > { %v3249_v28 = vpack.c.bf16 %v2513_v35, %v2505_v47  ;;  %v2769_v34 = vmul.f32 %v9284_v11, %v7046_v24  ;;  %v2522_v4 = vmul.f32 %v9281_v9, %v7050_v37  ;;  %v2530_v49 = vmul.f32 %v9281_v9, %v7071_v44  ;;  %v3674_v24 = vpop.f32.mrb[4].mxu1 }
 0x1e2   : > { %v2778_v16 = vmul.f32 %v9282_v7, %v7050_v37  ;;  %v2786_v59 = vmul.f32 %v9282_v7, %v7071_v44  ;;  %v2521_v17 = vmul.f32 %v9283_v51, %v7084_v53  ;;  %v2529_v13 = vmul.f32 %v9283_v51, %v7088_v55  ;;  %v3676_v26 = vpop.f32.mrb[5].mxu1 }
 0x1e3   : > { %3932 = vmatpush1.bf16.msra.mxu0 %v3241_v38  ;;  %v3377_v2 = vpack.c.bf16 %v2769_v34, %v2761_v52  ;;  %v3258_v29 = vpack.c.bf16 %v2530_v49, %v2522_v4  ;;  %v2777_v37 = vmul.f32 %v9284_v11, %v7084_v53  ;;  %v2785_v44 = vmul.f32 %v9284_v11, %v7088_v55  ;;  %v3678_v41 = vpop.f32.mrb[6].mxu1  ;;  %v9286_v53 = vld [vmem:[#allocation4_spill] sm:$0xff]  ;;  %v9287_v55 = vld [vmem:[#allocation3_spill] sm:$0xff] }
 0x1e4   : > { %3973 = vmatpush1.bf16.msra.mxu1 %v3369_v62  ;;  %3933 = vmatprep.subr.bf16.mxu0 %v3250_v57  ;;  %v3386_v63 = vpack.c.bf16 %v2786_v59, %v2778_v16  ;;  %v3257_v22 = vpack.c.bf16 %v2529_v13, %v2521_v17  ;;  %v3634_v32 = vadd.f32 %v3633_v12, %v7124_v6  ;;  %v3679_v10 = vpop.f32.mrb[7].mxu1  ;;  %v3478_v62 = vld [vmem:[%s4475_s29 + $0x8] sm:$0xff]  ;;  %v9290_v41 = vld [vmem:[#allocation12_spill] sm:$0xff] }
 0x1e5   : > { %3974 = vmatprep.subr.bf16.mxu1 %v3378_v40  ;;  %v3385_v46 = vpack.c.bf16 %v2785_v44, %v2777_v37  ;;  %v3636_v23 = vadd.f32 %v3635_v56, %v7126_v60  ;;  %v2538_v33 = vmul.f32 %v9281_v9, %v9286_v53  ;;  %v2546_v1 = vmul.f32 %v9281_v9, %v9287_v55  ;;  %v9288_v37 = vld [vmem:[#allocation13_spill] sm:$0xff] }
 0x1e6   : > { %v3675_v38 = vadd.f32 %v3674_v24, %v3634_v32  ;;  %v2794_v47 = vmul.f32 %v9282_v7, %v9286_v53  ;;  %v2802_v6 = vmul.f32 %v9282_v7, %v9287_v55  ;;  %v2537_v35 = vmul.f32 %v9283_v51, %v7100_v39  ;;  %v9291_v53 = vld [vmem:[#allocation18_spill] sm:$0xff] }
 0x1e7   : > { %3934 = vmatpush1.bf16.msra.mxu0 %v3249_v28  ;;  %v3677_v60 = vadd.f32 %v3676_v26, %v3636_v23  ;;  %v3266_v57 = vpack.c.bf16 %v2546_v1, %v2538_v33  ;;  %v2545_v40 = vmul.f32 %v9283_v51, %v7120_v58  ;;  %v2793_v52 = vmul.f32 %v9284_v11, %v7100_v39  ;;  %v9292_v33 = vld [vmem:[#allocation25_spill] sm:$0xff] }
 0x1e8   : > { %3975 = vmatpush1.bf16.msra.mxu1 %v3377_v2  ;;  %3935 = vmatprep.subr.bf16.mxu0 %v3258_v29  ;;  %v4173_v34 = vadd.f32 %v3675_v38, %v3477_v45  ;;  %v3394_v4 = vpack.c.bf16 %v2802_v6, %v2794_v47  ;;  %v2801_v49 = vmul.f32 %v9284_v11, %v7120_v58  ;;  %v9293_v6 = vld [vmem:[#allocation31_spill] sm:$0xff] }
 0x1e9   : > { %3976 = vmatprep.subr.bf16.mxu1 %v3386_v63  ;;  %v4174_v12 = vadd.f32 %v3677_v60, %v3478_v62  ;;  %v3265_v16 = vpack.c.bf16 %v2545_v40, %v2537_v35  ;;  %v2554_v28 = vmul.f32 %v9281_v9, %v7136_v43  ;;  %v2562_v59 = vmul.f32 %v9281_v9, %v7140_v31  ;;  %v9294_v60 = vld [vmem:[#allocation24_spill] sm:$0xff] }
 0x1ea   : > { %4181 = vst [vmem:[%s4475_s29] sm:$0xff] %v4173_v34  ;;  %v3393_v17 = vpack.c.bf16 %v2801_v49, %v2793_v52  ;;  %v2810_v39 = vmul.f32 %v9282_v7, %v7136_v43  ;;  %v2818_v13 = vmul.f32 %v9282_v7, %v7140_v31  ;;  %v2553_v58 = vmul.f32 %v9283_v51, %v7144_v19 }
 0x1eb   : > { %3936 = vmatpush1.bf16.msra.mxu0 %v3257_v22  ;;  %4182 = vst [vmem:[%s4475_s29 + $0x8] sm:$0xff] %v4174_v12  ;;  %v3274_v24 = vpack.c.bf16 %v2562_v59, %v2554_v28  ;;  %v2561_v56 = vmul.f32 %v9283_v51, %v7148_v25  ;;  %v2809_v2 = vmul.f32 %v9284_v11, %v7144_v19 }
 0x1ec   : > { %v2817_v29 = vmul.f32 %v9284_v11, %v7148_v25  ;;  %3977 = vmatpush1.bf16.msra.mxu1 %v3385_v46  ;;  %3937 = vmatprep.subr.bf16.mxu0 %v3266_v57  ;;  %v3402_v43 = vpack.c.bf16 %v2818_v13, %v2810_v39  ;;  %v2570_v31 = vmul.f32 %v9281_v9, %v7152_v61  ;;  %v9289_v25 = vld [vmem:[#allocation19_spill] sm:$0xff]  ;;  %v9297_v13 = vld [vmem:[#allocation48_spill] sm:$0xff] }
 0x1ed   : > { %v2578_v44 = vmul.f32 %v9281_v9, %v9288_v37  ;;  %3978 = vmatprep.subr.bf16.mxu1 %v3394_v4  ;;  %v3273_v26 = vpack.c.bf16 %v2561_v56, %v2553_v58  ;;  %v2826_v63 = vmul.f32 %v9282_v7, %v7152_v61  ;;  %v2834_v19 = vmul.f32 %v9282_v7, %v9288_v37  ;;  %v9295_v4 = vld [vmem:[#allocation30_spill] sm:$0xff] }
 0x1ee   : > { %v3401_v14 = vpack.c.bf16 %v2817_v29, %v2809_v2  ;;  %v2569_v32 = vmul.f32 %v9283_v51, %v9289_v25  ;;  %v2577_v30 = vmul.f32 %v9283_v51, %v9290_v41  ;;  %v2825_v46 = vmul.f32 %v9284_v11, %v9289_v25 }
 0x1ef   : > { %v3282_v22 = vpack.c.bf16 %v2578_v44, %v2570_v31  ;;  %3938 = vmatpush1.bf16.msra.mxu0 %v3265_v16  ;;  %v3410_v45 = vpack.c.bf16 %v2834_v19, %v2826_v63  ;;  %v2833_v23 = vmul.f32 %v9284_v11, %v9290_v41  ;;  %v2586_v61 = vmul.f32 %v9281_v9, %v9291_v53  ;;  %v9296_v16 = vld [vmem:[#allocation47_spill] sm:$0xff]  ;;  %v9299_v44 = vld [vmem:[#allocation50_spill] sm:$0xff] }
 0x1f0   : > { %v2594_v55 = vmul.f32 %v9281_v9, %v9292_v33  ;;  %3979 = vmatpush1.bf16.msra.mxu1 %v3393_v17  ;;  %3939 = vmatprep.subr.bf16.mxu0 %v3274_v24  ;;  %v3281_v1 = vpack.c.bf16 %v2577_v30, %v2569_v32  ;;  %v2842_v10 = vmul.f32 %v9282_v7, %v9291_v53  ;;  %v9298_v24 = vld [vmem:[#allocation49_spill] sm:$0xff]  ;;  %v9301_v32 = vld [vmem:[#allocation52_spill] sm:$0xff] }
 0x1f1   : > { %v2850_v38 = vmul.f32 %v9282_v7, %v9292_v33  ;;  %3980 = vmatprep.subr.bf16.mxu1 %v3402_v43  ;;  %v3409_v62 = vpack.c.bf16 %v2833_v23, %v2825_v46  ;;  %v2585_v35 = vmul.f32 %v9283_v51, %v9293_v6  ;;  %v2593_v57 = vmul.f32 %v9283_v51, %v9294_v60  ;;  %v9302_v30 = vld [vmem:[#allocation53_spill] sm:$0xff] }
 0x1f2   : > { %v3290_v47 = vpack.c.bf16 %v2594_v55, %v2586_v61  ;;  %v2841_v52 = vmul.f32 %v9284_v11, %v9293_v6  ;;  %v2849_v34 = vmul.f32 %v9284_v11, %v9294_v60  ;;  %v2602_v49 = vmul.f32 %v9281_v9, %v9295_v4  ;;  %v9303_v55 = vld [vmem:[#allocation54_spill] sm:$0xff] }
 0x1f3   : > { %v3418_v40 = vpack.c.bf16 %v2850_v38, %v2842_v10  ;;  %3940 = vmatpush1.bf16.msra.mxu0 %v3273_v26  ;;  %v3289_v12 = vpack.c.bf16 %v2593_v57, %v2585_v35  ;;  %v2610_v28 = vmul.f32 %v9281_v9, %v9296_v16  ;;  %v2858_v59 = vmul.f32 %v9282_v7, %v9295_v4  ;;  %v9304_v10 = vld [vmem:[#allocation55_spill] sm:$0xff]  ;;  %v9305_v35 = vld [vmem:[#allocation56_spill] sm:$0xff] }
 0x1f4   : > { %v2866_v17 = vmul.f32 %v9282_v7, %v9296_v16  ;;  %3981 = vmatpush1.bf16.msra.mxu1 %v3401_v14  ;;  %3941 = vmatprep.subr.bf16.mxu0 %v3282_v22  ;;  %v3417_v39 = vpack.c.bf16 %v2849_v34, %v2841_v52  ;;  %v2601_v58 = vmul.f32 %v9283_v51, %v9297_v13  ;;  %v9300_v14 = vld [vmem:[#allocation51_spill] sm:$0xff] }
 0x1f5   : > { %v2609_v56 = vmul.f32 %v9283_v51, %v9298_v24  ;;  %3982 = vmatprep.subr.bf16.mxu1 %v3410_v45  ;;  %v3298_v2 = vpack.c.bf16 %v2610_v28, %v2602_v49  ;;  %v2857_v43 = vmul.f32 %v9284_v11, %v9297_v13  ;;  %v2865_v31 = vmul.f32 %v9284_v11, %v9298_v24  ;;  %v9307_v28 = vld [vmem:[#allocation58_spill] sm:$0xff] }
 0x1f6   : > { %v3426_v29 = vpack.c.bf16 %v2866_v17, %v2858_v59  ;;  %v2618_v26 = vmul.f32 %v9281_v9, %v9299_v44  ;;  %v2626_v63 = vmul.f32 %v9281_v9, %v9300_v14  ;;  %v2874_v19 = vmul.f32 %v9282_v7, %v9299_v44 }
 0x1f7   : > { %v3297_v37 = vpack.c.bf16 %v2609_v56, %v2601_v58  ;;  %3942 = vmatpush1.bf16.msra.mxu0 %v3281_v1  ;;  %v3425_v22 = vpack.c.bf16 %v2865_v31, %v2857_v43  ;;  %v2882_v25 = vmul.f32 %v9282_v7, %v9300_v14  ;;  %v2617_v41 = vmul.f32 %v9283_v51, %v9301_v32  ;;  %v9308_v56 = vld [vmem:[#allocation66_spill] sm:$0xff]  ;;  %v9311_v14 = vld [vmem:[#allocation69_spill] sm:$0xff] }
 0x1f8   : > { %v2625_v46 = vmul.f32 %v9283_v51, %v9302_v30  ;;  %3983 = vmatpush1.bf16.msra.mxu1 %v3409_v62  ;;  %3943 = vmatprep.subr.bf16.mxu0 %v3290_v47  ;;  %v3306_v45 = vpack.c.bf16 %v2626_v63, %v2618_v26  ;;  %v2873_v23 = vmul.f32 %v9284_v11, %v9301_v32 }
 0x1f9   : > { %v2881_v53 = vmul.f32 %v9284_v11, %v9302_v30  ;;  %3984 = vmatprep.subr.bf16.mxu1 %v3418_v40  ;;  %v3434_v61 = vpack.c.bf16 %v2882_v25, %v2874_v19  ;;  %v2634_v1 = vmul.f32 %v9281_v9, %v9303_v55  ;;  %v2642_v38 = vmul.f32 %v9281_v9, %v9304_v10  ;;  %v9306_v40 = vld [vmem:[#allocation57_spill] sm:$0xff]  ;;  %v9312_v30 = vld [vmem:[#allocation70_spill] sm:$0xff] }
 0x1fa   : > { %v3305_v33 = vpack.c.bf16 %v2625_v46, %v2617_v41  ;;  %v2890_v62 = vmul.f32 %v9282_v7, %v9303_v55  ;;  %v2898_v47 = vmul.f32 %v9282_v7, %v9304_v10  ;;  %v2633_v60 = vmul.f32 %v9283_v51, %v9305_v35 }
 0x1fb   : > { %v3433_v6 = vpack.c.bf16 %v2881_v53, %v2873_v23  ;;  %3944 = vmatpush1.bf16.msra.mxu0 %v3289_v12  ;;  %v3314_v57 = vpack.c.bf16 %v2642_v38, %v2634_v1  ;;  %v2641_v52 = vmul.f32 %v9283_v51, %v9306_v40  ;;  %v2889_v34 = vmul.f32 %v9284_v11, %v9305_v35  ;;  %v9313_v23 = vld [vmem:[#allocation71_spill] sm:$0xff] }
 0x1fc   : > { %v2897_v4 = vmul.f32 %v9284_v11, %v9306_v40  ;;  %3985 = vmatpush1.bf16.msra.mxu1 %v3417_v39  ;;  %3945 = vmatprep.subr.bf16.mxu0 %v3298_v2  ;;  %v3442_v49 = vpack.c.bf16 %v2898_v47, %v2890_v62  ;;  %v2650_v16 = vmul.f32 %v9281_v9, %v7325_v18  ;;  %v9309_v2 = vld [vmem:[#allocation67_spill] sm:$0xff] }
 0x1fd   : > { %v2658_v59 = vmul.f32 %v9281_v9, %v9307_v28  ;;  %3986 = vmatprep.subr.bf16.mxu1 %v3426_v29  ;;  %v3313_v12 = vpack.c.bf16 %v2641_v52, %v2633_v60  ;;  %v2906_v13 = vmul.f32 %v9282_v7, %v7325_v18  ;;  %v2914_v58 = vmul.f32 %v9282_v7, %v9307_v28  ;;  %v9310_v18 = vld [vmem:[#allocation68_spill] sm:$0xff]  ;;  %v9314_v28 = vld [vmem:[#allocation9_spill] sm:$0xff] }
 0x1fe   : > { %v3441_v17 = vpack.c.bf16 %v2897_v4, %v2889_v34  ;;  %v2649_v39 = vmul.f32 %v9283_v51, %v9308_v56  ;;  %v2657_v43 = vmul.f32 %v9283_v51, %v9309_v2  ;;  %v7670_v31 = vmul.f32 %v9284_v11, %v9308_v56  ;;  %v9318_v56 = vld [vmem:[#allocation2_spill] sm:$0xff] }
 0x1ff   : > { %v3322_v24 = vpack.c.bf16 %v2658_v59, %v2650_v16  ;;  %3946 = vmatpush1.bf16.msra.mxu0 %v3297_v37  ;;  %v3450_v29 = vpack.c.bf16 %v2914_v58, %v2906_v13  ;;  %v2913_v44 = vmul.f32 %v9284_v11, %v9309_v2  ;;  %v2666_v26 = vmul.f32 %v9281_v9, %v9310_v18  ;;  %v4371_v16 = vld [vmem:[%s4465_s22] ss:$4 sm:$0xff] }
 0x200   : > { %v2674_v63 = vmul.f32 %v9281_v9, %v9311_v14  ;;  %3987 = vmatpush1.bf16.msra.mxu1 %v3425_v22  ;;  %3947 = vmatprep.subr.bf16.mxu0 %v3306_v45  ;;  %v3321_v19 = vpack.c.bf16 %v2657_v43, %v2649_v39  ;;  %v2922_v25 = vmul.f32 %v9282_v7, %v9310_v18  ;;  %v9316_v13 = vld [vmem:[#allocation8_spill] sm:$0xff]  ;;  %v9319_v2 = vld [vmem:[#allocation6_spill] sm:$0xff] }
 0x201   : > { %v2930_v32 = vmul.f32 %v9282_v7, %v9311_v14  ;;  %3988 = vmatprep.subr.bf16.mxu1 %v3434_v61  ;;  %v3449_v37 = vpack.c.bf16 %v2913_v44, %v7670_v31  ;;  %v7685_v46 = vmul.f32 %v9283_v51, %v9312_v30  ;;  %v7689_v53 = vmul.f32 %v9283_v51, %v9313_v23 }
 0x202   : > { %v3330_v41 = vpack.c.bf16 %v2674_v63, %v2666_v26  ;;  %v7693_v45 = vmul.f32 %v9284_v11, %v9312_v30  ;;  %v7697_v55 = vmul.f32 %v9284_v11, %v9313_v23  ;;  %v7701_v61 = vmul.f32 %v9281_v9, %v7387_v20 }
 0x203   : > { %v3458_v22 = vpack.c.bf16 %v2930_v32, %v2922_v25  ;;  %3948 = vmatpush1.bf16.msra.mxu0 %v3305_v33  ;;  %v3329_v1 = vpack.c.bf16 %v7689_v53, %v7685_v46  ;;  %v2690_v10 = vmul.f32 %v9281_v9, %v7390_v3  ;;  %v7709_v38 = vmul.f32 %v9282_v7, %v7387_v20  ;;  %v9321_v25 = vld [vmem:[#allocation38_spill] sm:$0xff] }
 0x204   : > { %v7713_v62 = vmul.f32 %v9282_v7, %v7390_v3  ;;  %3989 = vmatpush1.bf16.msra.mxu1 %v3433_v6  ;;  %3949 = vmatprep.subr.bf16.mxu0 %v3314_v57  ;;  %v3457_v47 = vpack.c.bf16 %v7697_v55, %v7693_v45  ;;  %v7719_v33 = vmul.f32 %v9283_v51, %v7393_v21  ;;  %v9322_v46 = vld [vmem:[#allocation42_spill] sm:$0xff]  ;;  %v9323_v55 = vld [vmem:[#allocation43_spill] sm:$0xff] }
 0x205   : > { %v7723_v35 = vmul.f32 %v9283_v51, %v7412_v54  ;;  %3990 = vmatprep.subr.bf16.mxu1 %v3442_v49  ;;  %v3338_v20 = vpack.c.bf16 %v2690_v10, %v7701_v61  ;;  %v7730_v6 = vmul.f32 %v9284_v11, %v7393_v21  ;;  %v7734_v60 = vmul.f32 %v9284_v11, %v7412_v54 }
 0x206   : > { %v3466_v3 = vpack.c.bf16 %v7713_v62, %v7709_v38  ;;  %v7740_v40 = vmul.f32 %v9281_v9, %v7429_v0  ;;  %v7744_v52 = vmul.f32 %v9281_v9, %v7432_v27  ;;  %v7748_v21 = vmul.f32 %v9282_v7, %v7429_v0 }
 0x207   : > { %v3337_v57 = vpack.c.bf16 %v7723_v35, %v7719_v33  ;;  %3950 = vmatpush1.bf16.msra.mxu0 %v3313_v12  ;;  %v3465_v54 = vpack.c.bf16 %v7734_v60, %v7730_v6  ;;  %v7754_v34 = vmul.f32 %v9282_v7, %v7432_v27  ;;  %v7758_v4 = vmul.f32 %v9283_v51, %v7435_v42  ;;  %v9315_v12 = vld [vmem:[#allocation10_spill] sm:$0xff]  ;;  %v9328_v6 = vld [vmem:[#allocation23_spill] sm:$0xff] }
 0x208   : > { %v7762_v9 = vmul.f32 %v9283_v51, %v7438_v8  ;;  %3991 = vmatpush1.bf16.msra.mxu1 %v3441_v17  ;;  %3951 = vmatprep.subr.bf16.mxu0 %v3322_v24  ;;  %v3346_v0 = vpack.c.bf16 %v7744_v52, %v7740_v40  ;;  %v7768_v49 = vmul.f32 %v9284_v11, %v7435_v42  ;;  %v9324_v40 = vld [vmem:[#allocation44_spill] sm:$0xff] }
 0x209   : > { %v7772_v27 = vmul.f32 %v9284_v11, %v7438_v8  ;;  %3992 = vmatprep.subr.bf16.mxu1 %v3450_v29  ;;  %v3474_v7 = vpack.c.bf16 %v7754_v34, %v7748_v21  ;;  %v448_v59 = vrot.slane %v4371_v16, %v9314_v28  ;;  %v840_v17 = vrot.slane %v9315_v12, %v9314_v28  ;;  %v9317_v11 = vld [vmem:[#allocation36_spill] sm:$0xff]  ;;  %v9320_v29 = vld [vmem:[#allocation11_spill] sm:$0xff] }
 0x20a   : > { %v3345_v51 = vpack.c.bf16 %v7762_v9, %v7758_v4  ;;  %v444_v58 = vrot.slane %v4371_v16, %v9316_v13  ;;  %v836_v8 = vrot.slane %v9315_v12, %v9316_v13  ;;  %v872_v24 = vrot.slane %v9317_v11, %v9314_v28  ;;  %v9325_v16 = vld [vmem:[#allocation45_spill] sm:$0xff] }
 0x20b   : > { %v3473_v42 = vpack.c.bf16 %v7772_v27, %v7768_v49  ;;  %3952 = vmatpush1.bf16.msra.mxu0 %v3321_v19  ;;  %v464_v39 = vsub.f32 %v9318_v56, %v448_v59  ;;  %v472_v43 = vsub.f32 %v9319_v2, %v448_v59  ;;  %v7793_v31 = vrot.slane %v9317_v11, %v9316_v13  ;;  %v9331_v49 = vld [vmem:[#allocation39_spill] sm:$0xff] }
 0x20c   : > { %v7797_v44 = vrot.slane %v9320_v29, %v9314_v28  ;;  %3993 = vmatpush1.bf16.msra.mxu1 %v3449_v37  ;;  %3953 = vmatprep.subr.bf16.mxu0 %v3330_v41  ;;  %v463_v18 = vsub.f32 %v9318_v56, %v444_v58  ;;  %v471_v26 = vsub.f32 %v9319_v2, %v444_v58  ;;  %v9326_v58 = vld [vmem:[#allocation59_spill] sm:$0xff] }
 0x20d   : > { %v7803_v14 = vrot.slane %v9320_v29, %v9316_v13  ;;  %3994 = vmatprep.subr.bf16.mxu1 %v3458_v22  ;;  %v480_v63 = vand.u32 2147483647, %v464_v39  ;;  %v488_v19 = vand.u32 2147483647, %v472_v43  ;;  %v7807_v32 = vrot.slane %v9321_v25, %v9314_v28 }
 0x20e   : > { %v7811_v30 = vrot.slane %v9321_v25, %v9316_v13  ;;  %v479_v37 = vand.u32 2147483647, %v463_v18  ;;  %v487_v41 = vand.u32 2147483647, %v471_v26  ;;  %v7815_v23 = vrot.slane %v9322_v46, %v9314_v28 }
 0x20f   : > { %v7819_v53 = vrot.slane %v9322_v46, %v9316_v13  ;;  %3954 = vmatpush1.bf16.msra.mxu0 %v3329_v1  ;;  %v496_v22 = vsub.f32 1.0, %v480_v63  ;;  %v504_v45 = vsub.f32 1.0, %v488_v19  ;;  %v7823_v61 = vrot.slane %v9323_v55, %v9314_v28 }
 0x210   : > { %v7827_v10 = vrot.slane %v9323_v55, %v9316_v13  ;;  %3995 = vmatpush1.bf16.msra.mxu1 %v3457_v47  ;;  %3955 = vmatprep.subr.bf16.mxu0 %v3338_v20  ;;  %v495_v38 = vsub.f32 1.0, %v479_v37  ;;  %v503_v62 = vsub.f32 1.0, %v487_v41  ;;  %v7831_v52 = vrot.slane %v9324_v40, %v9314_v28 }
 0x211   : > { %v7835_v1 = vrot.slane %v9324_v40, %v9316_v13  ;;  %3996 = vmatprep.subr.bf16.mxu1 %v3466_v3  ;;  %v7837_v21 = vmax.f32 %v496_v22, 0.0  ;;  %v7839_v34 = vmax.f32 %v504_v45, 0.0  ;;  %v7843_v59 = vrot.slane %v9325_v16, %v9314_v28  ;;  %v9332_v40 = vld [vmem:[#allocation40_spill] sm:$0xff] }
 0x212   : > { %v7847_v47 = vrot.slane %v9325_v16, %v9316_v13  ;;  %v7849_v20 = vmax.f32 %v495_v38, 0.0  ;;  %v7851_v12 = vmax.f32 %v503_v62, 0.0  ;;  %v7855_v11 = vrot.slane %v9326_v58, %v9314_v28 }
 0x213   : > { %v7859_v3 = vrot.slane %v9326_v58, %v9316_v13  ;;  %3956 = vmatpush1.bf16.msra.mxu0 %v3337_v57  ;;  %v7865_v56 = vmul.f32 %v840_v17, %v7837_v21  ;;  %v7868_v39 = vmul.f32 %v840_v17, %v7839_v34  ;;  %v7871_v2 = vmul.f32 %v872_v24, %v7837_v21  ;;  %v9327_v17 = vld [vmem:[#allocation17_spill] sm:$0xff] }
 0x214   : > { %v7874_v43 = vmul.f32 %v872_v24, %v7839_v34  ;;  %3997 = vmatpush1.bf16.msra.mxu1 %v3465_v54  ;;  %3957 = vmatprep.subr.bf16.mxu0 %v3346_v0  ;;  %v7880_v33 = vmul.f32 %v836_v8, %v7849_v20  ;;  %v7883_v35 = vmul.f32 %v836_v8, %v7851_v12  ;;  %v9329_v0 = vld [vmem:[#allocation16_spill] sm:$0xff] }
 0x215   : > { %v7887_v57 = vmul.f32 %v7793_v31, %v7849_v20  ;;  %3998 = vmatprep.subr.bf16.mxu1 %v3474_v7  ;;  %v1948_v24 = vmul.f32 %v9327_v17, %v7865_v56  ;;  %v1956_v29 = vmul.f32 %v9327_v17, %v7868_v39  ;;  %v2204_v60 = vmul.f32 %v9328_v6, %v7865_v56  ;;  %v9330_v7 = vld [vmem:[#allocation22_spill] sm:$0xff] }
 0x216   : > { %v2212_v54 = vmul.f32 %v9328_v6, %v7868_v39  ;;  %v1947_v8 = vmul.f32 %v9329_v0, %v7880_v33  ;;  %v1955_v18 = vmul.f32 %v9329_v0, %v7883_v35  ;;  %v2203_v26 = vmul.f32 %v9330_v7, %v7880_v33 }
 0x217   : > { %v2211_v63 = vmul.f32 %v9330_v7, %v7883_v35  ;;  %3958 = vmatpush1.bf16.msra.mxu0 %v3345_v51  ;;  %v2972_v19 = vpack.c.bf16 %v1956_v29, %v1948_v24  ;;  %v1964_v37 = vmul.f32 %v9327_v17, %v7871_v2  ;;  %v1972_v41 = vmul.f32 %v9327_v17, %v7874_v43 }
 0x218   : > { %v3100_v25 = vpack.c.bf16 %v2212_v54, %v2204_v60  ;;  %3999 = vmatpush1.bf16.msra.mxu1 %v3473_v42  ;;  %v2971_v46 = vpack.c.bf16 %v1955_v18, %v1947_v8  ;;  %v2220_v45 = vmul.f32 %v9328_v6, %v7871_v2  ;;  %v2228_v4 = vmul.f32 %v9328_v6, %v7874_v43 }
 0x219   : > { %v3099_v22 = vpack.c.bf16 %v2211_v63, %v2203_v26  ;;  %4009 = vmatprep.subr.bf16.mxu0 %v2972_v19  ;;  %v2980_v9 = vpack.c.bf16 %v1972_v41, %v1964_v37  ;;  %v7921_v51 = vmul.f32 %v7793_v31, %v7851_v12  ;;  %v1963_v55 = vmul.f32 %v9329_v0, %v7887_v57  ;;  %v9333_v37 = vld [vmem:[#allocation41_spill] sm:$0xff] }
 0x21a   : > { %4050 = vmatprep.subr.bf16.mxu1 %v3100_v25  ;;  %3960 = vmatmul.mubr.bf16.vlgmr.msra.gmra.mrb[20].mxu0 %v9331_v49  ;;  %v3108_v27 = vpack.c.bf16 %v2228_v4, %v2220_v45  ;;  %v2219_v42 = vmul.f32 %v9330_v7, %v7887_v57  ;;  %v7930_v38 = vmul.f32 %v7797_v44, %v7837_v21 }
 0x21b   : > { %v7934_v62 = vmul.f32 %v7797_v44, %v7839_v34  ;;  %4001 = vmatmul.mubr.bf16.vlgmr.msra.gmra.mrb[20].mxu1 %v9332_v40  ;;  %4010 = vmatpush1.bf16.msra.mxu0 %v2971_v46  ;;  %v1971_v31 = vmul.f32 %v9329_v0, %v7921_v51  ;;  %v2227_v16 = vmul.f32 %v9330_v7, %v7921_v51 }
 0x21c   : > { %v7943_v58 = vmul.f32 %v7803_v14, %v7849_v20  ;;  %4051 = vmatpush1.bf16.msra.mxu1 %v3099_v22  ;;  %4011 = vmatprep.subr.bf16.mxu0 %v2980_v9  ;;  %v1980_v24 = vmul.f32 %v9327_v17, %v7930_v38  ;;  %v2236_v29 = vmul.f32 %v9328_v6, %v7930_v38 }
 0x21d   : > { %v1988_v44 = vmul.f32 %v9327_v17, %v7934_v62  ;;  %4052 = vmatprep.subr.bf16.mxu1 %v3108_v27  ;;  %v2979_v60 = vpack.c.bf16 %v1971_v31, %v1963_v55  ;;  %v3107_v54 = vpack.c.bf16 %v2227_v16, %v2219_v42  ;;  %v2244_v8 = vmul.f32 %v9328_v6, %v7934_v62 }
 0x21e   : > { %v7955_v18 = vmul.f32 %v7803_v14, %v7851_v12  ;;  %v1979_v63 = vmul.f32 %v9329_v0, %v7943_v58  ;;  %v2235_v19 = vmul.f32 %v9330_v7, %v7943_v58  ;;  %v7963_v25 = vmul.f32 %v7807_v32, %v7837_v21  ;;  %4041 = vmatprep.mubr.bf16.mxu0 %v9333_v37 }
 0x21f   : > { %v2988_v26 = vpack.c.bf16 %v1988_v44, %v1980_v24  ;;  %4012 = vmatpush1.bf16.msra.mxu0 %v2979_v60  ;;  %v3116_v41 = vpack.c.bf16 %v2244_v8, %v2236_v29  ;;  %v7972_v22 = vmul.f32 %v7807_v32, %v7839_v34  ;;  %v7980_v9 = vmul.f32 %v7811_v30, %v7849_v20  ;;  %v9334_v29 = vld [vmem:[#allocation46_spill] sm:$0xff] }
 0x220   : > { %v1987_v46 = vmul.f32 %v9329_v0, %v7955_v18  ;;  %v2243_v14 = vmul.f32 %v9330_v7, %v7955_v18  ;;  %4053 = vmatpush1.bf16.msra.mxu1 %v3107_v54  ;;  %v1996_v45 = vmul.f32 %v9327_v17, %v7963_v25  ;;  %v2252_v4 = vmul.f32 %v9328_v6, %v7963_v25 }
 0x221   : > { %4013 = vmatprep.subr.bf16.mxu0 %v2988_v26  ;;  %4054 = vmatprep.subr.bf16.mxu1 %v3116_v41  ;;  %v2004_v42 = vmul.f32 %v9327_v17, %v7972_v22  ;;  %v2260_v32 = vmul.f32 %v9328_v6, %v7972_v22  ;;  %v7988_v31 = vmul.f32 %v7811_v30, %v7851_v12 }
 0x222   : > { %v2987_v55 = vpack.c.bf16 %v1987_v46, %v1979_v63  ;;  %v3115_v27 = vpack.c.bf16 %v2243_v14, %v2235_v19  ;;  %v1995_v16 = vmul.f32 %v9329_v0, %v7980_v9  ;;  %v2251_v24 = vmul.f32 %v9330_v7, %v7980_v9  ;;  %4082 = vmatprep.mubr.bf16.mxu1 %v9334_v29 }
 0x223   : > { %v7996_v44 = vmul.f32 %v7815_v23, %v7837_v21  ;;  %v2996_v60 = vpack.c.bf16 %v2004_v42, %v1996_v45  ;;  %v3124_v54 = vpack.c.bf16 %v2260_v32, %v2252_v4  ;;  %v8001_v8 = vmul.f32 %v7815_v23, %v7839_v34 }
 0x224   : > { %4014 = vmatpush1.bf16.msra.mxu0 %v2987_v55  ;;  %v8005_v30 = vmul.f32 %v7819_v53, %v7849_v20  ;;  %4055 = vmatpush1.bf16.msra.mxu1 %v3115_v27  ;;  %v2003_v26 = vmul.f32 %v9329_v0, %v7988_v31  ;;  %v2259_v63 = vmul.f32 %v9330_v7, %v7988_v31 }
 0x225   : > { %v2012_v19 = vmul.f32 %v9327_v17, %v7996_v44  ;;  %v2268_v37 = vmul.f32 %v9328_v6, %v7996_v44  ;;  %4015 = vmatprep.subr.bf16.mxu0 %v2996_v60  ;;  %4056 = vmatprep.subr.bf16.mxu1 %v3124_v54  ;;  %v2020_v23 = vmul.f32 %v9327_v17, %v8001_v8 }
 0x226   : > { %v2276_v41 = vmul.f32 %v9328_v6, %v8001_v8  ;;  %v8021_v46 = vmul.f32 %v7819_v53, %v7851_v12  ;;  %v2995_v14 = vpack.c.bf16 %v2003_v26, %v1995_v16  ;;  %v3123_v45 = vpack.c.bf16 %v2259_v63, %v2251_v24  ;;  %v3715_v53 = vpop.f32.mrb[8].mxu0  ;;  %v3756_v63 = vpop.f32.mrb[8].mxu1 }
 0x227   : > { %v2011_v4 = vmul.f32 %v9329_v0, %v8005_v30  ;;  %v2267_v55 = vmul.f32 %v9330_v7, %v8005_v30  ;;  %v3004_v27 = vpack.c.bf16 %v2020_v23, %v2012_v19  ;;  %v8033_v16 = vmul.f32 %v7823_v61, %v7837_v21  ;;  %v3717_v19 = vpop.f32.mrb[9].mxu0 }
 0x228   : > { %v3132_v42 = vpack.c.bf16 %v2276_v41, %v2268_v37  ;;  %v2019_v32 = vmul.f32 %v9329_v0, %v8021_v46  ;;  %v2275_v29 = vmul.f32 %v9330_v7, %v8021_v46  ;;  %4016 = vmatpush1.bf16.msra.mxu0 %v2995_v14  ;;  %4057 = vmatpush1.bf16.msra.mxu1 %v3123_v45  ;;  %v3758_v41 = vpop.f32.mrb[9].mxu1 }
 0x229   : > { %v8037_v24 = vmul.f32 %v7823_v61, %v7839_v34  ;;  %v8041_v60 = vmul.f32 %v7827_v10, %v7849_v20  ;;  %4017 = vmatprep.subr.bf16.mxu0 %v3004_v27  ;;  %v8045_v37 = vmul.f32 %v7827_v10, %v7851_v12  ;;  %v8047_v23 = vadd.f32 %v3756_v63, %v3715_v53  ;;  %v3760_v10 = vpop.f32.mrb[10].mxu1 }
 0x22a   : > { %4058 = vmatprep.subr.bf16.mxu1 %v3132_v42  ;;  %v3003_v54 = vpack.c.bf16 %v2019_v32, %v2011_v4  ;;  %v3131_v26 = vpack.c.bf16 %v2275_v29, %v2267_v55  ;;  %v2028_v61 = vmul.f32 %v9327_v17, %v8033_v16  ;;  %v2284_v45 = vmul.f32 %v9328_v6, %v8033_v16  ;;  %v3719_v4 = vpop.f32.mrb[10].mxu0 }
 0x22b   : > { %9335 = vst [vmem:[#allocation72_spill] sm:$0xff] %v8045_v37  ;;  %v2036_v14 = vmul.f32 %v9327_v17, %v8037_v24  ;;  %v8055_v55 = vadd.f32 %v3758_v41, %v3717_v19  ;;  %v2292_v27 = vmul.f32 %v9328_v6, %v8037_v24  ;;  %v2027_v42 = vmul.f32 %v9329_v0, %v8041_v60  ;;  %v3720_v29 = vpop.f32.mrb[11].mxu0  ;;  %v3761_v41 = vpop.f32.mrb[11].mxu1 }
 0x22c   : > { %v2035_v32 = vmul.f32 %v9329_v0, %v8045_v37  ;;  %4018 = vmatpush1.bf16.msra.mxu0 %v3003_v54  ;;  %4059 = vmatpush1.bf16.msra.mxu1 %v3131_v26  ;;  %v2283_v63 = vmul.f32 %v9330_v7, %v8041_v60  ;;  %v2291_v19 = vmul.f32 %v9330_v7, %v8045_v37 }
 0x22d   : > { %v3012_v53 = vpack.c.bf16 %v2036_v14, %v2028_v61  ;;  %v3140_v4 = vpack.c.bf16 %v2292_v27, %v2284_v45  ;;  %v8069_v10 = vmul.f32 %v7831_v52, %v7837_v21  ;;  %v8073_v49 = vmul.f32 %v7831_v52, %v7839_v34 }
 0x22e   : > { %v3011_v40 = vpack.c.bf16 %v2035_v32, %v2027_v42  ;;  %v3139_v54 = vpack.c.bf16 %v2291_v19, %v2283_v63  ;;  %v8077_v26 = vmul.f32 %v7835_v1, %v7849_v20  ;;  %v8081_v61 = vmul.f32 %v7835_v1, %v7851_v12 }
 0x22f   : > { %9336 = vst [vmem:[#allocation73_spill] sm:$0xff] %v8069_v10  ;;  %9337 = vst [vmem:[#allocation74_spill] sm:$0xff] %v8073_v49  ;;  %4019 = vmatprep.subr.bf16.mxu0 %v3012_v53  ;;  %v8085_v14 = vmul.f32 %v7843_v59, %v7837_v21  ;;  %4060 = vmatprep.subr.bf16.mxu1 %v3140_v4  ;;  %v2044_v45 = vmul.f32 %v9327_v17, %v8069_v10 }
 0x230   : > { %9338 = vst [vmem:[#allocation75_spill] sm:$0xff] %v8077_v26  ;;  %9339 = vst [vmem:[#allocation76_spill] sm:$0xff] %v8081_v61  ;;  %v2052_v52 = vmul.f32 %v9327_v17, %v8073_v49  ;;  %v2300_v27 = vmul.f32 %v9328_v6, %v8069_v10  ;;  %v2308_v42 = vmul.f32 %v9328_v6, %v8073_v49  ;;  %4020 = vmatpush1.bf16.msra.mxu0 %v3011_v40 }
 0x231   : > { %9340 = vst [vmem:[#allocation77_spill] sm:$0xff] %v8085_v14  ;;  %4061 = vmatpush1.bf16.msra.mxu1 %v3139_v54  ;;  %v2043_v1 = vmul.f32 %v9329_v0, %v8077_v26  ;;  %v2051_v32 = vmul.f32 %v9329_v0, %v8081_v61  ;;  %v2299_v29 = vmul.f32 %v9330_v7, %v8077_v26 }
 0x232   : > { %v3020_v53 = vpack.c.bf16 %v2052_v52, %v2044_v45  ;;  %v3148_v63 = vpack.c.bf16 %v2308_v42, %v2300_v27  ;;  %v2307_v19 = vmul.f32 %v9330_v7, %v8081_v61  ;;  %v8105_v41 = vmul.f32 %v7843_v59, %v7839_v34 }
 0x233   : > { %v3019_v40 = vpack.c.bf16 %v2051_v32, %v2043_v1  ;;  %v2060_v4 = vmul.f32 %v9327_v17, %v8085_v14  ;;  %v2316_v54 = vmul.f32 %v9328_v6, %v8085_v14  ;;  %v8113_v49 = vmul.f32 %v7847_v47, %v7849_v20 }
 0x234   : > { %9341 = vst [vmem:[#allocation78_spill] sm:$0xff] %v8105_v41  ;;  %4021 = vmatprep.subr.bf16.mxu0 %v3020_v53  ;;  %4062 = vmatprep.subr.bf16.mxu1 %v3148_v63  ;;  %v3147_v45 = vpack.c.bf16 %v2307_v19, %v2299_v29  ;;  %v2068_v52 = vmul.f32 %v9327_v17, %v8105_v41 }
 0x235   : > { %9342 = vst [vmem:[#allocation79_spill] sm:$0xff] %v8113_v49  ;;  %v2324_v59 = vmul.f32 %v9328_v6, %v8105_v41  ;;  %4022 = vmatpush1.bf16.msra.mxu0 %v3019_v40  ;;  %v8121_v27 = vmul.f32 %v7847_v47, %v7851_v12  ;;  %v2059_v42 = vmul.f32 %v9329_v0, %v8113_v49 }
 0x236   : > { %v2315_v1 = vmul.f32 %v9330_v7, %v8113_v49  ;;  %v8129_v32 = vmul.f32 %v7855_v11, %v7837_v21  ;;  %4063 = vmatpush1.bf16.msra.mxu1 %v3147_v45  ;;  %v3028_v29 = vpack.c.bf16 %v2068_v52, %v2060_v4  ;;  %v8133_v63 = vmul.f32 %v7855_v11, %v7839_v34 }
 0x237   : > { %9343 = vst [vmem:[#allocation7_spill] sm:$0xff] %v8121_v27  ;;  %v3156_v53 = vpack.c.bf16 %v2324_v59, %v2316_v54  ;;  %v8137_v47 = vmul.f32 %v7859_v3, %v7849_v20  ;;  %v2067_v19 = vmul.f32 %v9329_v0, %v8121_v27  ;;  %v2323_v40 = vmul.f32 %v9330_v7, %v8121_v27 }
 0x238   : > { %9344 = vst [vmem:[#allocation5_spill] sm:$0xff] %v8129_v32  ;;  %9345 = vst [vmem:[#allocation15_spill] sm:$0xff] %v8133_v63  ;;  %v2076_v49 = vmul.f32 %v9327_v17, %v8129_v32  ;;  %v2332_v4 = vmul.f32 %v9328_v6, %v8129_v32  ;;  %4023 = vmatprep.subr.bf16.mxu0 %v3028_v29  ;;  %v2084_v11 = vmul.f32 %v9327_v17, %v8133_v63 }
 0x239   : > { %9346 = vst [vmem:[#allocation21_spill] sm:$0xff] %v8137_v47  ;;  %4064 = vmatprep.subr.bf16.mxu1 %v3156_v53  ;;  %v2340_v54 = vmul.f32 %v9328_v6, %v8133_v63  ;;  %v8153_v45 = vmul.f32 %v7859_v3, %v7851_v12  ;;  %v3027_v52 = vpack.c.bf16 %v2067_v19, %v2059_v42  ;;  %v9348_v3 = vld [vmem:[#allocation60_spill] sm:$0xff]  ;;  %v9349_v19 = vld [vmem:[#allocation61_spill] sm:$0xff] }
 0x23a   : > { %v3155_v59 = vpack.c.bf16 %v2323_v40, %v2315_v1  ;;  %v2075_v27 = vmul.f32 %v9329_v0, %v8137_v47  ;;  %v2331_v32 = vmul.f32 %v9330_v7, %v8137_v47  ;;  %v3036_v29 = vpack.c.bf16 %v2084_v11, %v2076_v49 }
 0x23b   : > { %9347 = vst [vmem:[#allocation14_spill] sm:$0xff] %v8153_v45  ;;  %v3164_v53 = vpack.c.bf16 %v2340_v54, %v2332_v4  ;;  %v2083_v41 = vmul.f32 %v9329_v0, %v8153_v45  ;;  %v2339_v63 = vmul.f32 %v9330_v7, %v8153_v45  ;;  %4024 = vmatpush1.bf16.msra.mxu0 %v3027_v52 }
 0x23c   : > { %4065 = vmatpush1.bf16.msra.mxu1 %v3155_v59  ;;  %v1128_v42 = vrot.slane %v9348_v3, %v9314_v28  ;;  %v1124_v1 = vrot.slane %v9348_v3, %v9316_v13  ;;  %v1160_v40 = vrot.slane %v9349_v19, %v9314_v28  ;;  %4025 = vmatprep.subr.bf16.mxu0 %v3036_v29 }
 0x23d   : > { %4066 = vmatprep.subr.bf16.mxu1 %v3164_v53  ;;  %v3035_v49 = vpack.c.bf16 %v2083_v41, %v2075_v27  ;;  %v3163_v4 = vpack.c.bf16 %v2339_v63, %v2331_v32  ;;  %v1156_v11 = vrot.slane %v9349_v19, %v9316_v13 }
 0x23e   : > { %v8172_v54 = vmul.f32 %v1128_v42, %v7837_v21  ;;  %v8175_v52 = vmul.f32 %v1128_v42, %v7839_v34  ;;  %v8178_v59 = vmul.f32 %v1124_v1, %v7849_v20  ;;  %v8181_v3 = vmul.f32 %v1124_v1, %v7851_v12 }
 0x23f   : > { %v8184_v29 = vmul.f32 %v1160_v40, %v7837_v21  ;;  %v8187_v41 = vmul.f32 %v1160_v40, %v7839_v34  ;;  %v8190_v27 = vmul.f32 %v1156_v11, %v7849_v20  ;;  %v8193_v32 = vmul.f32 %v1156_v11, %v7851_v12  ;;  %4026 = vmatpush1.bf16.msra.mxu0 %v3035_v49 }
 0x240   : > { %9350 = vst [vmem:[#allocation20_spill] sm:$0xff] %v8172_v54  ;;  %9351 = vst [vmem:[#allocation27_spill] sm:$0xff] %v8175_v52  ;;  %4067 = vmatpush1.bf16.msra.mxu1 %v3163_v4  ;;  %v2092_v63 = vmul.f32 %v9327_v17, %v8172_v54  ;;  %v2100_v53 = vmul.f32 %v9327_v17, %v8175_v52  ;;  %v2348_v42 = vmul.f32 %v9328_v6, %v8172_v54 }
 0x241   : > { %9352 = vst [vmem:[#allocation33_spill] sm:$0xff] %v8178_v59  ;;  %9353 = vst [vmem:[#allocation26_spill] sm:$0xff] %v8181_v3  ;;  %v2356_v1 = vmul.f32 %v9328_v6, %v8175_v52  ;;  %v2091_v19 = vmul.f32 %v9329_v0, %v8178_v59  ;;  %v2099_v40 = vmul.f32 %v9329_v0, %v8181_v3 }
 0x242   : > { %9354 = vst [vmem:[#allocation32_spill] sm:$0xff] %v8184_v29  ;;  %9355 = vst [vmem:[#allocation37_spill] sm:$0xff] %v8187_v41  ;;  %v2347_v49 = vmul.f32 %v9330_v7, %v8178_v59  ;;  %v3044_v4 = vpack.c.bf16 %v2100_v53, %v2092_v63  ;;  %v2355_v11 = vmul.f32 %v9330_v7, %v8181_v3 }
 0x243   : > { %9356 = vst [vmem:[#allocation4_spill] sm:$0xff] %v8190_v27  ;;  %9357 = vst [vmem:[#allocation3_spill] sm:$0xff] %v8193_v32  ;;  %v2108_v45 = vmul.f32 %v9327_v17, %v8184_v29  ;;  %v2116_v54 = vmul.f32 %v9327_v17, %v8187_v41  ;;  %v3172_v52 = vpack.c.bf16 %v2356_v1, %v2348_v42 }
 0x244   : > { %v3043_v47 = vpack.c.bf16 %v2099_v40, %v2091_v19  ;;  %v2364_v14 = vmul.f32 %v9328_v6, %v8184_v29  ;;  %v2372_v61 = vmul.f32 %v9328_v6, %v8187_v41  ;;  %4027 = vmatprep.subr.bf16.mxu0 %v3044_v4  ;;  %v3171_v59 = vpack.c.bf16 %v2355_v11, %v2347_v49 }
 0x245   : > { %v3052_v63 = vpack.c.bf16 %v2116_v54, %v2108_v45  ;;  %v2107_v53 = vmul.f32 %v9329_v0, %v8190_v27  ;;  %v2115_v3 = vmul.f32 %v9329_v0, %v8193_v32  ;;  %4068 = vmatprep.subr.bf16.mxu1 %v3172_v52  ;;  %v2363_v42 = vmul.f32 %v9330_v7, %v8190_v27  ;;  %v9358_v45 = vld [vmem:[#allocation62_spill] sm:$0xff]  ;;  %v9360_v52 = vld [vmem:[#allocation64_spill] sm:$0xff] }
 0x246   : > { %4028 = vmatpush1.bf16.msra.mxu0 %v3043_v47  ;;  %v3180_v26 = vpack.c.bf16 %v2372_v61, %v2364_v14  ;;  %v2371_v1 = vmul.f32 %v9330_v7, %v8193_v32  ;;  %4069 = vmatpush1.bf16.msra.mxu1 %v3171_v59  ;;  %v1192_v54 = vrot.slane %v9358_v45, %v9314_v28  ;;  %v9359_v47 = vld [vmem:[#allocation63_spill] sm:$0xff] }
 0x247   : > { %4029 = vmatprep.subr.bf16.mxu0 %v3052_v63  ;;  %v3051_v19 = vpack.c.bf16 %v2115_v3, %v2107_v53  ;;  %v1188_v40 = vrot.slane %v9358_v45, %v9316_v13  ;;  %v1224_v61 = vrot.slane %v9359_v47, %v9314_v28  ;;  %v1220_v14 = vrot.slane %v9359_v47, %v9316_v13 }
 0x248   : > { %4070 = vmatprep.subr.bf16.mxu1 %v3180_v26  ;;  %v3179_v49 = vpack.c.bf16 %v2371_v1, %v2363_v42  ;;  %v1256_v4 = vrot.slane %v9360_v52, %v9314_v28  ;;  %v8238_v59 = vmul.f32 %v1192_v54, %v7837_v21  ;;  %v8241_v3 = vmul.f32 %v1192_v54, %v7839_v34 }
 0x249   : > { %v8244_v11 = vmul.f32 %v1188_v40, %v7849_v20  ;;  %v8247_v26 = vmul.f32 %v1188_v40, %v7851_v12  ;;  %v8250_v63 = vmul.f32 %v1224_v61, %v7837_v21  ;;  %v8253_v53 = vmul.f32 %v1224_v61, %v7839_v34 }
 0x24a   : > { %9361 = vst [vmem:[#allocation13_spill] sm:$0xff] %v8238_v59  ;;  %9362 = vst [vmem:[#allocation19_spill] sm:$0xff] %v8241_v3  ;;  %4030 = vmatpush1.bf16.msra.mxu0 %v3051_v19  ;;  %v8256_v42 = vmul.f32 %v1220_v14, %v7849_v20  ;;  %v8259_v1 = vmul.f32 %v1220_v14, %v7851_v12  ;;  %4071 = vmatpush1.bf16.msra.mxu1 %v3179_v49 }
 0x24b   : > { %9363 = vst [vmem:[#allocation12_spill] sm:$0xff] %v8244_v11  ;;  %v2124_v45 = vmul.f32 %v9327_v17, %v8238_v59  ;;  %v2132_v54 = vmul.f32 %v9327_v17, %v8241_v3  ;;  %v2380_v19 = vmul.f32 %v9328_v6, %v8238_v59  ;;  %v2388_v40 = vmul.f32 %v9328_v6, %v8241_v3 }
 0x24c   : > { %v2123_v47 = vmul.f32 %v9329_v0, %v8244_v11  ;;  %v2131_v61 = vmul.f32 %v9329_v0, %v8247_v26  ;;  %v2379_v49 = vmul.f32 %v9330_v7, %v8244_v11  ;;  %v2387_v14 = vmul.f32 %v9330_v7, %v8247_v26 }
 0x24d   : > { %v3060_v32 = vpack.c.bf16 %v2132_v54, %v2124_v45  ;;  %v3188_v27 = vpack.c.bf16 %v2388_v40, %v2380_v19  ;;  %v2140_v59 = vmul.f32 %v9327_v17, %v8250_v63  ;;  %v2148_v3 = vmul.f32 %v9327_v17, %v8253_v53 }
 0x24e   : > { %v3059_v41 = vpack.c.bf16 %v2131_v61, %v2123_v47  ;;  %v3187_v29 = vpack.c.bf16 %v2387_v14, %v2379_v49  ;;  %v2396_v10 = vmul.f32 %v9328_v6, %v8250_v63  ;;  %v2404_v37 = vmul.f32 %v9328_v6, %v8253_v53 }
 0x24f   : > { %4031 = vmatprep.subr.bf16.mxu0 %v3060_v32  ;;  %4072 = vmatprep.subr.bf16.mxu1 %v3188_v27  ;;  %v3068_v11 = vpack.c.bf16 %v2148_v3, %v2140_v59  ;;  %v2139_v45 = vmul.f32 %v9329_v0, %v8256_v42  ;;  %v2147_v54 = vmul.f32 %v9329_v0, %v8259_v1 }
 0x250   : > { %4032 = vmatpush1.bf16.msra.mxu0 %v3059_v41  ;;  %4073 = vmatpush1.bf16.msra.mxu1 %v3187_v29  ;;  %v3196_v19 = vpack.c.bf16 %v2404_v37, %v2396_v10  ;;  %v2395_v40 = vmul.f32 %v9330_v7, %v8256_v42  ;;  %v2403_v47 = vmul.f32 %v9330_v7, %v8259_v1  ;;  %v9366_v37 = vld [vmem:[#allocation65_spill] sm:$0xff] }
 0x251   : > { %4033 = vmatprep.subr.bf16.mxu0 %v3068_v11  ;;  %v3067_v61 = vpack.c.bf16 %v2147_v54, %v2139_v45  ;;  %v8294_v27 = vmul.f32 %v1256_v4, %v7837_v21  ;;  %v8297_v32 = vmul.f32 %v1256_v4, %v7839_v34  ;;  %v1252_v59 = vrot.slane %v9360_v52, %v9316_v13 }
 0x252   : > { %4074 = vmatprep.subr.bf16.mxu1 %v3196_v19  ;;  %v3195_v29 = vpack.c.bf16 %v2403_v47, %v2395_v40  ;;  %v1288_v10 = vrot.slane %v9366_v37, %v9314_v28  ;;  %v1284_v41 = vrot.slane %v9366_v37, %v9316_v13  ;;  %v1320_v3 = vrot.slane %v5157_v50, %v9314_v28 }
 0x253   : > { %9364 = vst [vmem:[#allocation18_spill] sm:$0xff] %v8294_v27  ;;  %9365 = vst [vmem:[#allocation25_spill] sm:$0xff] %v8297_v32  ;;  %v2156_v11 = vmul.f32 %v9327_v17, %v8294_v27  ;;  %v2164_v4 = vmul.f32 %v9327_v17, %v8297_v32  ;;  %v2412_v52 = vmul.f32 %v9328_v6, %v8294_v27 }
 0x254   : > { %v2420_v49 = vmul.f32 %v9328_v6, %v8297_v32  ;;  %4034 = vmatpush1.bf16.msra.mxu0 %v3067_v61  ;;  %4075 = vmatpush1.bf16.msra.mxu1 %v3195_v29  ;;  %v8316_v14 = vmul.f32 %v1252_v59, %v7849_v20  ;;  %v8319_v45 = vmul.f32 %v1252_v59, %v7851_v12 }
 0x255   : > { %v8322_v28 = vmul.f32 %v1288_v10, %v7837_v21  ;;  %v3076_v54 = vpack.c.bf16 %v2164_v4, %v2156_v11  ;;  %v8325_v40 = vmul.f32 %v1288_v10, %v7839_v34  ;;  %v8328_v47 = vmul.f32 %v1284_v41, %v7849_v20 }
 0x256   : > { %9367 = vst [vmem:[#allocation31_spill] sm:$0xff] %v8316_v14  ;;  %9368 = vst [vmem:[#allocation24_spill] sm:$0xff] %v8319_v45  ;;  %v3204_v19 = vpack.c.bf16 %v2420_v49, %v2412_v52  ;;  %v2155_v61 = vmul.f32 %v9329_v0, %v8316_v14  ;;  %v2163_v29 = vmul.f32 %v9329_v0, %v8319_v45 }
 0x257   : > { %v2411_v59 = vmul.f32 %v9330_v7, %v8316_v14  ;;  %v2419_v37 = vmul.f32 %v9330_v7, %v8319_v45  ;;  %4035 = vmatprep.subr.bf16.mxu0 %v3076_v54  ;;  %v2172_v10 = vmul.f32 %v9327_v17, %v8322_v28  ;;  %v2180_v11 = vmul.f32 %v9327_v17, %v8325_v40 }
 0x258   : > { %4076 = vmatprep.subr.bf16.mxu1 %v3204_v19  ;;  %v2428_v4 = vmul.f32 %v9328_v6, %v8322_v28  ;;  %v3075_v52 = vpack.c.bf16 %v2163_v29, %v2155_v61  ;;  %v2436_v32 = vmul.f32 %v9328_v6, %v8325_v40  ;;  %v8347_v14 = vmul.f32 %v1284_v41, %v7851_v12 }
 0x259   : > { %v3203_v49 = vpack.c.bf16 %v2419_v37, %v2411_v59  ;;  %v3084_v45 = vpack.c.bf16 %v2180_v11, %v2172_v10  ;;  %v2171_v54 = vmul.f32 %v9329_v0, %v8328_v47  ;;  %v2427_v19 = vmul.f32 %v9330_v7, %v8328_v47 }
 0x25a   : > { %v8354_v27 = vmul.f32 %v1320_v3, %v7837_v21  ;;  %4036 = vmatpush1.bf16.msra.mxu0 %v3075_v52  ;;  %v3212_v61 = vpack.c.bf16 %v2436_v32, %v2428_v4  ;;  %v2179_v29 = vmul.f32 %v9329_v0, %v8347_v14  ;;  %v2435_v41 = vmul.f32 %v9330_v7, %v8347_v14  ;;  %v9369_v4 = vld [vmem:[#allocation29_spill] sm:$0xff] }
 0x25b   : > { %4077 = vmatpush1.bf16.msra.mxu1 %v3203_v49  ;;  %4037 = vmatprep.subr.bf16.mxu0 %v3084_v45  ;;  %v8361_v59 = vmul.f32 %v1320_v3, %v7839_v34  ;;  %v1316_v10 = vrot.slane %v5157_v50, %v9316_v13  ;;  %v2460_v52 = vmul.f32 %v9369_v4, %v7865_v56 }
 0x25c   : > { %v2188_v37 = vmul.f32 %v9327_v17, %v8354_v27  ;;  %v2444_v21 = vmul.f32 %v9328_v6, %v8354_v27  ;;  %4078 = vmatprep.subr.bf16.mxu1 %v3212_v61  ;;  %v3083_v32 = vpack.c.bf16 %v2179_v29, %v2171_v54  ;;  %v3211_v11 = vpack.c.bf16 %v2435_v41, %v2427_v19  ;;  %v9370_v54 = vld [vmem:[#allocation35_spill] sm:$0xff] }
 0x25d   : > { %v2468_v45 = vmul.f32 %v9369_v4, %v7868_v39  ;;  %v2196_v34 = vmul.f32 %v9327_v17, %v8361_v59  ;;  %v2452_v3 = vmul.f32 %v9328_v6, %v8361_v59  ;;  %v8378_v49 = vmul.f32 %v1316_v10, %v7849_v20 }
 0x25e   : > { %v8381_v50 = vmul.f32 %v1316_v10, %v7851_v12  ;;  %4038 = vmatpush1.bf16.msra.mxu0 %v3083_v32  ;;  %v2716_v19 = vmul.f32 %v9370_v54, %v7865_v56  ;;  %v2724_v61 = vmul.f32 %v9370_v54, %v7868_v39  ;;  %v9371_v56 = vld [vmem:[#allocation28_spill] sm:$0xff] }
 0x25f   : > { %4079 = vmatpush1.bf16.msra.mxu1 %v3211_v11  ;;  %v3228_v13 = vpack.c.bf16 %v2468_v45, %v2460_v52  ;;  %v3092_v29 = vpack.c.bf16 %v2196_v34, %v2188_v37  ;;  %v3220_v17 = vpack.c.bf16 %v2452_v3, %v2444_v21  ;;  %v2187_v6 = vmul.f32 %v9329_v0, %v8378_v49  ;;  %v9372_v21 = vld [vmem:[#allocation34_spill] sm:$0xff] }
 0x260   : > { %v2195_v20 = vmul.f32 %v9329_v0, %v8381_v50  ;;  %v2443_v12 = vmul.f32 %v9330_v7, %v8378_v49  ;;  %v2451_v41 = vmul.f32 %v9330_v7, %v8381_v50  ;;  %v3356_v10 = vpack.c.bf16 %v2724_v61, %v2716_v19 }
 0x261   : > { %v2459_v32 = vmul.f32 %v9371_v56, %v7880_v33  ;;  %4039 = vmatprep.subr.bf16.mxu0 %v3092_v29  ;;  %4080 = vmatprep.subr.bf16.mxu1 %v3220_v17  ;;  %v2467_v37 = vmul.f32 %v9371_v56, %v7883_v35  ;;  %v2715_v11 = vmul.f32 %v9372_v21, %v7880_v33 }
 0x262   : > { %v3091_v39 = vpack.c.bf16 %v2195_v20, %v2187_v6  ;;  %v3219_v0 = vpack.c.bf16 %v2451_v41, %v2443_v12  ;;  %v2723_v52 = vmul.f32 %v9372_v21, %v7883_v35  ;;  %v2476_v7 = vmul.f32 %v9369_v4, %v7871_v2 }
 0x263   : > { %v2484_v45 = vmul.f32 %v9369_v4, %v7874_v43  ;;  %v3227_v34 = vpack.c.bf16 %v2467_v37, %v2459_v32  ;;  %v2732_v3 = vmul.f32 %v9370_v54, %v7871_v2  ;;  %v2740_v19 = vmul.f32 %v9370_v54, %v7874_v43 }
 0x264   : > { %4040 = vmatpush1.bf16.msra.mxu0 %v3091_v39  ;;  %v2475_v33 = vmul.f32 %v9371_v56, %v7887_v57  ;;  %4081 = vmatpush1.bf16.msra.mxu1 %v3219_v0  ;;  %v3355_v35 = vpack.c.bf16 %v2723_v52, %v2715_v11  ;;  %v2483_v29 = vmul.f32 %v9371_v56, %v7921_v51 }
 0x265   : > { %4091 = vmatprep.subr.bf16.mxu0 %v3228_v13  ;;  %v3236_v61 = vpack.c.bf16 %v2484_v45, %v2476_v7  ;;  %4132 = vmatprep.subr.bf16.mxu1 %v3356_v10  ;;  %v3364_v17 = vpack.c.bf16 %v2740_v19, %v2732_v3  ;;  %v2731_v6 = vmul.f32 %v9372_v21, %v7887_v57 }
 0x266   : > { %v2739_v2 = vmul.f32 %v9372_v21, %v7921_v51  ;;  %v2492_v43 = vmul.f32 %v9369_v4, %v7930_v38  ;;  %v3235_v20 = vpack.c.bf16 %v2483_v29, %v2475_v33  ;;  %v2500_v13 = vmul.f32 %v9369_v4, %v7934_v62  ;;  %v3838_v33 = vpop.f32.mrb[12].mxu1 }
 0x267   : > { %4042 = vmatmul.mubr.bf16.vlgmr.msra.gmra.mrb[24].mxu0 %v5125_v48  ;;  %v2748_v12 = vmul.f32 %v9370_v54, %v7930_v38  ;;  %v2756_v41 = vmul.f32 %v9370_v54, %v7934_v62  ;;  %4083 = vmatmul.mubr.bf16.vlgmr.msra.gmra.mrb[24].mxu1 %v5137_v5  ;;  %v2491_v51 = vmul.f32 %v9371_v56, %v7943_v58  ;;  %v3840_v29 = vpop.f32.mrb[13].mxu1 }
 0x268   : > { %4092 = vmatpush1.bf16.msra.mxu0 %v3227_v34  ;;  %v3363_v57 = vpack.c.bf16 %v2739_v2, %v2731_v6  ;;  %v2499_v48 = vmul.f32 %v9371_v56, %v7955_v18  ;;  %4133 = vmatpush1.bf16.msra.mxu1 %v3355_v35  ;;  %v3244_v10 = vpack.c.bf16 %v2500_v13, %v2492_v43  ;;  %v3797_v34 = vpop.f32.mrb[12].mxu0 }
 0x269   : > { %4093 = vmatprep.subr.bf16.mxu0 %v3236_v61  ;;  %v3372_v32 = vpack.c.bf16 %v2756_v41, %v2748_v12  ;;  %v2747_v38 = vmul.f32 %v9372_v21, %v7943_v58  ;;  %4134 = vmatprep.subr.bf16.mxu1 %v3364_v17  ;;  %v2755_v5 = vmul.f32 %v9372_v21, %v7955_v18  ;;  %v3799_v35 = vpop.f32.mrb[13].mxu0 }
 0x26a   : > { %v3243_v39 = vpack.c.bf16 %v2499_v48, %v2491_v51  ;;  %v2508_v62 = vmul.f32 %v9369_v4, %v7963_v25  ;;  %v2516_v37 = vmul.f32 %v9369_v4, %v7972_v22  ;;  %v2764_v11 = vmul.f32 %v9370_v54, %v7963_v25  ;;  %4123 = vmatprep.mubr.bf16.mxu0 %v5798_v15  ;;  %v3801_v17 = vpop.f32.mrb[14].mxu0 }
 0x26b   : > { %v2772_v0 = vmul.f32 %v9370_v54, %v7972_v22  ;;  %v2507_v58 = vmul.f32 %v9371_v56, %v7980_v9  ;;  %v2515_v52 = vmul.f32 %v9371_v56, %v7988_v31  ;;  %v3371_v18 = vpack.c.bf16 %v2755_v5, %v2747_v38  ;;  %v3802_v13 = vpop.f32.mrb[15].mxu0  ;;  %4164 = vmatprep.mubr.bf16.mxu1 %v9285_v36  ;;  %v9378_v17 = vld [vmem:[#allocation77_spill] sm:$0xff] }
 0x26c   : > { %4094 = vmatpush1.bf16.msra.mxu0 %v3235_v20  ;;  %v3252_v7 = vpack.c.bf16 %v2516_v37, %v2508_v62  ;;  %v2763_v45 = vmul.f32 %v9372_v21, %v7980_v9  ;;  %v2771_v25 = vmul.f32 %v9372_v21, %v7988_v31  ;;  %4135 = vmatpush1.bf16.msra.mxu1 %v3363_v57  ;;  %v9373_v62 = vld [vmem:[#allocation72_spill] sm:$0xff] }
 0x26d   : > { %4095 = vmatprep.subr.bf16.mxu0 %v3244_v10  ;;  %v3380_v22 = vpack.c.bf16 %v2772_v0, %v2764_v11  ;;  %v3251_v3 = vpack.c.bf16 %v2515_v52, %v2507_v58  ;;  %v2524_v19 = vmul.f32 %v9369_v4, %v7996_v44  ;;  %4136 = vmatprep.subr.bf16.mxu1 %v3372_v32  ;;  %v3479_v10 = vld [vmem:[%s4475_s29 + $0x10] sm:$0xff]  ;;  %v3480_v32 = vld [vmem:[%s4475_s29 + $0x18] sm:$0xff] }
 0x26e   : > { %v3379_v15 = vpack.c.bf16 %v2771_v25, %v2763_v45  ;;  %v2532_v61 = vmul.f32 %v9369_v4, %v8001_v8  ;;  %v2780_v9 = vmul.f32 %v9370_v54, %v7996_v44  ;;  %v2788_v31 = vmul.f32 %v9370_v54, %v8001_v8  ;;  %v3842_v44 = vpop.f32.mrb[14].mxu1 }
 0x26f   : > { %v2523_v6 = vmul.f32 %v9371_v56, %v8005_v30  ;;  %v2531_v2 = vmul.f32 %v9371_v56, %v8021_v46  ;;  %v2779_v43 = vmul.f32 %v9372_v21, %v8005_v30  ;;  %v2787_v20 = vmul.f32 %v9372_v21, %v8021_v46  ;;  %v3843_v51 = vpop.f32.mrb[15].mxu1 }
 0x270   : > { %4096 = vmatpush1.bf16.msra.mxu0 %v3243_v39  ;;  %v3260_v8 = vpack.c.bf16 %v2532_v61, %v2524_v19  ;;  %v3388_v12 = vpack.c.bf16 %v2788_v31, %v2780_v9  ;;  %v3798_v41 = vadd.f32 %v3797_v34, %v8047_v23  ;;  %v3800_v57 = vadd.f32 %v3799_v35, %v8055_v55  ;;  %v9375_v34 = vld [vmem:[#allocation74_spill] sm:$0xff]  ;;  %v9376_v19 = vld [vmem:[#allocation75_spill] sm:$0xff]  ;;  %v9377_v35 = vld [vmem:[#allocation76_spill] sm:$0xff] }
 0x271   : > { %4137 = vmatpush1.bf16.msra.mxu1 %v3371_v18  ;;  %4097 = vmatprep.subr.bf16.mxu0 %v3252_v7  ;;  %v3259_v48 = vpack.c.bf16 %v2531_v2, %v2523_v6  ;;  %v3387_v30 = vpack.c.bf16 %v2787_v20, %v2779_v43  ;;  %v2540_v46 = vmul.f32 %v9369_v4, %v8033_v16  ;;  %v9374_v7 = vld [vmem:[#allocation73_spill] sm:$0xff]  ;;  %v9379_v2 = vld [vmem:[#allocation78_spill] sm:$0xff]  ;;  %v9381_v51 = vld [vmem:[#allocation7_spill] sm:$0xff] }
 0x272   : > { %4138 = vmatprep.subr.bf16.mxu1 %v3380_v22  ;;  %v3839_v38 = vadd.f32 %v3838_v33, %v3798_v41  ;;  %v3841_v36 = vadd.f32 %v3840_v29, %v3800_v57  ;;  %v2548_v39 = vmul.f32 %v9369_v4, %v8037_v24  ;;  %v2796_v23 = vmul.f32 %v9370_v54, %v8033_v16  ;;  %v9380_v41 = vld [vmem:[#allocation79_spill] sm:$0xff] }
 0x273   : > { %v2804_v55 = vmul.f32 %v9370_v54, %v8037_v24  ;;  %v2539_v5 = vmul.f32 %v9371_v56, %v8041_v60  ;;  %v2547_v37 = vmul.f32 %v9371_v56, %v9373_v62  ;;  %v2795_v11 = vmul.f32 %v9372_v21, %v8041_v60 }
 0x274   : > { %4098 = vmatpush1.bf16.msra.mxu0 %v3251_v3  ;;  %v4175_v0 = vadd.f32 %v3839_v38, %v3479_v10  ;;  %v4176_v58 = vadd.f32 %v3841_v36, %v3480_v32  ;;  %v3268_v52 = vpack.c.bf16 %v2548_v39, %v2540_v46  ;;  %v2803_v16 = vmul.f32 %v9372_v21, %v9373_v62  ;;  %v9382_v32 = vld [vmem:[#allocation5_spill] sm:$0xff]  ;;  %v9383_v38 = vld [vmem:[#allocation15_spill] sm:$0xff] }
 0x275   : > { %4139 = vmatpush1.bf16.msra.mxu1 %v3379_v15  ;;  %4099 = vmatprep.subr.bf16.mxu0 %v3260_v8  ;;  %v3396_v24 = vpack.c.bf16 %v2804_v55, %v2796_v23  ;;  %v3267_v18 = vpack.c.bf16 %v2547_v37, %v2539_v5  ;;  %v2556_v45 = vmul.f32 %v9369_v4, %v9374_v7 }
 0x276   : > { %4140 = vmatprep.subr.bf16.mxu1 %v3388_v12  ;;  %4183 = vst [vmem:[%s4475_s29 + $0x10] sm:$0xff] %v4175_v0  ;;  %4184 = vst [vmem:[%s4475_s29 + $0x18] sm:$0xff] %v4176_v58  ;;  %v3395_v25 = vpack.c.bf16 %v2803_v16, %v2795_v11  ;;  %v2564_v60 = vmul.f32 %v9369_v4, %v9375_v34  ;;  %v2812_v22 = vmul.f32 %v9370_v54, %v9374_v7  ;;  %v9384_v11 = vld [vmem:[#allocation21_spill] sm:$0xff]  ;;  %v9386_v7 = vld [vmem:[#allocation20_spill] sm:$0xff] }
 0x277   : > { %v2820_v3 = vmul.f32 %v9370_v54, %v9375_v34  ;;  %v2555_v33 = vmul.f32 %v9371_v56, %v9376_v19  ;;  %v2563_v15 = vmul.f32 %v9371_v56, %v9377_v35  ;;  %v2811_v61 = vmul.f32 %v9372_v21, %v9376_v19 }
 0x278   : > { %v2819_v9 = vmul.f32 %v9372_v21, %v9377_v35  ;;  %4100 = vmatpush1.bf16.msra.mxu0 %v3259_v48  ;;  %v3276_v31 = vpack.c.bf16 %v2564_v60, %v2556_v45  ;;  %v2572_v6 = vmul.f32 %v9369_v4, %v9378_v17  ;;  %v2580_v43 = vmul.f32 %v9369_v4, %v9379_v2 }
 0x279   : > { %v3404_v29 = vpack.c.bf16 %v2820_v3, %v2812_v22  ;;  %4141 = vmatpush1.bf16.msra.mxu1 %v3387_v30  ;;  %4101 = vmatprep.subr.bf16.mxu0 %v3268_v52  ;;  %v3275_v20 = vpack.c.bf16 %v2563_v15, %v2555_v33  ;;  %v2828_v13 = vmul.f32 %v9370_v54, %v9378_v17  ;;  %v9385_v52 = vld [vmem:[#allocation14_spill] sm:$0xff]  ;;  %v9388_v33 = vld [vmem:[#allocation33_spill] sm:$0xff] }
 0x27a   : > { %v3403_v44 = vpack.c.bf16 %v2819_v9, %v2811_v61  ;;  %4142 = vmatprep.subr.bf16.mxu1 %v3396_v24  ;;  %v3284_v8 = vpack.c.bf16 %v2580_v43, %v2572_v6  ;;  %v2836_v12 = vmul.f32 %v9370_v54, %v9379_v2  ;;  %v2571_v57 = vmul.f32 %v9371_v56, %v9380_v41  ;;  %v9389_v15 = vld [vmem:[#allocation26_spill] sm:$0xff]  ;;  %v9390_v2 = vld [vmem:[#allocation32_spill] sm:$0xff] }
 0x27b   : > { %v2579_v48 = vmul.f32 %v9371_v56, %v9381_v51  ;;  %v2827_v30 = vmul.f32 %v9372_v21, %v9380_v41  ;;  %v2835_v10 = vmul.f32 %v9372_v21, %v9381_v51  ;;  %v2588_v46 = vmul.f32 %v9369_v4, %v9382_v32 }
 0x27c   : > { %v2596_v36 = vmul.f32 %v9369_v4, %v9383_v38  ;;  %4102 = vmatpush1.bf16.msra.mxu0 %v3267_v18  ;;  %v3412_v39 = vpack.c.bf16 %v2836_v12, %v2828_v13  ;;  %v2844_v55 = vmul.f32 %v9370_v54, %v9382_v32  ;;  %v2852_v5 = vmul.f32 %v9370_v54, %v9383_v38  ;;  %v9392_v12 = vld [vmem:[#allocation4_spill] sm:$0xff] }
 0x27d   : > { %v3283_v23 = vpack.c.bf16 %v2579_v48, %v2571_v57  ;;  %4143 = vmatpush1.bf16.msra.mxu1 %v3395_v25  ;;  %4103 = vmatprep.subr.bf16.mxu0 %v3276_v31  ;;  %v3411_v62 = vpack.c.bf16 %v2835_v10, %v2827_v30  ;;  %v2587_v0 = vmul.f32 %v9371_v56, %v9384_v11  ;;  %v9387_v25 = vld [vmem:[#allocation27_spill] sm:$0xff] }
 0x27e   : > { %v3292_v37 = vpack.c.bf16 %v2596_v36, %v2588_v46  ;;  %4144 = vmatprep.subr.bf16.mxu1 %v3404_v29  ;;  %v3420_v58 = vpack.c.bf16 %v2852_v5, %v2844_v55  ;;  %v2595_v16 = vmul.f32 %v9371_v56, %v9385_v52  ;;  %v2843_v24 = vmul.f32 %v9372_v21, %v9384_v11  ;;  %v9393_v57 = vld [vmem:[#allocation3_spill] sm:$0xff]  ;;  %v9394_v36 = vld [vmem:[#allocation13_spill] sm:$0xff] }
 0x27f   : > { %v2851_v18 = vmul.f32 %v9372_v21, %v9385_v52  ;;  %v2604_v45 = vmul.f32 %v9369_v4, %v9386_v7  ;;  %v2612_v34 = vmul.f32 %v9369_v4, %v9387_v25  ;;  %v2860_v60 = vmul.f32 %v9370_v54, %v9386_v7  ;;  %v9395_v5 = vld [vmem:[#allocation19_spill] sm:$0xff]  ;;  %v9396_v52 = vld [vmem:[#allocation12_spill] sm:$0xff] }
 0x280   : > { %v2868_v22 = vmul.f32 %v9370_v54, %v9387_v25  ;;  %4104 = vmatpush1.bf16.msra.mxu0 %v3275_v20  ;;  %v3291_v3 = vpack.c.bf16 %v2595_v16, %v2587_v0  ;;  %v2603_v35 = vmul.f32 %v9371_v56, %v9388_v33  ;;  %v2611_v61 = vmul.f32 %v9371_v56, %v9389_v15  ;;  %v9391_v20 = vld [vmem:[#allocation37_spill] sm:$0xff] }
 0x281   : > { %v3419_v19 = vpack.c.bf16 %v2851_v18, %v2843_v24  ;;  %4145 = vmatpush1.bf16.msra.mxu1 %v3403_v44  ;;  %4105 = vmatprep.subr.bf16.mxu0 %v3284_v8  ;;  %v3300_v9 = vpack.c.bf16 %v2612_v34, %v2604_v45  ;;  %v2859_v29 = vmul.f32 %v9372_v21, %v9388_v33 }
 0x282   : > { %v3428_v31 = vpack.c.bf16 %v2868_v22, %v2860_v60  ;;  %4146 = vmatprep.subr.bf16.mxu1 %v3412_v39  ;;  %v3299_v17 = vpack.c.bf16 %v2611_v61, %v2603_v35  ;;  %v2867_v6 = vmul.f32 %v9372_v21, %v9389_v15  ;;  %v2620_v43 = vmul.f32 %v9369_v4, %v9390_v2  ;;  %v9397_v15 = vld [vmem:[#allocation18_spill] sm:$0xff]  ;;  %v9398_v61 = vld [vmem:[#allocation25_spill] sm:$0xff] }
 0x283   : > { %v2628_v13 = vmul.f32 %v9369_v4, %v9391_v20  ;;  %v2876_v44 = vmul.f32 %v9370_v54, %v9390_v2  ;;  %v2884_v8 = vmul.f32 %v9370_v54, %v9391_v20  ;;  %v2619_v41 = vmul.f32 %v9371_v56, %v9392_v12 }
 0x284   : > { %v2627_v51 = vmul.f32 %v9371_v56, %v9393_v57  ;;  %4106 = vmatpush1.bf16.msra.mxu0 %v3283_v23  ;;  %v3427_v48 = vpack.c.bf16 %v2867_v6, %v2859_v29  ;;  %v2875_v10 = vmul.f32 %v9372_v21, %v9392_v12  ;;  %v2883_v32 = vmul.f32 %v9372_v21, %v9393_v57 }
 0x285   : > { %v3308_v30 = vpack.c.bf16 %v2628_v13, %v2620_v43  ;;  %4147 = vmatpush1.bf16.msra.mxu1 %v3411_v62  ;;  %4107 = vmatprep.subr.bf16.mxu0 %v3292_v37  ;;  %v3436_v46 = vpack.c.bf16 %v2884_v8, %v2876_v44  ;;  %v2636_v39 = vmul.f32 %v9369_v4, %v9394_v36  ;;  %v9400_v13 = vld [vmem:[#allocation24_spill] sm:$0xff] }
 0x286   : > { %v3307_v38 = vpack.c.bf16 %v2627_v51, %v2619_v41  ;;  %4148 = vmatprep.subr.bf16.mxu1 %v3420_v58  ;;  %v3435_v55 = vpack.c.bf16 %v2883_v32, %v2875_v10  ;;  %v2644_v23 = vmul.f32 %v9369_v4, %v9395_v5  ;;  %v2892_v11 = vmul.f32 %v9370_v54, %v9394_v36 }
 0x287   : > { %v2900_v0 = vmul.f32 %v9370_v54, %v9395_v5  ;;  %v2635_v62 = vmul.f32 %v9371_v56, %v9396_v52  ;;  %v2643_v37 = vmul.f32 %v9371_v56, %v8247_v26  ;;  %v8587_v16 = vmul.f32 %v9372_v21, %v9396_v52 }
 0x288   : > { %v8591_v58 = vmul.f32 %v9372_v21, %v8247_v26  ;;  %4108 = vmatpush1.bf16.msra.mxu0 %v3291_v3  ;;  %v3316_v24 = vpack.c.bf16 %v2644_v23, %v2636_v39  ;;  %v2652_v7 = vmul.f32 %v9369_v4, %v8250_v63  ;;  %v2660_v45 = vmul.f32 %v9369_v4, %v8253_v53 }
 0x289   : > { %v3444_v18 = vpack.c.bf16 %v2900_v0, %v2892_v11  ;;  %4149 = vmatpush1.bf16.msra.mxu1 %v3419_v19  ;;  %4109 = vmatprep.subr.bf16.mxu0 %v3300_v9  ;;  %v3315_v25 = vpack.c.bf16 %v2643_v37, %v2635_v62  ;;  %v2908_v60 = vmul.f32 %v9370_v54, %v8250_v63 }
 0x28a   : > { %v3443_v34 = vpack.c.bf16 %v8591_v58, %v8587_v16  ;;  %4150 = vmatprep.subr.bf16.mxu1 %v3428_v31  ;;  %v3324_v26 = vpack.c.bf16 %v2660_v45, %v2652_v7  ;;  %v2916_v22 = vmul.f32 %v9370_v54, %v8253_v53  ;;  %v2651_v3 = vmul.f32 %v9371_v56, %v8256_v42 }
 0x28b   : > { %v2659_v33 = vmul.f32 %v9371_v56, %v8259_v1  ;;  %v2907_v19 = vmul.f32 %v9372_v21, %v8256_v42  ;;  %v2915_v35 = vmul.f32 %v9372_v21, %v8259_v1  ;;  %v2668_v63 = vmul.f32 %v9369_v4, %v9397_v15  ;;  %v9399_v1 = vld [vmem:[#allocation31_spill] sm:$0xff] }
 0x28c   : > { %v2676_v9 = vmul.f32 %v9369_v4, %v9398_v61  ;;  %4110 = vmatpush1.bf16.msra.mxu0 %v3299_v17  ;;  %v3452_v53 = vpack.c.bf16 %v2916_v22, %v2908_v60  ;;  %v2924_v29 = vmul.f32 %v9370_v54, %v9397_v15  ;;  %v2932_v6 = vmul.f32 %v9370_v54, %v9398_v61  ;;  %v3481_v22 = vld [vmem:[%s4475_s29 + $0x20] sm:$0xff]  ;;  %v3482_v15 = vld [vmem:[%s4475_s29 + $0x28] sm:$0xff] }
 0x28d   : > { %v3323_v31 = vpack.c.bf16 %v2659_v33, %v2651_v3  ;;  %4151 = vmatpush1.bf16.msra.mxu1 %v3427_v48  ;;  %4111 = vmatprep.subr.bf16.mxu0 %v3308_v30  ;;  %v3451_v42 = vpack.c.bf16 %v2915_v35, %v2907_v19  ;;  %v2667_v43 = vmul.f32 %v9371_v56, %v9399_v1 }
 0x28e   : > { %v3332_v2 = vpack.c.bf16 %v2676_v9, %v2668_v63  ;;  %4152 = vmatprep.subr.bf16.mxu1 %v3436_v46  ;;  %v3460_v20 = vpack.c.bf16 %v2932_v6, %v2924_v29  ;;  %v2675_v17 = vmul.f32 %v9371_v56, %v9400_v13  ;;  %v2923_v44 = vmul.f32 %v9372_v21, %v9399_v1 }
 0x28f   : > { %v2931_v8 = vmul.f32 %v9372_v21, %v9400_v13  ;;  %v2684_v12 = vmul.f32 %v9369_v4, %v8322_v28  ;;  %v2692_v41 = vmul.f32 %v9369_v4, %v8325_v40  ;;  %v2940_v57 = vmul.f32 %v9370_v54, %v8322_v28 }
 0x290   : > { %v2948_v51 = vmul.f32 %v9370_v54, %v8325_v40  ;;  %4112 = vmatpush1.bf16.msra.mxu0 %v3307_v38  ;;  %v3331_v48 = vpack.c.bf16 %v2675_v17, %v2667_v43  ;;  %v2683_v10 = vmul.f32 %v9371_v56, %v8328_v47  ;;  %v2691_v32 = vmul.f32 %v9371_v56, %v8347_v14 }
 0x291   : > { %v3459_v30 = vpack.c.bf16 %v2931_v8, %v2923_v44  ;;  %4153 = vmatpush1.bf16.msra.mxu1 %v3435_v55  ;;  %4113 = vmatprep.subr.bf16.mxu0 %v3316_v24  ;;  %v3340_v46 = vpack.c.bf16 %v2692_v41, %v2684_v12  ;;  %v2939_v39 = vmul.f32 %v9372_v21, %v8328_v47 }
 0x292   : > { %v3468_v36 = vpack.c.bf16 %v2948_v51, %v2940_v57  ;;  %4154 = vmatprep.subr.bf16.mxu1 %v3444_v18  ;;  %v3339_v28 = vpack.c.bf16 %v2691_v32, %v2683_v10  ;;  %v2947_v40 = vmul.f32 %v9372_v21, %v8347_v14  ;;  %v2700_v38 = vmul.f32 %v9369_v4, %v8354_v27 }
 0x293   : > { %v2708_v5 = vmul.f32 %v9369_v4, %v8361_v59  ;;  %v2956_v55 = vmul.f32 %v9370_v54, %v8354_v27  ;;  %v2964_v23 = vmul.f32 %v9370_v54, %v8361_v59  ;;  %v2699_v47 = vmul.f32 %v9371_v56, %v8378_v49 }
 0x294   : > { %v2707_v11 = vmul.f32 %v9371_v56, %v8381_v50  ;;  %4114 = vmatpush1.bf16.msra.mxu0 %v3315_v25  ;;  %v3467_v14 = vpack.c.bf16 %v2947_v40, %v2939_v39  ;;  %v2955_v52 = vmul.f32 %v9372_v21, %v8378_v49  ;;  %v2963_v4 = vmul.f32 %v9372_v21, %v8381_v50  ;;  %v9401_v49 = vld [vmem:[#allocation39_spill] sm:$0xff]  ;;  %v9402_v50 = vld [vmem:[#allocation40_spill] sm:$0xff] }
 0x295   : > { %v3348_v0 = vpack.c.bf16 %v2708_v5, %v2700_v38  ;;  %4155 = vmatpush1.bf16.msra.mxu1 %v3443_v34  ;;  %4115 = vmatprep.subr.bf16.mxu0 %v3324_v26  ;;  %v3476_v27 = vpack.c.bf16 %v2964_v23, %v2956_v55 }
 0x296   : > { %v3347_v62 = vpack.c.bf16 %v2707_v11, %v2699_v47  ;;  %4156 = vmatprep.subr.bf16.mxu1 %v3452_v53  ;;  %v3475_v59 = vpack.c.bf16 %v2963_v4, %v2955_v52 }
 0x298   : > { %4116 = vmatpush1.bf16.msra.mxu0 %v3323_v31 }
 0x299   : > { %4157 = vmatpush1.bf16.msra.mxu1 %v3451_v42  ;;  %4117 = vmatprep.subr.bf16.mxu0 %v3332_v2 }
 0x29a   : > { %4158 = vmatprep.subr.bf16.mxu1 %v3460_v20 }
 0x29c   : > { %4118 = vmatpush1.bf16.msra.mxu0 %v3331_v48  ;;  %v3483_v48 = vld [vmem:[%s4475_s29 + $0x30] sm:$0xff] }
 0x29d   : > { %4159 = vmatpush1.bf16.msra.mxu1 %v3459_v30  ;;  %4119 = vmatprep.subr.bf16.mxu0 %v3340_v46 }
 0x29e   : > { %4160 = vmatprep.subr.bf16.mxu1 %v3468_v36  ;;  %v3484_v36 = vld [vmem:[%s4475_s29 + $0x38] sm:$0xff] }
 0x2a0   : > { %4120 = vmatpush1.bf16.msra.mxu0 %v3339_v28 }
 0x2a1   : > { %4161 = vmatpush1.bf16.msra.mxu1 %v3467_v14  ;;  %4121 = vmatprep.subr.bf16.mxu0 %v3348_v0 }
 0x2a2   : > { %4162 = vmatprep.subr.bf16.mxu1 %v3476_v27 }
 0x2a4   : > { %4122 = vmatpush1.bf16.msra.mxu0 %v3347_v62 }
 0x2a5   : > { %4163 = vmatpush1.bf16.msra.mxu1 %v3475_v59 }
 0x2a7   : > { %4124 = vmatmul.mubr.bf16.vlgmr.msra.gmra.mrb[28].mxu0 %v9401_v49 }
 0x2a8   : > { %4165 = vmatmul.mubr.bf16.vlgmr.msra.gmra.mrb[28].mxu1 %v9402_v50 }
 0x2ad   : > { %v3879_v54 = vpop.f32.mrb[16].mxu0  ;;  %v3920_v56 = vpop.f32.mrb[16].mxu1 }
 0x2ae   : > { %v3881_v21 = vpop.f32.mrb[17].mxu0  ;;  %v3921_v37 = vadd.f32 %v3920_v56, %v3879_v54  ;;  %v3922_v16 = vpop.f32.mrb[17].mxu1 }
 0x2af   : > { %v3883_v58 = vpop.f32.mrb[18].mxu0  ;;  %v3923_v24 = vadd.f32 %v3922_v16, %v3881_v21  ;;  %v3924_v18 = vpop.f32.mrb[18].mxu1 }
 0x2b0   : > { %v3884_v7 = vpop.f32.mrb[19].mxu0  ;;  %v3925_v45 = vpop.f32.mrb[19].mxu1 }
 0x2ed   : > { %v3961_v25 = vpop.f32.mrb[20].mxu0 }
 0x2ee   : > { %v3962_v34 = vadd.f32 %v3961_v25, %v3921_v37  ;;  %v4002_v60 = vpop.f32.mrb[20].mxu1  ;;  %v3963_v26 = vpop.f32.mrb[21].mxu0 }
 0x2ef   : > { %v3964_v3 = vadd.f32 %v3963_v26, %v3923_v24  ;;  %v4004_v33 = vpop.f32.mrb[21].mxu1  ;;  %v3965_v19 = vpop.f32.mrb[22].mxu0 }
 0x2f0   : > { %v4003_v35 = vadd.f32 %v4002_v60, %v3962_v34  ;;  %v4006_v63 = vpop.f32.mrb[22].mxu1  ;;  %v3966_v61 = vpop.f32.mrb[23].mxu0 }
 0x2f1   : > { %v4005_v9 = vadd.f32 %v4004_v33, %v3964_v3  ;;  %v4007_v53 = vpop.f32.mrb[23].mxu1 }
 0x2f2   : > { %v4177_v31 = vadd.f32 %v4003_v35, %v3481_v22 }
 0x2f3   : > { %v4178_v29 = vadd.f32 %v4005_v9, %v3482_v15 }
 0x2f4   : > { %4185 = vst [vmem:[%s4475_s29 + $0x20] sm:$0xff] %v4177_v31 }
 0x2f5   : > { %4186 = vst [vmem:[%s4475_s29 + $0x28] sm:$0xff] %v4178_v29 }
 0x33a   : > { %v4043_v6 = vpop.f32.mrb[24].mxu0  ;;  %v4084_v42 = vpop.f32.mrb[24].mxu1 }
 0x33b   : > { %v4045_v2 = vpop.f32.mrb[25].mxu0  ;;  %v4085_v1 = vadd.f32 %v4084_v42, %v4043_v6  ;;  %v4086_v43 = vpop.f32.mrb[25].mxu1 }
 0x33c   : > { %v4047_v20 = vpop.f32.mrb[26].mxu0  ;;  %v4087_v13 = vadd.f32 %v4086_v43, %v4045_v2  ;;  %v4088_v17 = vpop.f32.mrb[26].mxu1 }
 0x33d   : > { %v4048_v44 = vpop.f32.mrb[27].mxu0  ;;  %v4089_v8 = vpop.f32.mrb[27].mxu1 }
 0x37a   : > { %v4125_v12 = vpop.f32.mrb[28].mxu0 }
 0x37b   : > { %v4126_v41 = vadd.f32 %v4125_v12, %v4085_v1  ;;  %v4166_v57 = vpop.f32.mrb[28].mxu1  ;;  %v4127_v51 = vpop.f32.mrb[29].mxu0 }
 0x37c   : > { %v4128_v30 = vadd.f32 %v4127_v51, %v4087_v13  ;;  %v4168_v10 = vpop.f32.mrb[29].mxu1  ;;  %v4129_v32 = vpop.f32.mrb[30].mxu0 }
 0x37d   : > { %v4167_v46 = vadd.f32 %v4166_v57, %v4126_v41  ;;  %v4170_v39 = vpop.f32.mrb[30].mxu1  ;;  %v4130_v28 = vpop.f32.mrb[31].mxu0 }
 0x37e   : > { %v4169_v40 = vadd.f32 %v4168_v10, %v4128_v30  ;;  %v4171_v38 = vpop.f32.mrb[31].mxu1 }
 0x37f   : > { %v4179_v5 = vadd.f32 %v4167_v46, %v3483_v48 }
 0x380   : > { %v4180_v55 = vadd.f32 %v4169_v40, %v3484_v36 }
 0x381   : > { %4187 = vst [vmem:[%s4475_s29 + $0x30] sm:$0xff] %v4179_v5 }
 0x382   : > { %4188 = vst [vmem:[%s4475_s29 + $0x38] sm:$0xff] %v4180_v55 }
 0x383 PF: > { %s12_s13 = sadd.s32 1, %s4410_s13   ;;  %s9403_s9 = smov %s4402_s11 }
 0x384   : > { %p9_p8 = scmp.ge.s32.totalorder %s12_s13, 6   ;;  %s9404_s10 = smov %s4406_s12 }
 0x385   : > { %s9405_s11 = smov %s9408_s14  ;;  %s9406_s12 = smov %s9412_s15 }
 0x386   :  { %11 = sbr.rel (!%p9_p8) target bundleno = 3 (0x3), region = 67 }

</bundles_post_ra>
